<compile_context>
chip_gen: v5e
topology: v5e:2x2
jax: 0.10.0
libtpu: 0.0.40
codegen_flags: <defaults>
</compile_context>

<pallas_src>
import numpy as np
import jax
import jax.numpy as jnp
from jax import lax
from jax.experimental import pallas as pl
from jax.experimental.pallas import tpu as pltpu

# ---------------------------------------------------------------- problem sizes
N, C_IN, H, W = 2, 8, 17, 17          # avg_pool(k=5,s=3): 17x17 -> 5x5 (required by fc(768, .))
C0, C1 = 128, 768                     # conv0 / conv1 output channels (fixed by the module)
NUM_CLASSES = 10
NUM_CLASSES_PAD = 128                 # lane-dense fc output; sliced back in the wrapper
EPS = 1e-3                            # BatchNorm2d eps=0.001

P_OUT = 5                             # pooled spatial extent (5x5)
NPOS = P_OUT * P_OUT                  # 25 pooling windows / conv1 taps
PATCH = 5 * 5 * C_IN                  # 200 = flattened pool window

NJ = 2                                # conv1 output-channel tiles ("parallel" axis; 2 TCs on v7x)
TN = C1 // NJ                         # 384
KCH = 5                               # K chunks over conv1's 25*128 = 3200 reduction
KC = NPOS // KCH                      # 5 spatial taps per chunk
KBLK = KC * C0                        # 640 w1 rows per chunk


# ---------------------------------------------------------------- Pallas kernel
def aux_kernel(slab_ref, w0_ref, g0_ref, b0_ref, w1_ref, g1_ref, b1_ref,
               wfc_ref, out_ref, h0_ref, acc_ref):
    k = pl.program_id(1)
    nb = out_ref.shape[0]             # batch

    @pl.when(k == 0)
    def _prologue():
        # avg_pool(5,3) + conv0(1x1) fused into ONE matmul:
        #   slab (25*N, 200) @ w0big (200, 128); w0big already carries the 1/25 factor.
        z = jnp.dot(slab_ref[...], w0_ref[...], preferred_element_type=jnp.float32)
        # BatchNorm(128), training-mode batch stats over all 25*N samples (two-pass var).
        mean0 = jnp.mean(z, axis=0, keepdims=True)
        zc = z - mean0
        var0 = jnp.mean(zc * zc, axis=0, keepdims=True)
        scale0 = g0_ref[...] * lax.rsqrt(var0 + EPS)
        h = jnp.maximum(zc * scale0 + b0_ref[...], 0.0)              # (25*N, 128), ReLU(BN(conv0))
        # scatter rows (tap p, batch n) into the im2col layout used by the 5x5 conv1.
        for p in range(NPOS):
            kk, pi = divmod(p, KC)
            h0_ref[kk, :, pi * C0:(pi + 1) * C0] = h[p * nb:(p + 1) * nb, :]
        acc_ref[...] = jnp.zeros_like(acc_ref)

    # conv1 (5x5 -> 1x1 spatial): one (N, 640) @ (640, TN) dot per K chunk.
    # w1 is stored bf16 in HBM (bandwidth); upcast here, accumulate in f32.
    acc_ref[...] += jnp.dot(h0_ref[k], w1_ref[...].astype(jnp.float32),
                            preferred_element_type=jnp.float32)

    @pl.when(k == pl.num_programs(1) - 1)
    def _epilogue():
        acc = acc_ref[...]                                           # (N, TN)
        # BatchNorm(768) over the batch (spatial is 1x1), two-pass var, + ReLU.
        mean1 = jnp.mean(acc, axis=0, keepdims=True)
        ac = acc - mean1
        var1 = jnp.mean(ac * ac, axis=0, keepdims=True)
        h1 = jnp.maximum(ac * (g1_ref[...] * lax.rsqrt(var1 + EPS)) + b1_ref[...], 0.0)
        # fc partial for this channel tile (cross-tile sum + bias added in the wrapper).
        out_ref[...] = jnp.dot(h1, wfc_ref[...].astype(jnp.float32),
                               preferred_element_type=jnp.float32)


# ---------------------------------------------------------------- wrapper
def inception_aux_forward(x_nchw, params):
    w0, g0, b0, w1_bf, g1, b1, wfc_bf, bfc = params
    x = jnp.transpose(x_nchw, (0, 2, 3, 1)).astype(jnp.float32)      # NCHW -> NHWC
    n = x.shape[0]

    # im2col of the 25 avg-pool windows: pure layout plumbing (no arithmetic here).
    cols = []
    for ph in range(P_OUT):
        for pw in range(P_OUT):
            win = x[:, ph * 3:ph * 3 + 5, pw * 3:pw * 3 + 5, :]      # (N,5,5,Cin)
            cols.append(win.reshape(n, PATCH))
    slab = jnp.concatenate(cols, axis=0)                             # (25*N, 200), row = p*N + n

    # fold the average-pool mean (1/25) into the 1x1-conv weight.
    w0big = jnp.tile(w0, (NPOS, 1)) * (1.0 / NPOS)                   # (200, 128)

    partials = pl.pallas_call(
        aux_kernel,
        out_shape=jax.ShapeDtypeStruct((NJ, n, NUM_CLASSES_PAD), jnp.float32),
        grid=(NJ, KCH),
        in_specs=[
            pl.BlockSpec((NPOS * n, PATCH), lambda j, k: (0, 0)),        # slab (resident)
            pl.BlockSpec((PATCH, C0), lambda j, k: (0, 0)),              # pool-folded conv0 weight
            pl.BlockSpec((1, C0), lambda j, k: (0, 0)),                  # bn0 gamma
            pl.BlockSpec((1, C0), lambda j, k: (0, 0)),                  # bn0 beta
            pl.BlockSpec((KBLK, TN), lambda j, k: (k, j)),               # w1 (bf16), K x Cout tiled
            pl.BlockSpec((1, TN), lambda j, k: (0, j)),                  # bn1 gamma tile
            pl.BlockSpec((1, TN), lambda j, k: (0, j)),                  # bn1 beta tile
            pl.BlockSpec((TN, NUM_CLASSES_PAD), lambda j, k: (j, 0)),    # fc weight tile (bf16)
        ],
        out_specs=pl.BlockSpec((None, n, NUM_CLASSES_PAD), lambda j, k: (j, 0, 0)),
        scratch_shapes=[pltpu.VMEM((KCH, n, KBLK), jnp.float32),         # ReLU(BN(conv0)) im2col
                        pltpu.VMEM((n, TN), jnp.float32)],               # conv1 accumulator
        compiler_params=pltpu.CompilerParams(
            dimension_semantics=("parallel", "arbitrary"),
            vmem_limit_bytes=16 << 20),
    )(slab, w0big, g0, b0, w1_bf, g1, b1, wfc_bf)

    out = jnp.sum(partials, axis=0) + bfc                            # tiny cross-tile fc sum + bias
    return out[:, :NUM_CLASSES]


# ---------------------------------------------------------------- pure-JAX reference
def reference_forward(x_nchw, params):
    w0, g0, b0, w1_bf, g1, b1, wfc_bf, bfc = params
    x = jnp.transpose(x_nchw, (0, 2, 3, 1)).astype(jnp.float32)
    pooled = lax.reduce_window(x, 0.0, lax.add, (1, 5, 5, 1), (1, 3, 3, 1), "VALID") / 25.0
    z0 = jnp.einsum("nhwc,co->nhwo", pooled, w0, precision=lax.Precision.HIGHEST)
    m0 = jnp.mean(z0, axis=(0, 1, 2))
    v0 = jnp.var(z0, axis=(0, 1, 2))
    h0 = jax.nn.relu((z0 - m0) / jnp.sqrt(v0 + EPS) * g0[0] + b0[0])
    w1_hwio = w1_bf.astype(jnp.float32).reshape(5, 5, C0, C1)
    z1 = lax.conv_general_dilated(h0, w1_hwio, (1, 1), "VALID",
                                  dimension_numbers=("NHWC", "HWIO", "NHWC"),
                                  precision=lax.Precision.HIGHEST)
    m1 = jnp.mean(z1, axis=(0, 1, 2))
    v1 = jnp.var(z1, axis=(0, 1, 2))
    h1 = jax.nn.relu((z1 - m1) / jnp.sqrt(v1 + EPS) * g1[0] + b1[0]).reshape(x.shape[0], C1)
    wfc = wfc_bf.astype(jnp.float32)
    return (jnp.dot(h1, wfc, precision=lax.Precision.HIGHEST) + bfc)[:, :NUM_CLASSES]


# ---------------------------------------------------------------- deterministic params
def make_params():
    key = jax.random.PRNGKey(0)
    k = jax.random.split(key, 8)
    w0 = (0.1 * jax.random.normal(k[0], (C_IN, C0))).astype(jnp.float32)           # conv0 1x1
    g0 = (1.0 + 0.1 * jax.random.normal(k[1], (1, C0))).astype(jnp.float32)        # bn0 gamma
    b0 = (0.1 * jax.random.normal(k[2], (1, C0))).astype(jnp.float32)              # bn0 beta
    w1 = (0.01 * jax.random.normal(k[3], (NPOS * C0, C1))).astype(jnp.float32)     # conv1 5x5 (HWIO flat), stddev=0.01
    g1 = (1.0 + 0.1 * jax.random.normal(k[4], (1, C1))).astype(jnp.float32)        # bn1 gamma
    b1 = (0.1 * jax.random.normal(k[5], (1, C1))).astype(jnp.float32)              # bn1 beta
    fc_w = (0.001 * jax.random.normal(k[6], (NUM_CLASSES, C1))).astype(jnp.float32)  # fc, stddev=0.001
    fc_b = jnp.zeros((NUM_CLASSES,), jnp.float32)
    wfc = jnp.zeros((C1, NUM_CLASSES_PAD), jnp.float32).at[:, :NUM_CLASSES].set(fc_w.T)
    bfc = jnp.zeros((1, NUM_CLASSES_PAD), jnp.float32).at[:, :NUM_CLASSES].set(fc_b)
    # store the two big matmul weights in bf16 (the kernel is HBM-DMA bound; f32 accum in-kernel).
    w1_bf = w1.astype(jnp.bfloat16)
    wfc_bf = wfc.astype(jnp.bfloat16)
    return (w0, g0, b0, w1_bf, g1, b1, wfc_bf, bfc), k[7]


if __name__ == "__main__":
    params, kx = make_params()
    x = jax.random.normal(kx, (N, C_IN, H, W), jnp.float32)          # PyTorch-style NCHW input

    fwd = jax.jit(inception_aux_forward)
    out = jax.block_until_ready(fwd(x, params))
    assert out.shape == (N, NUM_CLASSES)

    ref = jax.block_until_ready(reference_forward(x, params))
    np.testing.assert_allclose(np.asarray(out), np.asarray(ref), rtol=5e-3, atol=5e-4)

    print("KERNEL_OK")
</pallas_src>

<mosaic_0001>
module attributes {stable_mosaic.version = 11 : i64} {
  func.func @aux_kernel(%arg0: i32, %arg1: i32, %arg2: memref<50x200xf32, #tpu.memory_space<vmem>>, %arg3: memref<200x128xf32, #tpu.memory_space<vmem>>, %arg4: memref<1x128xf32, #tpu.memory_space<vmem>>, %arg5: memref<1x128xf32, #tpu.memory_space<vmem>>, %arg6: memref<640x384xbf16, #tpu.memory_space<vmem>>, %arg7: memref<1x384xf32, #tpu.memory_space<vmem>>, %arg8: memref<1x384xf32, #tpu.memory_space<vmem>>, %arg9: memref<384x128xbf16, #tpu.memory_space<vmem>>, %arg10: memref<1x2x128xf32, #tpu.memory_space<vmem>>, %arg11: memref<5x2x640xf32, #tpu.memory_space<vmem>>, %arg12: memref<2x384xf32, #tpu.memory_space<vmem>>) attributes {dimension_semantics = [#tpu.dimension_semantics<parallel>, #tpu.dimension_semantics<arbitrary>], iteration_bounds = array<i64: 2, 5>, scalar_prefetch = 0 : i64, scratch_operands = 2 : i64, tpu.core_type = #tpu.core_type<tc>, window_params = [{pipeline_mode = #tpu.pipeline_mode<synchronous>, transform_indices = @transform_0, window_bounds = array<i64: 50, 200>}, {pipeline_mode = #tpu.pipeline_mode<synchronous>, transform_indices = @transform_1, window_bounds = array<i64: 200, 128>}, {pipeline_mode = #tpu.pipeline_mode<synchronous>, transform_indices = @transform_2, window_bounds = array<i64: 1, 128>}, {pipeline_mode = #tpu.pipeline_mode<synchronous>, transform_indices = @transform_3, window_bounds = array<i64: 1, 128>}, {transform_indices = @transform_4, window_bounds = array<i64: 640, 384>}, {transform_indices = @transform_5, window_bounds = array<i64: 1, 384>}, {transform_indices = @transform_6, window_bounds = array<i64: 1, 384>}, {transform_indices = @transform_7, window_bounds = array<i64: 384, 128>}, {transform_indices = @transform_8, window_bounds = array<i64: 1, 2, 128>}]} {
    %c0_i32 = arith.constant 0 : i32
    %0 = arith.cmpi eq, %arg1, %c0_i32 : i32
    %1 = arith.extui %0 : i1 to i32
    %c0_i32_0 = arith.constant 0 : i32
    %2 = arith.cmpi ne, %1, %c0_i32_0 : i32
    scf.if %2 {
      %c0_9 = arith.constant 0 : index
      %c0_10 = arith.constant 0 : index
      %15 = vector.load %arg2[%c0_9, %c0_10] : memref<50x200xf32, #tpu.memory_space<vmem>>, vector<50x200xf32>
      %c0_11 = arith.constant 0 : index
      %c0_12 = arith.constant 0 : index
      %16 = vector.load %arg3[%c0_11, %c0_12] : memref<200x128xf32, #tpu.memory_space<vmem>>, vector<200x128xf32>
      %cst_13 = arith.constant dense<0.000000e+00> : vector<50x128xf32>
      %17 = tpu.matmul %15, %16, %cst_13 {dimension_numbers = #tpu.dot_dimension_numbers<[1], [0], [0], [1], [0, 0, 1, 1], [], []>} : vector<50x200xf32>, vector<200x128xf32>, vector<50x128xf32> -> vector<50x128xf32>
      %cst_14 = arith.constant dense<0.000000e+00> : vector<128xf32>
      %18 = vector.multi_reduction <add>, %17, %cst_14 [0] : vector<50x128xf32> to vector<128xf32>
      %19 = vector.shape_cast %18 : vector<128xf32> to vector<1x128xf32>
      %cst_15 = arith.constant 5.000000e+01 : f32
      %20 = vector.broadcast %cst_15 : f32 to vector<1x128xf32>
      %21 = arith.divf %19, %20 : vector<1x128xf32>
      %22 = vector.broadcast %21 : vector<1x128xf32> to vector<50x128xf32>
      %23 = arith.subf %17, %22 : vector<50x128xf32>
      %24 = arith.mulf %23, %23 : vector<50x128xf32>
      %cst_16 = arith.constant dense<0.000000e+00> : vector<128xf32>
      %25 = vector.multi_reduction <add>, %24, %cst_16 [0] : vector<50x128xf32> to vector<128xf32>
      %26 = vector.shape_cast %25 : vector<128xf32> to vector<1x128xf32>
      %cst_17 = arith.constant 5.000000e+01 : f32
      %27 = vector.broadcast %cst_17 : f32 to vector<1x128xf32>
      %28 = arith.divf %26, %27 : vector<1x128xf32>
      %c0_18 = arith.constant 0 : index
      %c0_19 = arith.constant 0 : index
      %29 = vector.load %arg4[%c0_18, %c0_19] : memref<1x128xf32, #tpu.memory_space<vmem>>, vector<1x128xf32>
      %cst_20 = arith.constant 1.000000e-03 : f32
      %30 = vector.broadcast %cst_20 : f32 to vector<1x128xf32>
      %31 = arith.addf %28, %30 : vector<1x128xf32>
      %32 = math.rsqrt %31 : vector<1x128xf32>
      %33 = arith.mulf %29, %32 : vector<1x128xf32>
      %34 = vector.broadcast %33 : vector<1x128xf32> to vector<50x128xf32>
      %35 = arith.mulf %23, %34 : vector<50x128xf32>
      %c0_21 = arith.constant 0 : index
      %c0_22 = arith.constant 0 : index
      %36 = vector.load %arg5[%c0_21, %c0_22] : memref<1x128xf32, #tpu.memory_space<vmem>>, vector<1x128xf32>
      %37 = vector.broadcast %36 : vector<1x128xf32> to vector<50x128xf32>
      %38 = arith.addf %35, %37 : vector<50x128xf32>
      %cst_23 = arith.constant 0.000000e+00 : f32
      %39 = vector.broadcast %cst_23 : f32 to vector<50x128xf32>
      %40 = arith.maximumf %38, %39 : vector<50x128xf32>
      %41 = vector.extract_strided_slice %40 {offsets = [0, 0], sizes = [2, 128], strides = [1, 1]} : vector<50x128xf32> to vector<2x128xf32>
      %c0_24 = arith.constant 0 : index
      %c0_25 = arith.constant 0 : index
      %c0_26 = arith.constant 0 : index
      %42 = vector.load %arg11[%c0_24, %c0_25, %c0_26] : memref<5x2x640xf32, #tpu.memory_space<vmem>>, vector<1x2x128xf32>
      %43 = vector.shape_cast %42 : vector<1x2x128xf32> to vector<2x128xf32>
      %44 = vector.shape_cast %41 : vector<2x128xf32> to vector<1x2x128xf32>
      tpu.vector_store %arg11[%c0_24, %c0_25, %c0_26], %44 {strides = array<i32>} : memref<5x2x640xf32, #tpu.memory_space<vmem>>, vector<1x2x128xf32>,
      %45 = vector.extract_strided_slice %40 {offsets = [2, 0], sizes = [2, 128], strides = [1, 1]} : vector<50x128xf32> to vector<2x128xf32>
      %c0_27 = arith.constant 0 : index
      %c0_28 = arith.constant 0 : index
      %c128 = arith.constant 128 : index
      %46 = vector.load %arg11[%c0_27, %c0_28, %c128] : memref<5x2x640xf32, #tpu.memory_space<vmem>>, vector<1x2x128xf32>
      %47 = vector.shape_cast %46 : vector<1x2x128xf32> to vector<2x128xf32>
      %48 = vector.shape_cast %45 : vector<2x128xf32> to vector<1x2x128xf32>
      tpu.vector_store %arg11[%c0_27, %c0_28, %c128], %48 {strides = array<i32>} : memref<5x2x640xf32, #tpu.memory_space<vmem>>, vector<1x2x128xf32>,
      %49 = vector.extract_strided_slice %40 {offsets = [4, 0], sizes = [2, 128], strides = [1, 1]} : vector<50x128xf32> to vector<2x128xf32>
      %c0_29 = arith.constant 0 : index
      %c0_30 = arith.constant 0 : index
      %c256 = arith.constant 256 : index
      %50 = vector.load %arg11[%c0_29, %c0_30, %c256] : memref<5x2x640xf32, #tpu.memory_space<vmem>>, vector<1x2x128xf32>
      %51 = vector.shape_cast %50 : vector<1x2x128xf32> to vector<2x128xf32>
      %52 = vector.shape_cast %49 : vector<2x128xf32> to vector<1x2x128xf32>
      tpu.vector_store %arg11[%c0_29, %c0_30, %c256], %52 {strides = array<i32>} : memref<5x2x640xf32, #tpu.memory_space<vmem>>, vector<1x2x128xf32>,
      %53 = vector.extract_strided_slice %40 {offsets = [6, 0], sizes = [2, 128], strides = [1, 1]} : vector<50x128xf32> to vector<2x128xf32>
      %c0_31 = arith.constant 0 : index
      %c0_32 = arith.constant 0 : index
      %c384 = arith.constant 384 : index
      %54 = vector.load %arg11[%c0_31, %c0_32, %c384] : memref<5x2x640xf32, #tpu.memory_space<vmem>>, vector<1x2x128xf32>
      %55 = vector.shape_cast %54 : vector<1x2x128xf32> to vector<2x128xf32>
      %56 = vector.shape_cast %53 : vector<2x128xf32> to vector<1x2x128xf32>
      tpu.vector_store %arg11[%c0_31, %c0_32, %c384], %56 {strides = array<i32>} : memref<5x2x640xf32, #tpu.memory_space<vmem>>, vector<1x2x128xf32>,
      %57 = vector.extract_strided_slice %40 {offsets = [8, 0], sizes = [2, 128], strides = [1, 1]} : vector<50x128xf32> to vector<2x128xf32>
      %c0_33 = arith.constant 0 : index
      %c0_34 = arith.constant 0 : index
      %c512 = arith.constant 512 : index
      %58 = vector.load %arg11[%c0_33, %c0_34, %c512] : memref<5x2x640xf32, #tpu.memory_space<vmem>>, vector<1x2x128xf32>
      %59 = vector.shape_cast %58 : vector<1x2x128xf32> to vector<2x128xf32>
      %60 = vector.shape_cast %57 : vector<2x128xf32> to vector<1x2x128xf32>
      tpu.vector_store %arg11[%c0_33, %c0_34, %c512], %60 {strides = array<i32>} : memref<5x2x640xf32, #tpu.memory_space<vmem>>, vector<1x2x128xf32>,
      %61 = vector.extract_strided_slice %40 {offsets = [10, 0], sizes = [2, 128], strides = [1, 1]} : vector<50x128xf32> to vector<2x128xf32>
      %c1 = arith.constant 1 : index
      %c0_35 = arith.constant 0 : index
      %c0_36 = arith.constant 0 : index
      %62 = vector.load %arg11[%c1, %c0_35, %c0_36] : memref<5x2x640xf32, #tpu.memory_space<vmem>>, vector<1x2x128xf32>
      %63 = vector.shape_cast %62 : vector<1x2x128xf32> to vector<2x128xf32>
      %64 = vector.shape_cast %61 : vector<2x128xf32> to vector<1x2x128xf32>
      tpu.vector_store %arg11[%c1, %c0_35, %c0_36], %64 {strides = array<i32>} : memref<5x2x640xf32, #tpu.memory_space<vmem>>, vector<1x2x128xf32>,
      %65 = vector.extract_strided_slice %40 {offsets = [12, 0], sizes = [2, 128], strides = [1, 1]} : vector<50x128xf32> to vector<2x128xf32>
      %c1_37 = arith.constant 1 : index
      %c0_38 = arith.constant 0 : index
      %c128_39 = arith.constant 128 : index
      %66 = vector.load %arg11[%c1_37, %c0_38, %c128_39] : memref<5x2x640xf32, #tpu.memory_space<vmem>>, vector<1x2x128xf32>
      %67 = vector.shape_cast %66 : vector<1x2x128xf32> to vector<2x128xf32>
      %68 = vector.shape_cast %65 : vector<2x128xf32> to vector<1x2x128xf32>
      tpu.vector_store %arg11[%c1_37, %c0_38, %c128_39], %68 {strides = array<i32>} : memref<5x2x640xf32, #tpu.memory_space<vmem>>, vector<1x2x128xf32>,
      %69 = vector.extract_strided_slice %40 {offsets = [14, 0], sizes = [2, 128], strides = [1, 1]} : vector<50x128xf32> to vector<2x128xf32>
      %c1_40 = arith.constant 1 : index
      %c0_41 = arith.constant 0 : index
      %c256_42 = arith.constant 256 : index
      %70 = vector.load %arg11[%c1_40, %c0_41, %c256_42] : memref<5x2x640xf32, #tpu.memory_space<vmem>>, vector<1x2x128xf32>
      %71 = vector.shape_cast %70 : vector<1x2x128xf32> to vector<2x128xf32>
      %72 = vector.shape_cast %69 : vector<2x128xf32> to vector<1x2x128xf32>
      tpu.vector_store %arg11[%c1_40, %c0_41, %c256_42], %72 {strides = array<i32>} : memref<5x2x640xf32, #tpu.memory_space<vmem>>, vector<1x2x128xf32>,
      %73 = vector.extract_strided_slice %40 {offsets = [16, 0], sizes = [2, 128], strides = [1, 1]} : vector<50x128xf32> to vector<2x128xf32>
      %c1_43 = arith.constant 1 : index
      %c0_44 = arith.constant 0 : index
      %c384_45 = arith.constant 384 : index
      %74 = vector.load %arg11[%c1_43, %c0_44, %c384_45] : memref<5x2x640xf32, #tpu.memory_space<vmem>>, vector<1x2x128xf32>
      %75 = vector.shape_cast %74 : vector<1x2x128xf32> to vector<2x128xf32>
      %76 = vector.shape_cast %73 : vector<2x128xf32> to vector<1x2x128xf32>
      tpu.vector_store %arg11[%c1_43, %c0_44, %c384_45], %76 {strides = array<i32>} : memref<5x2x640xf32, #tpu.memory_space<vmem>>, vector<1x2x128xf32>,
      %77 = vector.extract_strided_slice %40 {offsets = [18, 0], sizes = [2, 128], strides = [1, 1]} : vector<50x128xf32> to vector<2x128xf32>
      %c1_46 = arith.constant 1 : index
      %c0_47 = arith.constant 0 : index
      %c512_48 = arith.constant 512 : index
      %78 = vector.load %arg11[%c1_46, %c0_47, %c512_48] : memref<5x2x640xf32, #tpu.memory_space<vmem>>, vector<1x2x128xf32>
      %79 = vector.shape_cast %78 : vector<1x2x128xf32> to vector<2x128xf32>
      %80 = vector.shape_cast %77 : vector<2x128xf32> to vector<1x2x128xf32>
      tpu.vector_store %arg11[%c1_46, %c0_47, %c512_48], %80 {strides = array<i32>} : memref<5x2x640xf32, #tpu.memory_space<vmem>>, vector<1x2x128xf32>,
      %81 = vector.extract_strided_slice %40 {offsets = [20, 0], sizes = [2, 128], strides = [1, 1]} : vector<50x128xf32> to vector<2x128xf32>
      %c2 = arith.constant 2 : index
      %c0_49 = arith.constant 0 : index
      %c0_50 = arith.constant 0 : index
      %82 = vector.load %arg11[%c2, %c0_49, %c0_50] : memref<5x2x640xf32, #tpu.memory_space<vmem>>, vector<1x2x128xf32>
      %83 = vector.shape_cast %82 : vector<1x2x128xf32> to vector<2x128xf32>
      %84 = vector.shape_cast %81 : vector<2x128xf32> to vector<1x2x128xf32>
      tpu.vector_store %arg11[%c2, %c0_49, %c0_50], %84 {strides = array<i32>} : memref<5x2x640xf32, #tpu.memory_space<vmem>>, vector<1x2x128xf32>,
      %85 = vector.extract_strided_slice %40 {offsets = [22, 0], sizes = [2, 128], strides = [1, 1]} : vector<50x128xf32> to vector<2x128xf32>
      %c2_51 = arith.constant 2 : index
      %c0_52 = arith.constant 0 : index
      %c128_53 = arith.constant 128 : index
      %86 = vector.load %arg11[%c2_51, %c0_52, %c128_53] : memref<5x2x640xf32, #tpu.memory_space<vmem>>, vector<1x2x128xf32>
      %87 = vector.shape_cast %86 : vector<1x2x128xf32> to vector<2x128xf32>
      %88 = vector.shape_cast %85 : vector<2x128xf32> to vector<1x2x128xf32>
      tpu.vector_store %arg11[%c2_51, %c0_52, %c128_53], %88 {strides = array<i32>} : memref<5x2x640xf32, #tpu.memory_space<vmem>>, vector<1x2x128xf32>,
      %89 = vector.extract_strided_slice %40 {offsets = [24, 0], sizes = [2, 128], strides = [1, 1]} : vector<50x128xf32> to vector<2x128xf32>
      %c2_54 = arith.constant 2 : index
      %c0_55 = arith.constant 0 : index
      %c256_56 = arith.constant 256 : index
      %90 = vector.load %arg11[%c2_54, %c0_55, %c256_56] : memref<5x2x640xf32, #tpu.memory_space<vmem>>, vector<1x2x128xf32>
      %91 = vector.shape_cast %90 : vector<1x2x128xf32> to vector<2x128xf32>
      %92 = vector.shape_cast %89 : vector<2x128xf32> to vector<1x2x128xf32>
      tpu.vector_store %arg11[%c2_54, %c0_55, %c256_56], %92 {strides = array<i32>} : memref<5x2x640xf32, #tpu.memory_space<vmem>>, vector<1x2x128xf32>,
      %93 = vector.extract_strided_slice %40 {offsets = [26, 0], sizes = [2, 128], strides = [1, 1]} : vector<50x128xf32> to vector<2x128xf32>
      %c2_57 = arith.constant 2 : index
      %c0_58 = arith.constant 0 : index
      %c384_59 = arith.constant 384 : index
      %94 = vector.load %arg11[%c2_57, %c0_58, %c384_59] : memref<5x2x640xf32, #tpu.memory_space<vmem>>, vector<1x2x128xf32>
      %95 = vector.shape_cast %94 : vector<1x2x128xf32> to vector<2x128xf32>
      %96 = vector.shape_cast %93 : vector<2x128xf32> to vector<1x2x128xf32>
      tpu.vector_store %arg11[%c2_57, %c0_58, %c384_59], %96 {strides = array<i32>} : memref<5x2x640xf32, #tpu.memory_space<vmem>>, vector<1x2x128xf32>,
      %97 = vector.extract_strided_slice %40 {offsets = [28, 0], sizes = [2, 128], strides = [1, 1]} : vector<50x128xf32> to vector<2x128xf32>
      %c2_60 = arith.constant 2 : index
      %c0_61 = arith.constant 0 : index
      %c512_62 = arith.constant 512 : index
      %98 = vector.load %arg11[%c2_60, %c0_61, %c512_62] : memref<5x2x640xf32, #tpu.memory_space<vmem>>, vector<1x2x128xf32>
      %99 = vector.shape_cast %98 : vector<1x2x128xf32> to vector<2x128xf32>
      %100 = vector.shape_cast %97 : vector<2x128xf32> to vector<1x2x128xf32>
      tpu.vector_store %arg11[%c2_60, %c0_61, %c512_62], %100 {strides = array<i32>} : memref<5x2x640xf32, #tpu.memory_space<vmem>>, vector<1x2x128xf32>,
      %101 = vector.extract_strided_slice %40 {offsets = [30, 0], sizes = [2, 128], strides = [1, 1]} : vector<50x128xf32> to vector<2x128xf32>
      %c3 = arith.constant 3 : index
      %c0_63 = arith.constant 0 : index
      %c0_64 = arith.constant 0 : index
      %102 = vector.load %arg11[%c3, %c0_63, %c0_64] : memref<5x2x640xf32, #tpu.memory_space<vmem>>, vector<1x2x128xf32>
      %103 = vector.shape_cast %102 : vector<1x2x128xf32> to vector<2x128xf32>
      %104 = vector.shape_cast %101 : vector<2x128xf32> to vector<1x2x128xf32>
      tpu.vector_store %arg11[%c3, %c0_63, %c0_64], %104 {strides = array<i32>} : memref<5x2x640xf32, #tpu.memory_space<vmem>>, vector<1x2x128xf32>,
      %105 = vector.extract_strided_slice %40 {offsets = [32, 0], sizes = [2, 128], strides = [1, 1]} : vector<50x128xf32> to vector<2x128xf32>
      %c3_65 = arith.constant 3 : index
      %c0_66 = arith.constant 0 : index
      %c128_67 = arith.constant 128 : index
      %106 = vector.load %arg11[%c3_65, %c0_66, %c128_67] : memref<5x2x640xf32, #tpu.memory_space<vmem>>, vector<1x2x128xf32>
      %107 = vector.shape_cast %106 : vector<1x2x128xf32> to vector<2x128xf32>
      %108 = vector.shape_cast %105 : vector<2x128xf32> to vector<1x2x128xf32>
      tpu.vector_store %arg11[%c3_65, %c0_66, %c128_67], %108 {strides = array<i32>} : memref<5x2x640xf32, #tpu.memory_space<vmem>>, vector<1x2x128xf32>,
      %109 = vector.extract_strided_slice %40 {offsets = [34, 0], sizes = [2, 128], strides = [1, 1]} : vector<50x128xf32> to vector<2x128xf32>
      %c3_68 = arith.constant 3 : index
      %c0_69 = arith.constant 0 : index
      %c256_70 = arith.constant 256 : index
      %110 = vector.load %arg11[%c3_68, %c0_69, %c256_70] : memref<5x2x640xf32, #tpu.memory_space<vmem>>, vector<1x2x128xf32>
      %111 = vector.shape_cast %110 : vector<1x2x128xf32> to vector<2x128xf32>
      %112 = vector.shape_cast %109 : vector<2x128xf32> to vector<1x2x128xf32>
      tpu.vector_store %arg11[%c3_68, %c0_69, %c256_70], %112 {strides = array<i32>} : memref<5x2x640xf32, #tpu.memory_space<vmem>>, vector<1x2x128xf32>,
      %113 = vector.extract_strided_slice %40 {offsets = [36, 0], sizes = [2, 128], strides = [1, 1]} : vector<50x128xf32> to vector<2x128xf32>
      %c3_71 = arith.constant 3 : index
      %c0_72 = arith.constant 0 : index
      %c384_73 = arith.constant 384 : index
      %114 = vector.load %arg11[%c3_71, %c0_72, %c384_73] : memref<5x2x640xf32, #tpu.memory_space<vmem>>, vector<1x2x128xf32>
      %115 = vector.shape_cast %114 : vector<1x2x128xf32> to vector<2x128xf32>
      %116 = vector.shape_cast %113 : vector<2x128xf32> to vector<1x2x128xf32>
      tpu.vector_store %arg11[%c3_71, %c0_72, %c384_73], %116 {strides = array<i32>} : memref<5x2x640xf32, #tpu.memory_space<vmem>>, vector<1x2x128xf32>,
      %117 = vector.extract_strided_slice %40 {offsets = [38, 0], sizes = [2, 128], strides = [1, 1]} : vector<50x128xf32> to vector<2x128xf32>
      %c3_74 = arith.constant 3 : index
      %c0_75 = arith.constant 0 : index
      %c512_76 = arith.constant 512 : index
      %118 = vector.load %arg11[%c3_74, %c0_75, %c512_76] : memref<5x2x640xf32, #tpu.memory_space<vmem>>, vector<1x2x128xf32>
      %119 = vector.shape_cast %118 : vector<1x2x128xf32> to vector<2x128xf32>
      %120 = vector.shape_cast %117 : vector<2x128xf32> to vector<1x2x128xf32>
      tpu.vector_store %arg11[%c3_74, %c0_75, %c512_76], %120 {strides = array<i32>} : memref<5x2x640xf32, #tpu.memory_space<vmem>>, vector<1x2x128xf32>,
      %121 = vector.extract_strided_slice %40 {offsets = [40, 0], sizes = [2, 128], strides = [1, 1]} : vector<50x128xf32> to vector<2x128xf32>
      %c4 = arith.constant 4 : index
      %c0_77 = arith.constant 0 : index
      %c0_78 = arith.constant 0 : index
      %122 = vector.load %arg11[%c4, %c0_77, %c0_78] : memref<5x2x640xf32, #tpu.memory_space<vmem>>, vector<1x2x128xf32>
      %123 = vector.shape_cast %122 : vector<1x2x128xf32> to vector<2x128xf32>
      %124 = vector.shape_cast %121 : vector<2x128xf32> to vector<1x2x128xf32>
      tpu.vector_store %arg11[%c4, %c0_77, %c0_78], %124 {strides = array<i32>} : memref<5x2x640xf32, #tpu.memory_space<vmem>>, vector<1x2x128xf32>,
      %125 = vector.extract_strided_slice %40 {offsets = [42, 0], sizes = [2, 128], strides = [1, 1]} : vector<50x128xf32> to vector<2x128xf32>
      %c4_79 = arith.constant 4 : index
      %c0_80 = arith.constant 0 : index
      %c128_81 = arith.constant 128 : index
      %126 = vector.load %arg11[%c4_79, %c0_80, %c128_81] : memref<5x2x640xf32, #tpu.memory_space<vmem>>, vector<1x2x128xf32>
      %127 = vector.shape_cast %126 : vector<1x2x128xf32> to vector<2x128xf32>
      %128 = vector.shape_cast %125 : vector<2x128xf32> to vector<1x2x128xf32>
      tpu.vector_store %arg11[%c4_79, %c0_80, %c128_81], %128 {strides = array<i32>} : memref<5x2x640xf32, #tpu.memory_space<vmem>>, vector<1x2x128xf32>,
      %129 = vector.extract_strided_slice %40 {offsets = [44, 0], sizes = [2, 128], strides = [1, 1]} : vector<50x128xf32> to vector<2x128xf32>
      %c4_82 = arith.constant 4 : index
      %c0_83 = arith.constant 0 : index
      %c256_84 = arith.constant 256 : index
      %130 = vector.load %arg11[%c4_82, %c0_83, %c256_84] : memref<5x2x640xf32, #tpu.memory_space<vmem>>, vector<1x2x128xf32>
      %131 = vector.shape_cast %130 : vector<1x2x128xf32> to vector<2x128xf32>
      %132 = vector.shape_cast %129 : vector<2x128xf32> to vector<1x2x128xf32>
      tpu.vector_store %arg11[%c4_82, %c0_83, %c256_84], %132 {strides = array<i32>} : memref<5x2x640xf32, #tpu.memory_space<vmem>>, vector<1x2x128xf32>,
      %133 = vector.extract_strided_slice %40 {offsets = [46, 0], sizes = [2, 128], strides = [1, 1]} : vector<50x128xf32> to vector<2x128xf32>
      %c4_85 = arith.constant 4 : index
      %c0_86 = arith.constant 0 : index
      %c384_87 = arith.constant 384 : index
      %134 = vector.load %arg11[%c4_85, %c0_86, %c384_87] : memref<5x2x640xf32, #tpu.memory_space<vmem>>, vector<1x2x128xf32>
      %135 = vector.shape_cast %134 : vector<1x2x128xf32> to vector<2x128xf32>
      %136 = vector.shape_cast %133 : vector<2x128xf32> to vector<1x2x128xf32>
      tpu.vector_store %arg11[%c4_85, %c0_86, %c384_87], %136 {strides = array<i32>} : memref<5x2x640xf32, #tpu.memory_space<vmem>>, vector<1x2x128xf32>,
      %137 = vector.extract_strided_slice %40 {offsets = [48, 0], sizes = [2, 128], strides = [1, 1]} : vector<50x128xf32> to vector<2x128xf32>
      %c4_88 = arith.constant 4 : index
      %c0_89 = arith.constant 0 : index
      %c512_90 = arith.constant 512 : index
      %138 = vector.load %arg11[%c4_88, %c0_89, %c512_90] : memref<5x2x640xf32, #tpu.memory_space<vmem>>, vector<1x2x128xf32>
      %139 = vector.shape_cast %138 : vector<1x2x128xf32> to vector<2x128xf32>
      %140 = vector.shape_cast %137 : vector<2x128xf32> to vector<1x2x128xf32>
      tpu.vector_store %arg11[%c4_88, %c0_89, %c512_90], %140 {strides = array<i32>} : memref<5x2x640xf32, #tpu.memory_space<vmem>>, vector<1x2x128xf32>,
      %cst_91 = arith.constant 0.000000e+00 : f32
      %141 = vector.broadcast %cst_91 : f32 to vector<2x384xf32>
      %c0_92 = arith.constant 0 : index
      %c0_93 = arith.constant 0 : index
      %142 = vector.load %arg12[%c0_92, %c0_93] : memref<2x384xf32, #tpu.memory_space<vmem>>, vector<2x384xf32>
      tpu.vector_store %arg12[%c0_92, %c0_93], %141 {strides = array<i32>} : memref<2x384xf32, #tpu.memory_space<vmem>>, vector<2x384xf32>,
    } else {
    }
    %c0 = arith.constant 0 : index
    %c0_1 = arith.constant 0 : index
    %3 = vector.load %arg12[%c0, %c0_1] : memref<2x384xf32, #tpu.memory_space<vmem>>, vector<2x384xf32>
    %4 = arith.index_cast %arg1 : i32 to index
    %c0_2 = arith.constant 0 : index
    %c0_3 = arith.constant 0 : index
    %5 = vector.load %arg11[%4, %c0_2, %c0_3] : memref<5x2x640xf32, #tpu.memory_space<vmem>>, vector<1x2x640xf32>
    %6 = vector.shape_cast %5 : vector<1x2x640xf32> to vector<2x640xf32>
    %c0_4 = arith.constant 0 : index
    %c0_5 = arith.constant 0 : index
    %7 = vector.load %arg6[%c0_4, %c0_5] : memref<640x384xbf16, #tpu.memory_space<vmem>>, vector<640x384xbf16>
    %8 = arith.extf %7 : vector<640x384xbf16> to vector<640x384xf32>
    %cst = arith.constant dense<0.000000e+00> : vector<2x384xf32>
    %9 = tpu.matmul %6, %8, %cst {dimension_numbers = #tpu.dot_dimension_numbers<[1], [0], [0], [1], [0, 0, 1, 1], [], []>} : vector<2x640xf32>, vector<640x384xf32>, vector<2x384xf32> -> vector<2x384xf32>
    %10 = arith.addf %3, %9 : vector<2x384xf32>
    %c0_6 = arith.constant 0 : index
    %c0_7 = arith.constant 0 : index
    %11 = vector.load %arg12[%c0_6, %c0_7] : memref<2x384xf32, #tpu.memory_space<vmem>>, vector<2x384xf32>
    tpu.vector_store %arg12[%c0_6, %c0_7], %10 {strides = array<i32>} : memref<2x384xf32, #tpu.memory_space<vmem>>, vector<2x384xf32>,
    %c4_i32 = arith.constant 4 : i32
    %12 = arith.cmpi eq, %arg1, %c4_i32 : i32
    %13 = arith.extui %12 : i1 to i32
    %c0_i32_8 = arith.constant 0 : i32
    %14 = arith.cmpi ne, %13, %c0_i32_8 : i32
    scf.if %14 {
      %c0_9 = arith.constant 0 : index
      %c0_10 = arith.constant 0 : index
      %15 = vector.load %arg12[%c0_9, %c0_10] : memref<2x384xf32, #tpu.memory_space<vmem>>, vector<2x384xf32>
      %cst_11 = arith.constant dense<0.000000e+00> : vector<384xf32>
      %16 = vector.multi_reduction <add>, %15, %cst_11 [0] : vector<2x384xf32> to vector<384xf32>
      %17 = vector.shape_cast %16 : vector<384xf32> to vector<1x384xf32>
      %cst_12 = arith.constant 2.000000e+00 : f32
      %18 = vector.broadcast %cst_12 : f32 to vector<1x384xf32>
      %19 = arith.divf %17, %18 : vector<1x384xf32>
      %20 = vector.broadcast %19 : vector<1x384xf32> to vector<2x384xf32>
      %21 = arith.subf %15, %20 : vector<2x384xf32>
      %22 = arith.mulf %21, %21 : vector<2x384xf32>
      %cst_13 = arith.constant dense<0.000000e+00> : vector<384xf32>
      %23 = vector.multi_reduction <add>, %22, %cst_13 [0] : vector<2x384xf32> to vector<384xf32>
      %24 = vector.shape_cast %23 : vector<384xf32> to vector<1x384xf32>
      %cst_14 = arith.constant 2.000000e+00 : f32
      %25 = vector.broadcast %cst_14 : f32 to vector<1x384xf32>
      %26 = arith.divf %24, %25 : vector<1x384xf32>
      %c0_15 = arith.constant 0 : index
      %c0_16 = arith.constant 0 : index
      %27 = vector.load %arg7[%c0_15, %c0_16] : memref<1x384xf32, #tpu.memory_space<vmem>>, vector<1x384xf32>
      %cst_17 = arith.constant 1.000000e-03 : f32
      %28 = vector.broadcast %cst_17 : f32 to vector<1x384xf32>
      %29 = arith.addf %26, %28 : vector<1x384xf32>
      %30 = math.rsqrt %29 : vector<1x384xf32>
      %31 = arith.mulf %27, %30 : vector<1x384xf32>
      %32 = vector.broadcast %31 : vector<1x384xf32> to vector<2x384xf32>
      %33 = arith.mulf %21, %32 : vector<2x384xf32>
      %c0_18 = arith.constant 0 : index
      %c0_19 = arith.constant 0 : index
      %34 = vector.load %arg8[%c0_18, %c0_19] : memref<1x384xf32, #tpu.memory_space<vmem>>, vector<1x384xf32>
      %35 = vector.broadcast %34 : vector<1x384xf32> to vector<2x384xf32>
      %36 = arith.addf %33, %35 : vector<2x384xf32>
      %cst_20 = arith.constant 0.000000e+00 : f32
      %37 = vector.broadcast %cst_20 : f32 to vector<2x384xf32>
      %38 = arith.maximumf %36, %37 : vector<2x384xf32>
      %c0_21 = arith.constant 0 : index
      %c0_22 = arith.constant 0 : index
      %39 = vector.load %arg9[%c0_21, %c0_22] : memref<384x128xbf16, #tpu.memory_space<vmem>>, vector<384x128xbf16>
      %40 = arith.extf %39 : vector<384x128xbf16> to vector<384x128xf32>
      %cst_23 = arith.constant dense<0.000000e+00> : vector<2x128xf32>
      %41 = tpu.matmul %38, %40, %cst_23 {dimension_numbers = #tpu.dot_dimension_numbers<[1], [0], [0], [1], [0, 0, 1, 1], [], []>} : vector<2x384xf32>, vector<384x128xf32>, vector<2x128xf32> -> vector<2x128xf32>
      %c0_24 = arith.constant 0 : index
      %c0_25 = arith.constant 0 : index
      %c0_26 = arith.constant 0 : index
      %42 = vector.load %arg10[%c0_24, %c0_25, %c0_26] : memref<1x2x128xf32, #tpu.memory_space<vmem>>, vector<1x2x128xf32>
      %43 = vector.shape_cast %42 : vector<1x2x128xf32> to vector<2x128xf32>
      %44 = vector.shape_cast %41 : vector<2x128xf32> to vector<1x2x128xf32>
      tpu.vector_store %arg10[%c0_24, %c0_25, %c0_26], %44 {strides = array<i32>} : memref<1x2x128xf32, #tpu.memory_space<vmem>>, vector<1x2x128xf32>,
    } else {
    }
    return
  }
  func.func @transform_0(%arg0: i32, %arg1: i32) -> (i32, i32) {
    %c0_i32 = arith.constant 0 : i32
    %c0_i32_0 = arith.constant 0 : i32
    %c0_i32_1 = arith.constant 0 : i32
    return %c0_i32, %c0_i32_0 : i32, i32
  }
  func.func @transform_1(%arg0: i32, %arg1: i32) -> (i32, i32) {
    %c0_i32 = arith.constant 0 : i32
    %c0_i32_0 = arith.constant 0 : i32
    %c0_i32_1 = arith.constant 0 : i32
    return %c0_i32, %c0_i32_0 : i32, i32
  }
  func.func @transform_2(%arg0: i32, %arg1: i32) -> (i32, i32) {
    %c0_i32 = arith.constant 0 : i32
    %c0_i32_0 = arith.constant 0 : i32
    %c0_i32_1 = arith.constant 0 : i32
    return %c0_i32, %c0_i32_0 : i32, i32
  }
  func.func @transform_3(%arg0: i32, %arg1: i32) -> (i32, i32) {
    %c0_i32 = arith.constant 0 : i32
    %c0_i32_0 = arith.constant 0 : i32
    %c0_i32_1 = arith.constant 0 : i32
    return %c0_i32, %c0_i32_0 : i32, i32
  }
  func.func @transform_4(%arg0: i32, %arg1: i32) -> (i32, i32) {
    %c0_i32 = arith.constant 0 : i32
    return %arg1, %arg0 : i32, i32
  }
  func.func @transform_5(%arg0: i32, %arg1: i32) -> (i32, i32) {
    %c0_i32 = arith.constant 0 : i32
    %c0_i32_0 = arith.constant 0 : i32
    return %c0_i32, %arg0 : i32, i32
  }
  func.func @transform_6(%arg0: i32, %arg1: i32) -> (i32, i32) {
    %c0_i32 = arith.constant 0 : i32
    %c0_i32_0 = arith.constant 0 : i32
    return %c0_i32, %arg0 : i32, i32
  }
  func.func @transform_7(%arg0: i32, %arg1: i32) -> (i32, i32) {
    %c0_i32 = arith.constant 0 : i32
    %c0_i32_0 = arith.constant 0 : i32
    return %arg0, %c0_i32 : i32, i32
  }
  func.func @transform_8(%arg0: i32, %arg1: i32) -> (i32, i32, i32) {
    %c0_i32 = arith.constant 0 : i32
    %c0_i32_0 = arith.constant 0 : i32
    %c0_i32_1 = arith.constant 0 : i32
    return %arg0, %c0_i32, %c0_i32_0 : i32, i32, i32
  }
}

</mosaic_0001>

<bundles_post_ra>
// kernel: inception_aux_forward.1
= control target key start
LH: loop header
LB: loop body
LE: loop exit
PB: predicated region body
PF: predicated region fallthrough
CT: control target
= control target key end

     0   :  { %s3885_s0 = inlined_call_operand.vmem [shape: f32[50,200], index: 0, kind: input, shape index: {}]   ;;  %s3886_s1 = inlined_call_operand.vmem [shape: f32[200,128], index: 1, kind: input, shape index: {}]   ;;  %s3887_s2 = inlined_call_operand.vmem [shape: f32[1,128], index: 2, kind: input, shape index: {}]   ;;  %s3888_s3 = inlined_call_operand.vmem [shape: f32[1,128], index: 3, kind: input, shape index: {}]   ;;  %s3889_s4 = inlined_call_operand.vmem [shape: bf16[3200,768], index: 4, kind: input, shape index: {}]   ;;  %s3890_s5 = inlined_call_operand.vmem [shape: f32[1,768], index: 5, kind: input, shape index: {}]   ;;  %s3891_s6 = inlined_call_operand.vmem [shape: f32[1,768], index: 6, kind: input, shape index: {}]   ;;  %s3892_s7 = inlined_call_operand.vmem [shape: bf16[768,128], index: 7, kind: input, shape index: {}]   ;;  %s3893_s8 = inlined_call_operand.vmem [shape: f32[2,2,128], index: 8, kind: output, shape index: {}]  }
   0x1   :  { %3911 = sst [smem:[#allocation22_spill]] %s3889_s4 }
   0x2   :  { %s2735_s27 = smov 0   ;;  %s2737_s28 = smov 0  }
   0x3   :  { %s2739_s29 = smov 0   ;;  %s2741_s30 = smov 0  }
   0x4   :  { %s2743_s9 = smov 0   ;;  %s2745_s10 = smov 0  }
   0x5   :  { %s2747_s11 = smov 0  }
   0x6 LB: > { %3912 = sst [smem:[#allocation5_spill]] %s2681_s10  ;;  %s27_s12 = sadd.s32 1, %s2677_s9  ;;  %s2685_s11 = sphi %s2747_s11, %s18_s11   ;;  %s2681_s10 = sphi %s2745_s10, %s3948_s10   ;;  %s2677_s9 = sphi %s2743_s9, %s3952_s9   ;;  %s2673_s30 = sphi %s2741_s30, %s3946_s30   ;;  %s2669_s29 = sphi %s2739_s29, %s3951_s29   ;;  %s2665_s28 = sphi %s2737_s28, %s3950_s28   ;;  %s2661_s27 = sphi %s2735_s27, %s3949_s27  }
   0x7   : > { %p28_p0 = scmp.ge.s32.totalorder %s27_s12, 5  ;;  %s30_s13 = sadd.s32 1, %s2681_s10 }
   0x8   : > { %p130_p1 = scmp.ne.s32.totalorder %s2665_s28, %s2661_s27  ;;  %p131_p2 = scmp.eq.s32.totalorder %s2685_s11, 0 }
   0x9   : > { %s3954_s12 = smov (%p28_p0, %s27_s12), 0  ;;  %s3956_s13 = smov (!%p28_p0, %s30_s13), %s2681_s10 }
   0xa   : > { %3913 = sst [smem:[#allocation6_spill]] %s3954_s12  ;;  %p132_p3 = por %p131_p2, %p130_p1 }
   0xb   : > { %p32_p4 = scmp.ge.s32.totalorder %s3956_s13, 2  ;;  %s118_s14 = ssub.s32 %s2677_s9, %s3954_s12 }
   0xc   : > { %s123_s17 = sadd.s32 1, %s2665_s28  ;;  %p2233_p6 = scmp.ge.s32.totalorder %s2685_s11, 10 }
   0xd   : > { %s3958_s13 = smov (%p32_p4, %s3956_s13), 0 }
   0xe   : > { %3914 = sst [smem:[#allocation7_spill]] %s3958_s13  ;;  %s119_s15 = ssub.s32 %s2681_s10, %s3958_s13 }
   0xf   : > { %s120_s16 = sor.u32 %s119_s15, %s118_s14  ;;  %272 = sbr.rel (%p2233_p6) target bundleno = 189 (0xbd), region = 32 }
  0x10   : > { %p121_p5 = scmp.eq.s32.totalorder %s120_s16, 0 }
  0x12   : > { %s2786_s18 = scalar_select %p121_p5, %s2665_s28, %s123_s17  }
  0x14   : > { %275 = sbr.rel (!%p132_p3) target bundleno = 189 (0xbd), region = 36  ;;  %s277_s19 = sand.u32 (%p132_p3), 1, %s2665_s28  }
  0x15   : > { %s2555_s20 = smul.u32 (%p132_p3), 960, %s277_s19  ;;  %s3915_s4 = sld [smem:[#allocation22_spill]] (%p132_p3) }
  0x16   : > { %s281_s21 = smul.u32 (%p132_p3), 3, %s2681_s10 }
  0x17   : > { %s2558_s22 = smul.u32 (%p132_p3), 480, %s2677_s9  ;;  %s2800_s15 = scalar_lea.vmem (%p132_p3), [#allocation4], %s2555_s20 }
  0x19   : > { %s283_s23 = sadd.s32 %s2558_s22, %s281_s21 }
  0x1a   : > { %s2234_s24 = sshll.u32 %s283_s23, 2 }
  0x1b   : > { %s2795_s14 = scalar_lea.vmem %s3915_s4, %s2234_s24 }
  0x1c   : > { %v300_v0 = vld [vmem:[%s2795_s14] sm:$0xff]  ;;  %v302_v1 = vld [vmem:[%s2795_s14 + $0x18] sm:$0xff]  ;;  %v304_v2 = vld [vmem:[%s2795_s14 + $0x30] sm:$0xff] }
  0x1d   : > { %301 = vst [vmem:[%s2800_s15] sm:$0xff] %v300_v0  ;;  %v306_v3 = vld [vmem:[%s2795_s14 + $0x48] sm:$0xff]  ;;  %v308_v4 = vld [vmem:[%s2795_s14 + $0x60] sm:$0xff]  ;;  %v310_v5 = vld [vmem:[%s2795_s14 + $0x78] sm:$0xff] }
  0x1e   : > { %303 = vst [vmem:[%s2800_s15 + $0xc] sm:$0xff] %v302_v1  ;;  %v312_v6 = vld [vmem:[%s2795_s14 + $0x90] sm:$0xff]  ;;  %v314_v7 = vld [vmem:[%s2795_s14 + $0xa8] sm:$0xff]  ;;  %v316_v8 = vld [vmem:[%s2795_s14 + $0xc0] sm:$0xff] }
  0x1f   : > { %305 = vst [vmem:[%s2800_s15 + $0x18] sm:$0xff] %v304_v2  ;;  %v318_v9 = vld [vmem:[%s2795_s14 + $0xd8] sm:$0xff]  ;;  %v320_v10 = vld [vmem:[%s2795_s14 + $0xf0] sm:$0xff]  ;;  %v322_v11 = vld [vmem:[%s2795_s14 + $0x108] sm:$0xff] }
  0x20   : > { %307 = vst [vmem:[%s2800_s15 + $0x24] sm:$0xff] %v306_v3  ;;  %v324_v12 = vld [vmem:[%s2795_s14 + $0x120] sm:$0xff]  ;;  %v326_v13 = vld [vmem:[%s2795_s14 + $0x138] sm:$0xff]  ;;  %v328_v14 = vld [vmem:[%s2795_s14 + $0x150] sm:$0xff] }
  0x21   : > { %309 = vst [vmem:[%s2800_s15 + $0x30] sm:$0xff] %v308_v4  ;;  %v330_v15 = vld [vmem:[%s2795_s14 + $0x168] sm:$0xff]  ;;  %v332_v16 = vld [vmem:[%s2795_s14 + $0x180] sm:$0xff]  ;;  %v334_v17 = vld [vmem:[%s2795_s14 + $0x198] sm:$0xff] }
  0x22   : > { %311 = vst [vmem:[%s2800_s15 + $0x3c] sm:$0xff] %v310_v5  ;;  %v336_v18 = vld [vmem:[%s2795_s14 + $0x1b0] sm:$0xff]  ;;  %v338_v19 = vld [vmem:[%s2795_s14 + $0x1c8] sm:$0xff]  ;;  %v340_v20 = vld [vmem:[%s2795_s14 + $0x1e0] sm:$0xff] }
  0x23   : > { %313 = vst [vmem:[%s2800_s15 + $0x48] sm:$0xff] %v312_v6  ;;  %v342_v21 = vld [vmem:[%s2795_s14 + $0x1f8] sm:$0xff]  ;;  %v344_v22 = vld [vmem:[%s2795_s14 + $0x210] sm:$0xff]  ;;  %v346_v23 = vld [vmem:[%s2795_s14 + $0x228] sm:$0xff] }
  0x24   : > { %315 = vst [vmem:[%s2800_s15 + $0x54] sm:$0xff] %v314_v7  ;;  %v348_v24 = vld [vmem:[%s2795_s14 + $0x240] sm:$0xff]  ;;  %v350_v25 = vld [vmem:[%s2795_s14 + $0x258] sm:$0xff]  ;;  %v352_v26 = vld [vmem:[%s2795_s14 + $0x270] sm:$0xff] }
  0x25   : > { %317 = vst [vmem:[%s2800_s15 + $0x60] sm:$0xff] %v316_v8  ;;  %v354_v27 = vld [vmem:[%s2795_s14 + $0x288] sm:$0xff]  ;;  %v356_v28 = vld [vmem:[%s2795_s14 + $0x2a0] sm:$0xff]  ;;  %v358_v29 = vld [vmem:[%s2795_s14 + $0x2b8] sm:$0xff] }
  0x26   : > { %319 = vst [vmem:[%s2800_s15 + $0x6c] sm:$0xff] %v318_v9  ;;  %v360_v30 = vld [vmem:[%s2795_s14 + $0x2d0] sm:$0xff]  ;;  %v362_v31 = vld [vmem:[%s2795_s14 + $0x2e8] sm:$0xff]  ;;  %v364_v32 = vld [vmem:[%s2795_s14 + $0x300] sm:$0xff] }
  0x27   : > { %321 = vst [vmem:[%s2800_s15 + $0x78] sm:$0xff] %v320_v10  ;;  %v366_v33 = vld [vmem:[%s2795_s14 + $0x318] sm:$0xff]  ;;  %v368_v34 = vld [vmem:[%s2795_s14 + $0x330] sm:$0xff]  ;;  %v370_v35 = vld [vmem:[%s2795_s14 + $0x348] sm:$0xff] }
  0x28   : > { %323 = vst [vmem:[%s2800_s15 + $0x84] sm:$0xff] %v322_v11  ;;  %v372_v36 = vld [vmem:[%s2795_s14 + $0x360] sm:$0xff]  ;;  %v374_v37 = vld [vmem:[%s2795_s14 + $0x378] sm:$0xff]  ;;  %v376_v38 = vld [vmem:[%s2795_s14 + $0x390] sm:$0xff] }
  0x29   : > { %325 = vst [vmem:[%s2800_s15 + $0x90] sm:$0xff] %v324_v12  ;;  %v378_v39 = vld [vmem:[%s2795_s14 + $0x3a8] sm:$0xff]  ;;  %v380_v40 = vld [vmem:[%s2795_s14 + $0x3c0] sm:$0xff]  ;;  %v382_v41 = vld [vmem:[%s2795_s14 + $0x3d8] sm:$0xff] }
  0x2a   : > { %327 = vst [vmem:[%s2800_s15 + $0x9c] sm:$0xff] %v326_v13  ;;  %v384_v42 = vld [vmem:[%s2795_s14 + $0x3f0] sm:$0xff]  ;;  %v386_v43 = vld [vmem:[%s2795_s14 + $0x408] sm:$0xff]  ;;  %v388_v44 = vld [vmem:[%s2795_s14 + $0x420] sm:$0xff] }
  0x2b   : > { %329 = vst [vmem:[%s2800_s15 + $0xa8] sm:$0xff] %v328_v14  ;;  %v390_v45 = vld [vmem:[%s2795_s14 + $0x438] sm:$0xff]  ;;  %v392_v46 = vld [vmem:[%s2795_s14 + $0x450] sm:$0xff]  ;;  %v394_v47 = vld [vmem:[%s2795_s14 + $0x468] sm:$0xff] }
  0x2c   : > { %331 = vst [vmem:[%s2800_s15 + $0xb4] sm:$0xff] %v330_v15  ;;  %v396_v48 = vld [vmem:[%s2795_s14 + $0x480] sm:$0xff]  ;;  %v398_v49 = vld [vmem:[%s2795_s14 + $0x498] sm:$0xff]  ;;  %v400_v50 = vld [vmem:[%s2795_s14 + $0x4b0] sm:$0xff] }
  0x2d   : > { %333 = vst [vmem:[%s2800_s15 + $0xc0] sm:$0xff] %v332_v16  ;;  %v402_v51 = vld [vmem:[%s2795_s14 + $0x4c8] sm:$0xff]  ;;  %v404_v52 = vld [vmem:[%s2795_s14 + $0x4e0] sm:$0xff]  ;;  %v406_v53 = vld [vmem:[%s2795_s14 + $0x4f8] sm:$0xff] }
  0x2e   : > { %335 = vst [vmem:[%s2800_s15 + $0xcc] sm:$0xff] %v334_v17  ;;  %v408_v54 = vld [vmem:[%s2795_s14 + $0x510] sm:$0xff]  ;;  %v410_v55 = vld [vmem:[%s2795_s14 + $0x528] sm:$0xff]  ;;  %v412_v56 = vld [vmem:[%s2795_s14 + $0x540] sm:$0xff] }
  0x2f   : > { %337 = vst [vmem:[%s2800_s15 + $0xd8] sm:$0xff] %v336_v18  ;;  %v414_v57 = vld [vmem:[%s2795_s14 + $0x558] sm:$0xff]  ;;  %v416_v58 = vld [vmem:[%s2795_s14 + $0x570] sm:$0xff]  ;;  %v418_v59 = vld [vmem:[%s2795_s14 + $0x588] sm:$0xff] }
  0x30   : > { %339 = vst [vmem:[%s2800_s15 + $0xe4] sm:$0xff] %v338_v19  ;;  %v420_v60 = vld [vmem:[%s2795_s14 + $0x5a0] sm:$0xff]  ;;  %v422_v61 = vld [vmem:[%s2795_s14 + $0x5b8] sm:$0xff]  ;;  %v424_v62 = vld [vmem:[%s2795_s14 + $0x5d0] sm:$0xff] }
  0x31   : > { %341 = vst [vmem:[%s2800_s15 + $0xf0] sm:$0xff] %v340_v20  ;;  %v426_v63 = vld [vmem:[%s2795_s14 + $0x5e8] sm:$0xff]  ;;  %v428_v0 = vld [vmem:[%s2795_s14 + $0x600] sm:$0xff]  ;;  %v430_v1 = vld [vmem:[%s2795_s14 + $0x618] sm:$0xff] }
  0x32   : > { %343 = vst [vmem:[%s2800_s15 + $0xfc] sm:$0xff] %v342_v21  ;;  %v432_v2 = vld [vmem:[%s2795_s14 + $0x630] sm:$0xff]  ;;  %v434_v3 = vld [vmem:[%s2795_s14 + $0x648] sm:$0xff]  ;;  %v436_v4 = vld [vmem:[%s2795_s14 + $0x660] sm:$0xff] }
  0x33   : > { %345 = vst [vmem:[%s2800_s15 + $0x108] sm:$0xff] %v344_v22  ;;  %v438_v5 = vld [vmem:[%s2795_s14 + $0x678] sm:$0xff]  ;;  %v440_v6 = vld [vmem:[%s2795_s14 + $0x690] sm:$0xff]  ;;  %v442_v7 = vld [vmem:[%s2795_s14 + $0x6a8] sm:$0xff] }
  0x34   : > { %347 = vst [vmem:[%s2800_s15 + $0x114] sm:$0xff] %v346_v23  ;;  %v444_v8 = vld [vmem:[%s2795_s14 + $0x6c0] sm:$0xff]  ;;  %v446_v9 = vld [vmem:[%s2795_s14 + $0x6d8] sm:$0xff]  ;;  %v448_v10 = vld [vmem:[%s2795_s14 + $0x6f0] sm:$0xff] }
  0x35   : > { %349 = vst [vmem:[%s2800_s15 + $0x120] sm:$0xff] %v348_v24  ;;  %v450_v11 = vld [vmem:[%s2795_s14 + $0x708] sm:$0xff]  ;;  %v452_v12 = vld [vmem:[%s2795_s14 + $0x720] sm:$0xff]  ;;  %v454_v13 = vld [vmem:[%s2795_s14 + $0x738] sm:$0xff] }
  0x36   : > { %351 = vst [vmem:[%s2800_s15 + $0x12c] sm:$0xff] %v350_v25  ;;  %v456_v14 = vld [vmem:[%s2795_s14 + $0x750] sm:$0xff]  ;;  %v458_v15 = vld [vmem:[%s2795_s14 + $0x768] sm:$0xff]  ;;  %v2237_v17 = vld [vmem:[%s2795_s14 + $0x20] sm:$0xf] }
  0x37   : > { %353 = vst [vmem:[%s2800_s15 + $0x138] sm:$0xff] %v352_v26  ;;  %v2235_v16 = vld [vmem:[%s2795_s14 + $0x8] sm:$0xf]  ;;  %v2239_v18 = vld [vmem:[%s2795_s14 + $0x38] sm:$0xf] }
  0x38   : > { %355 = vst [vmem:[%s2800_s15 + $0x144] sm:$0xff] %v354_v27  ;;  %v2241_v19 = vld [vmem:[%s2795_s14 + $0x50] sm:$0xf]  ;;  %v2243_v20 = vld [vmem:[%s2795_s14 + $0x68] sm:$0xf] }
  0x39   : > { %357 = vst [vmem:[%s2800_s15 + $0x150] sm:$0xff] %v356_v28  ;;  %v2245_v21 = vld [vmem:[%s2795_s14 + $0x80] sm:$0xf]  ;;  %v2247_v22 = vld [vmem:[%s2795_s14 + $0x98] sm:$0xf] }
  0x3a   : > { %359 = vst [vmem:[%s2800_s15 + $0x15c] sm:$0xff] %v358_v29  ;;  %v2249_v23 = vld [vmem:[%s2795_s14 + $0xb0] sm:$0xf]  ;;  %v2251_v24 = vld [vmem:[%s2795_s14 + $0xc8] sm:$0xf] }
  0x3b   : > { %361 = vst [vmem:[%s2800_s15 + $0x168] sm:$0xff] %v360_v30  ;;  %v2253_v25 = vld [vmem:[%s2795_s14 + $0xe0] sm:$0xf]  ;;  %v2255_v26 = vld [vmem:[%s2795_s14 + $0xf8] sm:$0xf] }
  0x3c   : > { %363 = vst [vmem:[%s2800_s15 + $0x174] sm:$0xff] %v362_v31  ;;  %v2257_v27 = vld [vmem:[%s2795_s14 + $0x110] sm:$0xf]  ;;  %v2259_v28 = vld [vmem:[%s2795_s14 + $0x128] sm:$0xf] }
  0x3d   : > { %365 = vst [vmem:[%s2800_s15 + $0x180] sm:$0xff] %v364_v32  ;;  %v2261_v29 = vld [vmem:[%s2795_s14 + $0x140] sm:$0xf]  ;;  %v2263_v30 = vld [vmem:[%s2795_s14 + $0x158] sm:$0xf] }
  0x3e   : > { %367 = vst [vmem:[%s2800_s15 + $0x18c] sm:$0xff] %v366_v33  ;;  %v2265_v31 = vld [vmem:[%s2795_s14 + $0x170] sm:$0xf]  ;;  %v2267_v32 = vld [vmem:[%s2795_s14 + $0x188] sm:$0xf] }
  0x3f   : > { %369 = vst [vmem:[%s2800_s15 + $0x198] sm:$0xff] %v368_v34  ;;  %v2269_v33 = vld [vmem:[%s2795_s14 + $0x1a0] sm:$0xf]  ;;  %v2271_v34 = vld [vmem:[%s2795_s14 + $0x1b8] sm:$0xf] }
  0x40   : > { %371 = vst [vmem:[%s2800_s15 + $0x1a4] sm:$0xff] %v370_v35  ;;  %v2273_v35 = vld [vmem:[%s2795_s14 + $0x1d0] sm:$0xf] }
  0x41   : > { %373 = vst [vmem:[%s2800_s15 + $0x1b0] sm:$0xff] %v372_v36  ;;  %v2275_v36 = vld [vmem:[%s2795_s14 + $0x1e8] sm:$0xf] }
  0x42   : > { %375 = vst [vmem:[%s2800_s15 + $0x1bc] sm:$0xff] %v374_v37  ;;  %v2277_v37 = vld [vmem:[%s2795_s14 + $0x200] sm:$0xf] }
  0x43   : > { %377 = vst [vmem:[%s2800_s15 + $0x1c8] sm:$0xff] %v376_v38  ;;  %v2279_v38 = vld [vmem:[%s2795_s14 + $0x218] sm:$0xf] }
  0x44   : > { %379 = vst [vmem:[%s2800_s15 + $0x1d4] sm:$0xff] %v378_v39  ;;  %v2281_v39 = vld [vmem:[%s2795_s14 + $0x230] sm:$0xf] }
  0x45   : > { %381 = vst [vmem:[%s2800_s15 + $0x1e0] sm:$0xff] %v380_v40  ;;  %v2283_v40 = vld [vmem:[%s2795_s14 + $0x248] sm:$0xf] }
  0x46   : > { %383 = vst [vmem:[%s2800_s15 + $0x1ec] sm:$0xff] %v382_v41  ;;  %v2285_v41 = vld [vmem:[%s2795_s14 + $0x260] sm:$0xf] }
  0x47   : > { %385 = vst [vmem:[%s2800_s15 + $0x1f8] sm:$0xff] %v384_v42  ;;  %v2287_v42 = vld [vmem:[%s2795_s14 + $0x278] sm:$0xf] }
  0x48   : > { %387 = vst [vmem:[%s2800_s15 + $0x204] sm:$0xff] %v386_v43  ;;  %v2289_v43 = vld [vmem:[%s2795_s14 + $0x290] sm:$0xf] }
  0x49   : > { %389 = vst [vmem:[%s2800_s15 + $0x210] sm:$0xff] %v388_v44  ;;  %v2291_v44 = vld [vmem:[%s2795_s14 + $0x2a8] sm:$0xf] }
  0x4a   : > { %391 = vst [vmem:[%s2800_s15 + $0x21c] sm:$0xff] %v390_v45  ;;  %v2293_v45 = vld [vmem:[%s2795_s14 + $0x2c0] sm:$0xf] }
  0x4b   : > { %393 = vst [vmem:[%s2800_s15 + $0x228] sm:$0xff] %v392_v46  ;;  %v2295_v46 = vld [vmem:[%s2795_s14 + $0x2d8] sm:$0xf] }
  0x4c   : > { %395 = vst [vmem:[%s2800_s15 + $0x234] sm:$0xff] %v394_v47  ;;  %v2297_v47 = vld [vmem:[%s2795_s14 + $0x2f0] sm:$0xf] }
  0x4d   : > { %397 = vst [vmem:[%s2800_s15 + $0x240] sm:$0xff] %v396_v48  ;;  %v2299_v48 = vld [vmem:[%s2795_s14 + $0x308] sm:$0xf] }
  0x4e   : > { %399 = vst [vmem:[%s2800_s15 + $0x24c] sm:$0xff] %v398_v49  ;;  %v2301_v49 = vld [vmem:[%s2795_s14 + $0x320] sm:$0xf] }
  0x4f   : > { %401 = vst [vmem:[%s2800_s15 + $0x258] sm:$0xff] %v400_v50  ;;  %v2303_v50 = vld [vmem:[%s2795_s14 + $0x338] sm:$0xf] }
  0x50   : > { %403 = vst [vmem:[%s2800_s15 + $0x264] sm:$0xff] %v402_v51  ;;  %v2305_v51 = vld [vmem:[%s2795_s14 + $0x350] sm:$0xf] }
  0x51   : > { %405 = vst [vmem:[%s2800_s15 + $0x270] sm:$0xff] %v404_v52  ;;  %v2307_v52 = vld [vmem:[%s2795_s14 + $0x368] sm:$0xf] }
  0x52   : > { %407 = vst [vmem:[%s2800_s15 + $0x27c] sm:$0xff] %v406_v53  ;;  %v2309_v53 = vld [vmem:[%s2795_s14 + $0x380] sm:$0xf] }
  0x53   : > { %409 = vst [vmem:[%s2800_s15 + $0x288] sm:$0xff] %v408_v54  ;;  %v2311_v54 = vld [vmem:[%s2795_s14 + $0x398] sm:$0xf] }
  0x54   : > { %411 = vst [vmem:[%s2800_s15 + $0x294] sm:$0xff] %v410_v55  ;;  %v2313_v55 = vld [vmem:[%s2795_s14 + $0x3b0] sm:$0xf] }
  0x55   : > { %413 = vst [vmem:[%s2800_s15 + $0x2a0] sm:$0xff] %v412_v56  ;;  %v2315_v56 = vld [vmem:[%s2795_s14 + $0x3c8] sm:$0xf] }
  0x56   : > { %415 = vst [vmem:[%s2800_s15 + $0x2ac] sm:$0xff] %v414_v57  ;;  %v2317_v57 = vld [vmem:[%s2795_s14 + $0x3e0] sm:$0xf] }
  0x57   : > { %417 = vst [vmem:[%s2800_s15 + $0x2b8] sm:$0xff] %v416_v58  ;;  %v2319_v58 = vld [vmem:[%s2795_s14 + $0x3f8] sm:$0xf] }
  0x58   : > { %419 = vst [vmem:[%s2800_s15 + $0x2c4] sm:$0xff] %v418_v59  ;;  %v2321_v59 = vld [vmem:[%s2795_s14 + $0x410] sm:$0xf] }
  0x59   : > { %421 = vst [vmem:[%s2800_s15 + $0x2d0] sm:$0xff] %v420_v60  ;;  %v2323_v60 = vld [vmem:[%s2795_s14 + $0x428] sm:$0xf] }
  0x5a   : > { %423 = vst [vmem:[%s2800_s15 + $0x2dc] sm:$0xff] %v422_v61  ;;  %v2325_v61 = vld [vmem:[%s2795_s14 + $0x440] sm:$0xf] }
  0x5b   : > { %425 = vst [vmem:[%s2800_s15 + $0x2e8] sm:$0xff] %v424_v62  ;;  %v2327_v62 = vld [vmem:[%s2795_s14 + $0x458] sm:$0xf] }
  0x5c   : > { %427 = vst [vmem:[%s2800_s15 + $0x2f4] sm:$0xff] %v426_v63  ;;  %v2329_v63 = vld [vmem:[%s2795_s14 + $0x470] sm:$0xf] }
  0x5d   : > { %429 = vst [vmem:[%s2800_s15 + $0x300] sm:$0xff] %v428_v0  ;;  %v2331_v0 = vld [vmem:[%s2795_s14 + $0x488] sm:$0xf] }
  0x5e   : > { %431 = vst [vmem:[%s2800_s15 + $0x30c] sm:$0xff] %v430_v1  ;;  %v2333_v1 = vld [vmem:[%s2795_s14 + $0x4a0] sm:$0xf] }
  0x5f   : > { %433 = vst [vmem:[%s2800_s15 + $0x318] sm:$0xff] %v432_v2  ;;  %v2335_v2 = vld [vmem:[%s2795_s14 + $0x4b8] sm:$0xf] }
  0x60   : > { %435 = vst [vmem:[%s2800_s15 + $0x324] sm:$0xff] %v434_v3  ;;  %v2337_v3 = vld [vmem:[%s2795_s14 + $0x4d0] sm:$0xf] }
  0x61   : > { %437 = vst [vmem:[%s2800_s15 + $0x330] sm:$0xff] %v436_v4  ;;  %v2339_v4 = vld [vmem:[%s2795_s14 + $0x4e8] sm:$0xf] }
  0x62   : > { %439 = vst [vmem:[%s2800_s15 + $0x33c] sm:$0xff] %v438_v5  ;;  %v2341_v5 = vld [vmem:[%s2795_s14 + $0x500] sm:$0xf] }
  0x63   : > { %441 = vst [vmem:[%s2800_s15 + $0x348] sm:$0xff] %v440_v6  ;;  %v2343_v6 = vld [vmem:[%s2795_s14 + $0x518] sm:$0xf] }
  0x64   : > { %443 = vst [vmem:[%s2800_s15 + $0x354] sm:$0xff] %v442_v7  ;;  %v2345_v7 = vld [vmem:[%s2795_s14 + $0x530] sm:$0xf] }
  0x65   : > { %445 = vst [vmem:[%s2800_s15 + $0x360] sm:$0xff] %v444_v8  ;;  %v2347_v8 = vld [vmem:[%s2795_s14 + $0x548] sm:$0xf] }
  0x66   : > { %447 = vst [vmem:[%s2800_s15 + $0x36c] sm:$0xff] %v446_v9  ;;  %v2349_v9 = vld [vmem:[%s2795_s14 + $0x560] sm:$0xf] }
  0x67   : > { %449 = vst [vmem:[%s2800_s15 + $0x378] sm:$0xff] %v448_v10  ;;  %v2351_v10 = vld [vmem:[%s2795_s14 + $0x578] sm:$0xf] }
  0x68   : > { %451 = vst [vmem:[%s2800_s15 + $0x384] sm:$0xff] %v450_v11  ;;  %v2353_v11 = vld [vmem:[%s2795_s14 + $0x590] sm:$0xf] }
  0x69   : > { %453 = vst [vmem:[%s2800_s15 + $0x390] sm:$0xff] %v452_v12  ;;  %v2355_v12 = vld [vmem:[%s2795_s14 + $0x5a8] sm:$0xf] }
  0x6a   : > { %455 = vst [vmem:[%s2800_s15 + $0x39c] sm:$0xff] %v454_v13  ;;  %v2357_v13 = vld [vmem:[%s2795_s14 + $0x5c0] sm:$0xf] }
  0x6b   : > { %457 = vst [vmem:[%s2800_s15 + $0x3a8] sm:$0xff] %v456_v14  ;;  %v2359_v14 = vld [vmem:[%s2795_s14 + $0x5d8] sm:$0xf] }
  0x6c   : > { %459 = vst [vmem:[%s2800_s15 + $0x3b4] sm:$0xff] %v458_v15  ;;  %v2361_v15 = vld [vmem:[%s2795_s14 + $0x5f0] sm:$0xf] }
  0x6d   : > { %2236 = vst [vmem:[%s2800_s15 + $0x8] sm:$0xf] %v2235_v16  ;;  %v2363_v16 = vld [vmem:[%s2795_s14 + $0x608] sm:$0xf] }
  0x6e   : > { %2238 = vst [vmem:[%s2800_s15 + $0x14] sm:$0xf] %v2237_v17  ;;  %v2365_v17 = vld [vmem:[%s2795_s14 + $0x620] sm:$0xf] }
  0x6f   : > { %2240 = vst [vmem:[%s2800_s15 + $0x20] sm:$0xf] %v2239_v18  ;;  %v2367_v18 = vld [vmem:[%s2795_s14 + $0x638] sm:$0xf] }
  0x70   : > { %2242 = vst [vmem:[%s2800_s15 + $0x2c] sm:$0xf] %v2241_v19  ;;  %v2369_v19 = vld [vmem:[%s2795_s14 + $0x650] sm:$0xf] }
  0x71   : > { %2244 = vst [vmem:[%s2800_s15 + $0x38] sm:$0xf] %v2243_v20  ;;  %v2371_v20 = vld [vmem:[%s2795_s14 + $0x668] sm:$0xf] }
  0x72   : > { %2246 = vst [vmem:[%s2800_s15 + $0x44] sm:$0xf] %v2245_v21  ;;  %v2373_v21 = vld [vmem:[%s2795_s14 + $0x680] sm:$0xf] }
  0x73   : > { %2248 = vst [vmem:[%s2800_s15 + $0x50] sm:$0xf] %v2247_v22  ;;  %v2375_v22 = vld [vmem:[%s2795_s14 + $0x698] sm:$0xf] }
  0x74   : > { %2250 = vst [vmem:[%s2800_s15 + $0x5c] sm:$0xf] %v2249_v23  ;;  %v2377_v23 = vld [vmem:[%s2795_s14 + $0x6b0] sm:$0xf] }
  0x75   : > { %2252 = vst [vmem:[%s2800_s15 + $0x68] sm:$0xf] %v2251_v24  ;;  %v2379_v24 = vld [vmem:[%s2795_s14 + $0x6c8] sm:$0xf] }
  0x76   : > { %2254 = vst [vmem:[%s2800_s15 + $0x74] sm:$0xf] %v2253_v25  ;;  %v2381_v25 = vld [vmem:[%s2795_s14 + $0x6e0] sm:$0xf] }
  0x77   : > { %2256 = vst [vmem:[%s2800_s15 + $0x80] sm:$0xf] %v2255_v26  ;;  %v2383_v26 = vld [vmem:[%s2795_s14 + $0x6f8] sm:$0xf] }
  0x78   : > { %2258 = vst [vmem:[%s2800_s15 + $0x8c] sm:$0xf] %v2257_v27  ;;  %v2385_v27 = vld [vmem:[%s2795_s14 + $0x710] sm:$0xf] }
  0x79   : > { %2260 = vst [vmem:[%s2800_s15 + $0x98] sm:$0xf] %v2259_v28  ;;  %v2387_v28 = vld [vmem:[%s2795_s14 + $0x728] sm:$0xf] }
  0x7a   : > { %2262 = vst [vmem:[%s2800_s15 + $0xa4] sm:$0xf] %v2261_v29  ;;  %v2389_v29 = vld [vmem:[%s2795_s14 + $0x740] sm:$0xf] }
  0x7b   : > { %2264 = vst [vmem:[%s2800_s15 + $0xb0] sm:$0xf] %v2263_v30  ;;  %v2391_v30 = vld [vmem:[%s2795_s14 + $0x758] sm:$0xf] }
  0x7c   : > { %2266 = vst [vmem:[%s2800_s15 + $0xbc] sm:$0xf] %v2265_v31  ;;  %v2393_v31 = vld [vmem:[%s2795_s14 + $0x770] sm:$0xf] }
  0x7d   : > { %2268 = vst [vmem:[%s2800_s15 + $0xc8] sm:$0xf] %v2267_v32 }
  0x7e   : > { %2270 = vst [vmem:[%s2800_s15 + $0xd4] sm:$0xf] %v2269_v33 }
  0x7f   : > { %2272 = vst [vmem:[%s2800_s15 + $0xe0] sm:$0xf] %v2271_v34 }
  0x80   : > { %2274 = vst [vmem:[%s2800_s15 + $0xec] sm:$0xf] %v2273_v35 }
  0x81   : > { %2276 = vst [vmem:[%s2800_s15 + $0xf8] sm:$0xf] %v2275_v36 }
  0x82   : > { %2278 = vst [vmem:[%s2800_s15 + $0x104] sm:$0xf] %v2277_v37 }
  0x83   : > { %2280 = vst [vmem:[%s2800_s15 + $0x110] sm:$0xf] %v2279_v38 }
  0x84   : > { %2282 = vst [vmem:[%s2800_s15 + $0x11c] sm:$0xf] %v2281_v39 }
  0x85   : > { %2284 = vst [vmem:[%s2800_s15 + $0x128] sm:$0xf] %v2283_v40 }
  0x86   : > { %2286 = vst [vmem:[%s2800_s15 + $0x134] sm:$0xf] %v2285_v41 }
  0x87   : > { %2288 = vst [vmem:[%s2800_s15 + $0x140] sm:$0xf] %v2287_v42 }
  0x88   : > { %2290 = vst [vmem:[%s2800_s15 + $0x14c] sm:$0xf] %v2289_v43 }
  0x89   : > { %2292 = vst [vmem:[%s2800_s15 + $0x158] sm:$0xf] %v2291_v44 }
  0x8a   : > { %2294 = vst [vmem:[%s2800_s15 + $0x164] sm:$0xf] %v2293_v45 }
  0x8b   : > { %2296 = vst [vmem:[%s2800_s15 + $0x170] sm:$0xf] %v2295_v46 }
  0x8c   : > { %2298 = vst [vmem:[%s2800_s15 + $0x17c] sm:$0xf] %v2297_v47 }
  0x8d   : > { %2300 = vst [vmem:[%s2800_s15 + $0x188] sm:$0xf] %v2299_v48 }
  0x8e   : > { %2302 = vst [vmem:[%s2800_s15 + $0x194] sm:$0xf] %v2301_v49 }
  0x8f   : > { %2304 = vst [vmem:[%s2800_s15 + $0x1a0] sm:$0xf] %v2303_v50 }
  0x90   : > { %2306 = vst [vmem:[%s2800_s15 + $0x1ac] sm:$0xf] %v2305_v51 }
  0x91   : > { %2308 = vst [vmem:[%s2800_s15 + $0x1b8] sm:$0xf] %v2307_v52 }
  0x92   : > { %2310 = vst [vmem:[%s2800_s15 + $0x1c4] sm:$0xf] %v2309_v53 }
  0x93   : > { %2312 = vst [vmem:[%s2800_s15 + $0x1d0] sm:$0xf] %v2311_v54 }
  0x94   : > { %2314 = vst [vmem:[%s2800_s15 + $0x1dc] sm:$0xf] %v2313_v55 }
  0x95   : > { %2316 = vst [vmem:[%s2800_s15 + $0x1e8] sm:$0xf] %v2315_v56 }
  0x96   : > { %2318 = vst [vmem:[%s2800_s15 + $0x1f4] sm:$0xf] %v2317_v57 }
  0x97   : > { %2320 = vst [vmem:[%s2800_s15 + $0x200] sm:$0xf] %v2319_v58 }
  0x98   : > { %2322 = vst [vmem:[%s2800_s15 + $0x20c] sm:$0xf] %v2321_v59 }
  0x99   : > { %2324 = vst [vmem:[%s2800_s15 + $0x218] sm:$0xf] %v2323_v60 }
  0x9a   : > { %2326 = vst [vmem:[%s2800_s15 + $0x224] sm:$0xf] %v2325_v61 }
  0x9b   : > { %2328 = vst [vmem:[%s2800_s15 + $0x230] sm:$0xf] %v2327_v62 }
  0x9c   : > { %2330 = vst [vmem:[%s2800_s15 + $0x23c] sm:$0xf] %v2329_v63 }
  0x9d   : > { %2332 = vst [vmem:[%s2800_s15 + $0x248] sm:$0xf] %v2331_v0 }
  0x9e   : > { %2334 = vst [vmem:[%s2800_s15 + $0x254] sm:$0xf] %v2333_v1 }
  0x9f   : > { %2336 = vst [vmem:[%s2800_s15 + $0x260] sm:$0xf] %v2335_v2 }
  0xa0   : > { %2338 = vst [vmem:[%s2800_s15 + $0x26c] sm:$0xf] %v2337_v3 }
  0xa1   : > { %2340 = vst [vmem:[%s2800_s15 + $0x278] sm:$0xf] %v2339_v4 }
  0xa2   : > { %2342 = vst [vmem:[%s2800_s15 + $0x284] sm:$0xf] %v2341_v5 }
  0xa3   : > { %2344 = vst [vmem:[%s2800_s15 + $0x290] sm:$0xf] %v2343_v6 }
  0xa4   : > { %2346 = vst [vmem:[%s2800_s15 + $0x29c] sm:$0xf] %v2345_v7 }
  0xa5   : > { %2348 = vst [vmem:[%s2800_s15 + $0x2a8] sm:$0xf] %v2347_v8 }
  0xa6   : > { %2350 = vst [vmem:[%s2800_s15 + $0x2b4] sm:$0xf] %v2349_v9 }
  0xa7   : > { %2352 = vst [vmem:[%s2800_s15 + $0x2c0] sm:$0xf] %v2351_v10 }
  0xa8   : > { %2354 = vst [vmem:[%s2800_s15 + $0x2cc] sm:$0xf] %v2353_v11 }
  0xa9   : > { %2356 = vst [vmem:[%s2800_s15 + $0x2d8] sm:$0xf] %v2355_v12 }
  0xaa   : > { %2358 = vst [vmem:[%s2800_s15 + $0x2e4] sm:$0xf] %v2357_v13 }
  0xab   : > { %2360 = vst [vmem:[%s2800_s15 + $0x2f0] sm:$0xf] %v2359_v14 }
  0xac   : > { %2362 = vst [vmem:[%s2800_s15 + $0x2fc] sm:$0xf] %v2361_v15 }
  0xad   : > { %2364 = vst [vmem:[%s2800_s15 + $0x308] sm:$0xf] %v2363_v16 }
  0xae   : > { %2366 = vst [vmem:[%s2800_s15 + $0x314] sm:$0xf] %v2365_v17 }
  0xaf   : > { %2368 = vst [vmem:[%s2800_s15 + $0x320] sm:$0xf] %v2367_v18 }
  0xb0   : > { %2370 = vst [vmem:[%s2800_s15 + $0x32c] sm:$0xf] %v2369_v19 }
  0xb1   : > { %2372 = vst [vmem:[%s2800_s15 + $0x338] sm:$0xf] %v2371_v20 }
  0xb2   : > { %2374 = vst [vmem:[%s2800_s15 + $0x344] sm:$0xf] %v2373_v21 }
  0xb3   : > { %2376 = vst [vmem:[%s2800_s15 + $0x350] sm:$0xf] %v2375_v22 }
  0xb4   : > { %2378 = vst [vmem:[%s2800_s15 + $0x35c] sm:$0xf] %v2377_v23 }
  0xb5   : > { %2380 = vst [vmem:[%s2800_s15 + $0x368] sm:$0xf] %v2379_v24 }
  0xb6   : > { %2382 = vst [vmem:[%s2800_s15 + $0x374] sm:$0xf] %v2381_v25 }
  0xb7   : > { %2384 = vst [vmem:[%s2800_s15 + $0x380] sm:$0xf] %v2383_v26 }
  0xb8   : > { %2386 = vst [vmem:[%s2800_s15 + $0x38c] sm:$0xf] %v2385_v27 }
  0xb9   : > { %2388 = vst [vmem:[%s2800_s15 + $0x398] sm:$0xf] %v2387_v28 }
  0xba   : > { %2390 = vst [vmem:[%s2800_s15 + $0x3a4] sm:$0xf] %v2389_v29 }
  0xbb   : > { %2392 = vst [vmem:[%s2800_s15 + $0x3b0] sm:$0xf] %v2391_v30 }
  0xbc   : > { %2394 = vst [vmem:[%s2800_s15 + $0x3bc] sm:$0xf] %v2393_v31 }
  0xbd PF: > { %p2395_p7 = scmp.ge.s32.totalorder %s2685_s11, 1  ;;  %p657_p8 = scmp.lt.s32.totalorder %s2685_s11, 11 }
  0xbf   : > { %p658_p9 = pnand %p2395_p7, %p657_p8 }
  0xc1   : > { %661 = sbr.rel (%p658_p9) target bundleno = 1167 (0x48f), region = 74 }
  0xc6   : > { %s664_s16 = sand.u32 1, %s2661_s27   ;;  %s711_s17 = smul.u32 3, %s2673_s30 }
  0xc7   : > { %s2557_s19 = smul.u32 960, %s664_s16  ;;  %p727_p11 = scmp.lt.s32.totalorder %s2673_s30, 1 }
  0xc8   : > { %p712_p10 = scmp.lt.s32.totalorder %s711_s17, 5  ;;  %s721_s20 = smul.u32 48, %s2673_s30 }
  0xc9   : > { %s3964_s30 = smov (!%p727_p11, %s2673_s30), 1  ;;  %s3146_s21 = scalar_lea.vmem [#allocation4], %s2557_s19 }
  0xca   : > { %s3960_s17 = smov (!%p712_p10, %s711_s17), 5  ;;  %p722_p12 = scmp.lt.s32.totalorder %s721_s20, 95 }
  0xcb   : > { %s714_s23 = scalar_lea.vmem %s3890_s5, %s3960_s17  ;;  %s719_s26 = scalar_lea.vmem %s3891_s6, %s3960_s17 }
  0xcc   : > { %s3962_s20 = smov (!%p722_p12, %s721_s20), 95  ;;  %s2397_s4 = sshll.u32 %s3964_s30, 1 }
  0xcd   : > { %s2396_s27 = sshll.u32 %s3962_s20, 2  ;;  %s3144_s10 = scalar_lea.vmem %s3893_s8, %s2397_s4 }
  0xce   : > { %s3139_s16 = scalar_lea.vmem %s3892_s7, %s2396_s27  ;;  %p2398_p13 = scmp.ne.s32.totalorder %s2669_s29, 0 }
  0xd0   : > { %734 = sbr.rel (%p2398_p13) target bundleno = 651 (0x28b), region = 82 }
  0xd5   : > { %v764_v32 = vld [vmem:[%s3886_s1 + $0x78] sm:$0xff]  ;;  %v763_v33 = vld [vmem:[%s3886_s1 + $0x70] sm:$0xff]  ;;  %v773_v34 = vld [vmem:[%s3886_s1 + $0xc0] sm:$0xff]  ;;  %vm774_vm0 = vcmask 588800   ;;  %v2687_v19 = vmov 50.0   ;;  %vm877_vm1 = vcmask 1041408  }
  0xd6   : > { %796 = vmatpush.msra.mxu0 %v764_v32  ;;  %2530 = vmatpush.msra.mxu2 %v764_v32  ;;  %v772_v35 = vld [vmem:[%s3886_s1 + $0xb8] sm:$0xff]  ;;  %v762_v36 = vld [vmem:[%s3886_s1 + $0x68] sm:$0xff]  ;;  %v771_v37 = vld [vmem:[%s3886_s1 + $0xb0] sm:$0xff]  ;;  %2619 = vrcp.f32 %v2687_v19 }
  0xd7   : > { %841 = vmatpush.msra.mxu1 %v773_v34  ;;  %2546 = vmatpush.msra.mxu3 %v773_v34  ;;  %v761_v38 = vld [vmem:[%s3886_s1 + $0x60] sm:$0xff]  ;;  %v770_v39 = vld [vmem:[%s3886_s1 + $0xa8] sm:$0xff]  ;;  %v760_v40 = vld [vmem:[%s3886_s1 + $0x58] sm:$0xff] }
  0xd8   : > { %797 = vmatpush.msra.mxu0 %v763_v33  ;;  %2531 = vmatpush.msra.mxu2 %v763_v33  ;;  %v769_v41 = vld [vmem:[%s3886_s1 + $0xa0] sm:$0xff]  ;;  %v759_v42 = vld [vmem:[%s3886_s1 + $0x50] sm:$0xff]  ;;  %v768_v43 = vld [vmem:[%s3886_s1 + $0x98] sm:$0xff] }
  0xd9   : > { %842 = vmatpush.msra.mxu1 %v772_v35  ;;  %2547 = vmatpush.msra.mxu3 %v772_v35  ;;  %v758_v44 = vld [vmem:[%s3886_s1 + $0x48] sm:$0xff]  ;;  %v767_v45 = vld [vmem:[%s3886_s1 + $0x90] sm:$0xff]  ;;  %v757_v46 = vld [vmem:[%s3886_s1 + $0x40] sm:$0xff] }
  0xda   : > { %798 = vmatpush.msra.mxu0 %v762_v36  ;;  %2532 = vmatpush.msra.mxu2 %v762_v36  ;;  %v766_v47 = vld [vmem:[%s3886_s1 + $0x88] sm:$0xff]  ;;  %v756_v48 = vld [vmem:[%s3886_s1 + $0x38] sm:$0xff]  ;;  %v765_v49 = vld [vmem:[%s3886_s1 + $0x80] sm:$0xff] }
  0xdb   : > { %843 = vmatpush.msra.mxu1 %v771_v37  ;;  %2548 = vmatpush.msra.mxu3 %v771_v37  ;;  %v755_v50 = vld [vmem:[%s3886_s1 + $0x30] sm:$0xff]  ;;  %v736_v51 = vld [vmem:[%s3885_s0 + $0x8] sm:$0xff]  ;;  %v753_v53 = vld [vmem:[%s3886_s1 + $0x20] sm:$0xff] }
  0xdc   : > { %799 = vmatpush.msra.mxu0 %v761_v38  ;;  %2533 = vmatpush.msra.mxu2 %v761_v38  ;;  %v754_v52 = vld [vmem:[%s3886_s1 + $0x28] sm:$0xff]  ;;  %v752_v54 = vld [vmem:[%s3886_s1 + $0x18] sm:$0xff]  ;;  %v751_v56 = vld [vmem:[%s3886_s1 + $0x10] sm:$0xff]  ;;  %v2620_v25 = vpop.eup %2619 }
  0xdd   : > { %844 = vmatpush.msra.mxu1 %v770_v39  ;;  %2549 = vmatpush.msra.mxu3 %v770_v39  ;;  %v746_v55 = vld [vmem:[%s3885_s0 + $0x58] sm:$0xff]  ;;  %v750_v58 = vld [vmem:[%s3886_s1 + $0x8] sm:$0xff]  ;;  %v749_v59 = vld [vmem:[%s3886_s1] sm:$0xff]  ;;  %v887_v31 = vmul.f32 50.0, %v2620_v25  ;;  %vm891_vm2 = vweird.f32 %v2620_v25 }
  0xde   : > { %800 = vmatpush.msra.mxu0 %v760_v40  ;;  %2534 = vmatpush.msra.mxu2 %v760_v40  ;;  %v738_v57 = vld [vmem:[%s3885_s0 + $0x18] sm:$0xff]  ;;  %v735_v60 = vld [vmem:[%s3885_s0] sm:$0xff]  ;;  %v748_v62 = vld [vmem:[%s3885_s0 + $0x68] sm:$0x3] }
  0xdf   : > { %845 = vmatpush.msra.mxu1 %v769_v41  ;;  %2550 = vmatpush.msra.mxu3 %v769_v41  ;;  %v739_v61 = vld [vmem:[%s3885_s0 + $0x20] sm:$0xff]  ;;  %v740_v63 = vld [vmem:[%s3885_s0 + $0x28] sm:$0xff]  ;;  %v737_v0 = vld [vmem:[%s3885_s0 + $0x10] sm:$0xff]  ;;  %v888_v37 = vsub.f32 1.0, %v887_v31 }
  0xe0   : > { %801 = vmatpush.msra.mxu0 %v759_v42  ;;  %2535 = vmatpush.msra.mxu2 %v759_v42  ;;  %v741_v1 = vld [vmem:[%s3885_s0 + $0x30] sm:$0xff]  ;;  %v742_v2 = vld [vmem:[%s3885_s0 + $0x38] sm:$0xff]  ;;  %v743_v3 = vld [vmem:[%s3885_s0 + $0x40] sm:$0xff] }
  0xe1   : > { %846 = vmatpush.msra.mxu1 %v768_v43  ;;  %2551 = vmatpush.msra.mxu3 %v768_v43  ;;  %v744_v4 = vld [vmem:[%s3885_s0 + $0x48] sm:$0xff]  ;;  %v745_v5 = vld [vmem:[%s3885_s0 + $0x50] sm:$0xff]  ;;  %v747_v6 = vld [vmem:[%s3885_s0 + $0x60] sm:$0x3]  ;;  %v889_v40 = vmul.f32 %v2620_v25, %v888_v37 }
  0xe2   : > { %802 = vmatpush.msra.mxu0 %v758_v44  ;;  %2536 = vmatpush.msra.mxu2 %v758_v44  ;;  %v922_v19 = vld [vmem:[%s3887_s2] sm:$0x1] }
  0xe3   : > { %847 = vmatpush.msra.mxu1 %v767_v45  ;;  %2552 = vmatpush.msra.mxu3 %v767_v45  ;;  %v890_v43 = vadd.f32 %v2620_v25, %v889_v40 }
  0xe4   : > { %803 = vmatpush.msra.mxu0 %v757_v46  ;;  %2537 = vmatpush.msra.mxu2 %v757_v46 }
  0xe5   : > { %848 = vmatpush.msra.mxu1 %v766_v47  ;;  %2553 = vmatpush.msra.mxu3 %v766_v47  ;;  %v892_v46 = vsel %vm891_vm2, %v2620_v25, %v890_v43 }
  0xe6   : > { %804 = vmatpush.msra.mxu0 %v756_v48  ;;  %2538 = vmatpush.msra.mxu2 %v756_v48 }
  0xe7   : > { %849 = vmatpush.msra.mxu1 %v765_v49  ;;  %2554 = vmatpush.msra.mxu3 %v765_v49 }
  0xe8   : > { %805 = vmatpush.msra.mxu0 %v755_v50  ;;  %2539 = vmatpush.msra.mxu2 %v755_v50 }
  0xe9   : > { %2399 = vmatmul.msk.f32.vlgmr.msra.gmra.mxu1 %vm774_vm0, %v736_v51  ;;  %2404 = vmatmul.msk.f32.vlgmr.msra.gmra.mxu3 %vm774_vm0, %v746_v55 }
  0xea   : > { %806 = vmatpush.msra.mxu0 %v754_v52  ;;  %2540 = vmatpush.msra.mxu2 %v754_v52 }
  0xec   : > { %807 = vmatpush.msra.mxu0 %v753_v53  ;;  %2541 = vmatpush.msra.mxu2 %v753_v53 }
  0xee   : > { %808 = vmatpush.msra.mxu0 %v752_v54  ;;  %2542 = vmatpush.msra.mxu2 %v752_v54 }
  0xf0   : > { %809 = vmatpush.msra.mxu0 %v751_v56  ;;  %2543 = vmatpush.msra.mxu2 %v751_v56 }
  0xf1   : > { %2400 = vmatmul.msk.f32.gmra.mxu1 %vm774_vm0, %v738_v57  ;;  %2405 = vmatmul.msk.f32.gmra.mxu3 %vm774_vm0, %v748_v62 }
  0xf2   : > { %810 = vmatpush.msra.mxu0 %v750_v58  ;;  %2544 = vmatpush.msra.mxu2 %v750_v58 }
  0xf4   : > { %811 = vmatpush.msra.mxu0 %v749_v59  ;;  %2545 = vmatpush.msra.mxu2 %v749_v59 }
  0xf5   : > { %812 = vmatmul.f32.vlgmr.msra.gmra.mxu0 %v735_v60  ;;  %818 = vmatmul.f32.vlgmr.msra.gmra.mxu2 %v739_v61 }
  0xf9   : > { %2401 = vmatmul.msk.f32.gmra.mxu1 %vm774_vm0, %v740_v63 }
  0xfd   : > { %815 = vmatmul.f32.gmra.mxu0 %v737_v0  ;;  %821 = vmatmul.f32.gmra.mxu2 %v741_v1 }
 0x101   : > { %2402 = vmatmul.msk.f32.gmra.mxu1 %vm774_vm0, %v742_v2 }
 0x105   : > { %824 = vmatmul.f32.gmra.mxu2 %v743_v3 }
 0x109   : > { %2403 = vmatmul.msk.f32.gmra.mxu1 %vm774_vm0, %v744_v4 }
 0x10d   : > { %827 = vmatmul.f32.gmra.mxu2 %v745_v5 }
 0x115   : > { %830 = vmatmul.f32.gmra.mxu2 %v747_v6 }
 0x166   : > { %v851_v7 = vpop.f32.mrf.mxu1 }
 0x16c   : > { %v866_v17 = vpop.f32.mrf.mxu3 }
 0x16e   : > { %v854_v8 = vpop.f32.mrf.mxu1 }
 0x172   : > { %v813_v11 = vpop.f32.mrf.mxu0 }
 0x173   : > { %v852_v18 = vadd.f32 %v851_v7, %v813_v11 }
 0x174   : > { %v869_v30 = vpop.f32.mrf.mxu3 }
 0x176   : > { %v857_v10 = vpop.f32.mrf.mxu1 }
 0x178   : > { %v819_v9 = vpop.f32.mrf.mxu2 }
 0x179   : > { %v858_v23 = vadd.f32 %v857_v10, %v819_v9 }
 0x17a   : > { %v816_v15 = vpop.f32.mrf.mxu0 }
 0x17b   : > { %v855_v16 = vadd.f32 %v854_v8, %v816_v15 }
 0x17d   : > { %v872_v20 = vadd.f32 %v855_v16, %v852_v18 }
 0x17e   : > { %v860_v13 = vpop.f32.mrf.mxu1 }
 0x17f   : > { %v873_v26 = vadd.f32 %v872_v20, %v858_v23 }
 0x180   : > { %v822_v12 = vpop.f32.mrf.mxu2 }
 0x181   : > { %v861_v24 = vadd.f32 %v860_v13, %v822_v12 }
 0x183   : > { %v874_v28 = vadd.f32 %v873_v26, %v861_v24 }
 0x186   : > { %v863_v22 = vpop.f32.mrf.mxu1 }
 0x188   : > { %v825_v14 = vpop.f32.mrf.mxu2 }
 0x189   : > { %v864_v27 = vadd.f32 %v863_v22, %v825_v14 }
 0x18b   : > { %v875_v32 = vadd.f32 %v874_v28, %v864_v27 }
 0x190   : > { %v828_v21 = vpop.f32.mrf.mxu2 }
 0x191   : > { %v867_v29 = vadd.f32 %v866_v17, %v828_v21 }
 0x193   : > { %v876_v35 = vadd.f32 %v875_v32, %v867_v29 }
 0x198   : > { %v831_v33 = vpop.f32.mrf.mxu2 }
 0x199   : > { %v870_v34 = vadd.f32 %v869_v30, %v831_v33 }
 0x19b   : > { %v878_v36 = vsel %vm877_vm1, %v870_v34, 0.0 }
 0x19c   : > { %v879_v38 = vadd.f32 %v878_v36, %v876_v35 }
 0x19e   : > { %v880_v39 = vrot.slane %v879_v38, 4 }
 0x1a0   : > { %v881_v41 = vadd.f32 %v880_v39, %v879_v38 }
 0x1a2   : > { %v882_v42 = vrot.slane %v881_v41, 2 }
 0x1a4   : > { %v883_v44 = vadd.f32 %v882_v42, %v881_v41 }
 0x1a6   : > { %v884_v45 = vrot.slane %v883_v44, 1 }
 0x1a8   : > { %v885_v47 = vadd.f32 %v884_v45, %v883_v44 }
 0x1aa   : > { %v893_v48 = vmul.f32 %v892_v46, %v885_v47 }
 0x1ac   : > { %v894_v49 = vsub.f32 %v852_v18, %v893_v48  ;;  %v895_v50 = vsub.f32 %v855_v16, %v893_v48  ;;  %v896_v51 = vsub.f32 %v858_v23, %v893_v48  ;;  %v897_v52 = vsub.f32 %v861_v24, %v893_v48  ;;  %v2618_v24 = vld [vmem:[%s3888_s3] ss:$0 sm:$0xff] }
 0x1ad   : > { %v898_v55 = vsub.f32 %v864_v27, %v893_v48  ;;  %v900_v58 = vsub.f32 %v870_v34, %v893_v48  ;;  %v899_v59 = vsub.f32 %v867_v29, %v893_v48 }
 0x1ae   : > { %v901_v53 = vmul.f32 %v894_v49, %v894_v49  ;;  %v902_v54 = vmul.f32 %v895_v50, %v895_v50  ;;  %v903_v56 = vmul.f32 %v896_v51, %v896_v51  ;;  %v904_v60 = vmul.f32 %v897_v52, %v897_v52 }
 0x1af   : > { %v905_v62 = vmul.f32 %v898_v55, %v898_v55  ;;  %v907_v0 = vmul.f32 %v900_v58, %v900_v58  ;;  %v906_v1 = vmul.f32 %v899_v59, %v899_v59 }
 0x1b0   : > { %v908_v57 = vadd.f32 %v902_v54, %v901_v53 }
 0x1b1   : > { %v913_v4 = vsel %vm877_vm1, %v907_v0, 0.0 }
 0x1b2   : > { %v909_v61 = vadd.f32 %v908_v57, %v903_v56 }
 0x1b4   : > { %v910_v63 = vadd.f32 %v909_v61, %v904_v60  ;;  %v2688_v60 = vmov 0.0  }
 0x1b5   : > { %1070 = vst [vmem:[#allocation3] sm:$0x3f] %v2688_v60 }
 0x1b6   : > { %v911_v2 = vadd.f32 %v910_v63, %v905_v62 }
 0x1b8   : > { %v912_v3 = vadd.f32 %v911_v2, %v906_v1 }
 0x1ba   : > { %v914_v5 = vadd.f32 %v913_v4, %v912_v3 }
 0x1bc   : > { %v915_v6 = vrot.slane %v914_v5, 4 }
 0x1be   : > { %v916_v7 = vadd.f32 %v915_v6, %v914_v5 }
 0x1c0   : > { %v917_v8 = vrot.slane %v916_v7, 2 }
 0x1c2   : > { %v918_v9 = vadd.f32 %v917_v8, %v916_v7 }
 0x1c4   : > { %v919_v10 = vrot.slane %v918_v9, 1 }
 0x1c6   : > { %v920_v11 = vadd.f32 %v919_v10, %v918_v9 }
 0x1c8   : > { %v921_v12 = vmul.f32 %v920_v11, %v892_v46 }
 0x1ca   : > { %v923_v13 = vadd.f32 0.001, %v921_v12 }
 0x1cc   : > { %2621 = vrsqrt.f32 %v923_v13  ;;  %vm930_vm4 = vweird.f32 %v923_v13 }
 0x1d2   : > { %v2622_v14 = vpop.eup %2621 }
 0x1d3   : > { %v925_v15 = vmul.f32 %v2622_v14, %v923_v13  ;;  %vm931_vm3 = vweird.f32 %v2622_v14 }
 0x1d4   : > { %vm932_vm5 = vmor %vm930_vm4, %vm931_vm3 }
 0x1d5   : > { %v926_v16 = vmul.f32 %v2622_v14, %v925_v15 }
 0x1d7   : > { %v927_v17 = vmul.f32 0.5, %v926_v16 }
 0x1d9   : > { %v928_v18 = vsub.f32 1.5, %v927_v17 }
 0x1db   : > { %v929_v20 = vmul.f32 %v2622_v14, %v928_v18 }
 0x1dd   : > { %v933_v21 = vsel %vm932_vm5, %v2622_v14, %v929_v20 }
 0x1de   : > { %v934_v22 = vmul.f32 %v933_v21, %v922_v19 }
 0x1e0   : > { %v936_v23 = vperm.slane %v934_v22, 0 }
 0x1e2   : > { %v938_v25 = vmul.f32 %v936_v23, %v894_v49  ;;  %v939_v26 = vmul.f32 %v936_v23, %v895_v50  ;;  %v940_v27 = vmul.f32 %v936_v23, %v896_v51  ;;  %v941_v28 = vmul.f32 %v936_v23, %v897_v52 }
 0x1e3   : > { %v942_v29 = vmul.f32 %v936_v23, %v898_v55  ;;  %v943_v30 = vmul.f32 %v936_v23, %v899_v59  ;;  %v944_v31 = vmul.f32 %v936_v23, %v900_v58 }
 0x1e4   : > { %v949_v32 = vadd.f32 %v2618_v24, %v938_v25  ;;  %v950_v33 = vadd.f32 %v2618_v24, %v939_v26  ;;  %v951_v34 = vadd.f32 %v2618_v24, %v940_v27  ;;  %v952_v35 = vadd.f32 %v2618_v24, %v941_v28 }
 0x1e5   : > { %v953_v36 = vadd.f32 %v2618_v24, %v942_v29  ;;  %v954_v37 = vadd.f32 %v2618_v24, %v943_v30  ;;  %v955_v40 = vadd.f32 %v2618_v24, %v944_v31 }
 0x1e6   : > { %v956_v38 = vmax.f32 %v949_v32, 0.0  ;;  %v957_v39 = vmax.f32 %v950_v33, 0.0  ;;  %v958_v41 = vmax.f32 %v951_v34, 0.0  ;;  %v959_v42 = vmax.f32 %v952_v35, 0.0 }
 0x1e7   : > { %v960_v43 = vmax.f32 %v953_v36, 0.0  ;;  %v961_v44 = vmax.f32 %v954_v37, 0.0  ;;  %v962_v45 = vmax.f32 %v955_v40, 0.0 }
 0x1e8   : > { %963 = vst [vmem:[#allocation2] sm:$0x3] %v956_v38 }
 0x1e9   : > { %965 = vst.sshfl [vmem:[#allocation1] sm:$0xff pattern:$0x73625140] %v956_v38 }
 0x1ea   : > { %980 = vst [vmem:[#allocation2 + $0x8] sm:$0x3] %v957_v39 }
 0x1eb   : > { %998 = vst [vmem:[#allocation2 + $0x10] sm:$0x3] %v958_v41 }
 0x1ec   : > { %1016 = vst [vmem:[#allocation2 + $0x18] sm:$0x3] %v959_v42 }
 0x1ed   : > { %1034 = vst [vmem:[#allocation2 + $0x20] sm:$0x3] %v960_v43 }
 0x1ee   : > { %1052 = vst [vmem:[#allocation2 + $0x28] sm:$0x3] %v961_v44 }
 0x1ef   : > { %1069 = vst [vmem:[#allocation2 + $0x30] sm:$0x3] %v962_v45 }
 0x1f0   : > { %v967_v46 = vld [vmem:[#allocation1 + $0x1] ss:$4 sm:$0xff] }
 0x1f1   : > { %969 = vst [vmem:[#allocation2 + $0x2] sm:$0x3] %v967_v46 }
 0x1f2   : > { %970 = vst.sshfl [vmem:[#allocation1] sm:$0xff pattern:$0x73625140] %v956_v38 }
 0x1f9   : > { %v972_v47 = vld [vmem:[#allocation1 + $0x2] ss:$4 sm:$0xff] }
 0x1fa   : > { %974 = vst [vmem:[#allocation2 + $0x4] sm:$0x3] %v972_v47 }
 0x1fb   : > { %975 = vst.sshfl [vmem:[#allocation1] sm:$0xff pattern:$0x73625140] %v956_v38 }
 0x202   : > { %v977_v48 = vld [vmem:[#allocation1 + $0x3] ss:$4 sm:$0xff] }
 0x203   : > { %979 = vst [vmem:[#allocation2 + $0x6] sm:$0x3] %v977_v48 }
 0x204   : > { %982 = vst.sshfl [vmem:[#allocation1] sm:$0xff pattern:$0x73625140] %v957_v39 }
 0x20b   : > { %v984_v49 = vld [vmem:[#allocation1 + $0x1] ss:$4 sm:$0xff] }
 0x20c   : > { %987 = vst [vmem:[#allocation2 + $0xa] sm:$0x3] %v984_v49 }
 0x20d   : > { %988 = vst.sshfl [vmem:[#allocation1] sm:$0xff pattern:$0x73625140] %v957_v39 }
 0x214   : > { %v990_v50 = vld [vmem:[#allocation1 + $0x2] ss:$4 sm:$0xff] }
 0x215   : > { %992 = vst [vmem:[#allocation2 + $0xc] sm:$0x3] %v990_v50 }
 0x216   : > { %993 = vst.sshfl [vmem:[#allocation1] sm:$0xff pattern:$0x73625140] %v957_v39 }
 0x21d   : > { %v995_v51 = vld [vmem:[#allocation1 + $0x3] ss:$4 sm:$0xff] }
 0x21e   : > { %997 = vst [vmem:[#allocation2 + $0xe] sm:$0x3] %v995_v51 }
 0x21f   : > { %1000 = vst.sshfl [vmem:[#allocation1] sm:$0xff pattern:$0x73625140] %v958_v41 }
 0x226   : > { %v1002_v52 = vld [vmem:[#allocation1 + $0x1] ss:$4 sm:$0xff] }
 0x227   : > { %1004 = vst [vmem:[#allocation2 + $0x12] sm:$0x3] %v1002_v52 }
 0x228   : > { %1005 = vst.sshfl [vmem:[#allocation1] sm:$0xff pattern:$0x73625140] %v958_v41 }
 0x22f   : > { %v1007_v53 = vld [vmem:[#allocation1 + $0x2] ss:$4 sm:$0xff] }
 0x230   : > { %1010 = vst [vmem:[#allocation2 + $0x14] sm:$0x3] %v1007_v53 }
 0x231   : > { %1011 = vst.sshfl [vmem:[#allocation1] sm:$0xff pattern:$0x73625140] %v958_v41 }
 0x238   : > { %v1013_v54 = vld [vmem:[#allocation1 + $0x3] ss:$4 sm:$0xff] }
 0x239   : > { %1015 = vst [vmem:[#allocation2 + $0x16] sm:$0x3] %v1013_v54 }
 0x23a   : > { %1018 = vst.sshfl [vmem:[#allocation1] sm:$0xff pattern:$0x73625140] %v959_v42 }
 0x241   : > { %v1020_v55 = vld [vmem:[#allocation1 + $0x1] ss:$4 sm:$0xff] }
 0x242   : > { %1022 = vst [vmem:[#allocation2 + $0x1a] sm:$0x3] %v1020_v55 }
 0x243   : > { %1023 = vst.sshfl [vmem:[#allocation1] sm:$0xff pattern:$0x73625140] %v959_v42 }
 0x24a   : > { %v1025_v56 = vld [vmem:[#allocation1 + $0x2] ss:$4 sm:$0xff] }
 0x24b   : > { %1027 = vst [vmem:[#allocation2 + $0x1c] sm:$0x3] %v1025_v56 }
 0x24c   : > { %1028 = vst.sshfl [vmem:[#allocation1] sm:$0xff pattern:$0x73625140] %v959_v42 }
 0x253   : > { %v1030_v57 = vld [vmem:[#allocation1 + $0x3] ss:$4 sm:$0xff] }
 0x254   : > { %1033 = vst [vmem:[#allocation2 + $0x1e] sm:$0x3] %v1030_v57 }
 0x255   : > { %1036 = vst.sshfl [vmem:[#allocation1] sm:$0xff pattern:$0x73625140] %v960_v43 }
 0x25c   : > { %v1038_v58 = vld [vmem:[#allocation1 + $0x1] ss:$4 sm:$0xff] }
 0x25d   : > { %1040 = vst [vmem:[#allocation2 + $0x22] sm:$0x3] %v1038_v58 }
 0x25e   : > { %1041 = vst.sshfl [vmem:[#allocation1] sm:$0xff pattern:$0x73625140] %v960_v43 }
 0x265   : > { %v1043_v59 = vld [vmem:[#allocation1 + $0x2] ss:$4 sm:$0xff] }
 0x266   : > { %1045 = vst [vmem:[#allocation2 + $0x24] sm:$0x3] %v1043_v59 }
 0x267   : > { %1046 = vst.sshfl [vmem:[#allocation1] sm:$0xff pattern:$0x73625140] %v960_v43 }
 0x26e   : > { %v1048_v61 = vld [vmem:[#allocation1 + $0x3] ss:$4 sm:$0xff] }
 0x26f   : > { %1050 = vst [vmem:[#allocation2 + $0x26] sm:$0x3] %v1048_v61 }
 0x270   : > { %1054 = vst.sshfl [vmem:[#allocation1] sm:$0xff pattern:$0x73625140] %v961_v44 }
 0x277   : > { %v1056_v62 = vld [vmem:[#allocation1 + $0x1] ss:$4 sm:$0xff] }
 0x278   : > { %1058 = vst [vmem:[#allocation2 + $0x2a] sm:$0x3] %v1056_v62 }
 0x279   : > { %1059 = vst.sshfl [vmem:[#allocation1] sm:$0xff pattern:$0x73625140] %v961_v44 }
 0x280   : > { %v1061_v63 = vld [vmem:[#allocation1 + $0x2] ss:$4 sm:$0xff] }
 0x281   : > { %1063 = vst [vmem:[#allocation2 + $0x2c] sm:$0x3] %v1061_v63 }
 0x282   : > { %1064 = vst.sshfl [vmem:[#allocation1] sm:$0xff pattern:$0x73625140] %v961_v44 }
 0x289   : > { %v1066_v0 = vld [vmem:[#allocation1 + $0x3] ss:$4 sm:$0xff] }
 0x28a   : > { %1068 = vst [vmem:[#allocation2 + $0x2e] sm:$0x3] %v1066_v0 }
 0x28b PF: > { %v3282_v1 = vld [vmem:[%s3146_s21 + $0xb4] sm:$0xff]  ;;  %v3288_v3 = vld [vmem:[%s3146_s21 + $0xa8] sm:$0xff]  ;;  %v3300_v9 = vld [vmem:[%s3146_s21 + $0x9c] sm:$0xff]  ;;  %s2410_s14 = smul.u32 10, %s2669_s29  ;;  %vm1797_vm6 = vcmask 1041408   ;;  %vm1799_vm7 = vcmask 1043456  }
 0x28c   : > { %v3285_v2 = vld [vmem:[%s3146_s21 + $0x234] sm:$0xff]  ;;  %v1282_v4 = vunpack.c.l.bf16 %v3282_v1  ;;  %v1279_v6 = vunpack.c.l.bf16 %v3288_v3  ;;  %v3297_v8 = vld [vmem:[%s3146_s21 + $0x228] sm:$0xff]  ;;  %v3308_v13 = vld [vmem:[%s3146_s21 + $0x21c] sm:$0xff]  ;;  %v1276_v15 = vunpack.c.l.bf16 %v3300_v9  ;;  %p2407_p0 = scmp.ne.s32.totalorder %s2669_s29, 4 }
 0x28d   : > { %v1378_v5 = vunpack.c.l.bf16 %v3285_v2  ;;  %v3294_v7 = vld [vmem:[%s3146_s21 + $0x174] sm:$0xff]  ;;  %v1375_v11 = vunpack.c.l.bf16 %v3297_v8  ;;  %v3305_v12 = vld [vmem:[%s3146_s21 + $0x168] sm:$0xff]  ;;  %v1372_v17 = vunpack.c.l.bf16 %v3308_v13  ;;  %v3317_v18 = vld [vmem:[%s3146_s21 + $0x15c] sm:$0xff]  ;;  %s3498_s15 = scalar_lea.vmem [#allocation2], %s2410_s14 }
 0x28e   : > { %v1330_v10 = vunpack.c.l.bf16 %v3294_v7  ;;  %v3311_v14 = vld [vmem:[%s3146_s21 + $0x90] sm:$0xff]  ;;  %1492 = vmatpush.msra.mxu0 %v1282_v4  ;;  %v1327_v16 = vunpack.c.l.bf16 %v3305_v12  ;;  %v1324_v20 = vunpack.c.l.bf16 %v3317_v18  ;;  %v3324_v21 = vld [vmem:[%s3146_s21 + $0x84] sm:$0xff]  ;;  %v3339_v28 = vld [vmem:[%s3146_s21 + $0x78] sm:$0xff] }
 0x28f   : > { %1532 = vmatpush.msra.mxu2 %v1378_v5  ;;  %v3320_v19 = vld [vmem:[%s3146_s21 + $0x210] sm:$0xff]  ;;  %v3330_v23 = vld [vmem:[%s3146_s21 + $0x204] sm:$0xff]  ;;  %v1273_v24 = vunpack.c.l.bf16 %v3311_v14  ;;  %v3342_v29 = vld [vmem:[%s3146_s21 + $0x1f8] sm:$0xff]  ;;  %v1270_v30 = vunpack.c.l.bf16 %v3324_v21  ;;  %v1267_v36 = vunpack.c.l.bf16 %v3339_v28 }
 0x290   : > { %1512 = vmatpush.msra.mxu1 %v1330_v10  ;;  %v3327_v22 = vld [vmem:[%s3146_s21 + $0x150] sm:$0xff]  ;;  %1493 = vmatpush.msra.mxu0 %v1279_v6  ;;  %v1369_v25 = vunpack.c.l.bf16 %v3320_v19  ;;  %v3335_v26 = vld [vmem:[%s3146_s21 + $0x144] sm:$0xff]  ;;  %v1366_v31 = vunpack.c.l.bf16 %v3330_v23  ;;  %v3347_v32 = vld [vmem:[%s3146_s21 + $0x138] sm:$0xff]  ;;  %v1363_v37 = vunpack.c.l.bf16 %v3342_v29 }
 0x291   : > { %1533 = vmatpush.msra.mxu2 %v1375_v11  ;;  %v1321_v27 = vunpack.c.l.bf16 %v3327_v22  ;;  %v1318_v33 = vunpack.c.l.bf16 %v3335_v26  ;;  %v3351_v34 = vld [vmem:[%s3146_s21 + $0x6c] sm:$0xff]  ;;  %v1315_v39 = vunpack.c.l.bf16 %v3347_v32  ;;  %v3363_v40 = vld [vmem:[%s3146_s21 + $0x60] sm:$0xff]  ;;  %v3374_v45 = vld [vmem:[%s3146_s21 + $0x2f4] sm:$0xff] }
 0x292   : > { %1513 = vmatpush.msra.mxu1 %v1327_v16  ;;  %1494 = vmatpush.msra.mxu0 %v1276_v15  ;;  %v3354_v35 = vld [vmem:[%s3146_s21 + $0x1ec] sm:$0xff]  ;;  %v3366_v41 = vld [vmem:[%s3146_s21 + $0x1e0] sm:$0xff]  ;;  %v1264_v42 = vunpack.c.l.bf16 %v3351_v34  ;;  %v3378_v47 = vld [vmem:[%s3146_s21 + $0x54] sm:$0xff]  ;;  %v1426_v49 = vunpack.c.l.bf16 %v3374_v45  ;;  %v1261_v50 = vunpack.c.l.bf16 %v3363_v40 }
 0x293   : > { %1534 = vmatpush.msra.mxu2 %v1372_v17  ;;  %v3359_v38 = vld [vmem:[%s3146_s21 + $0x12c] sm:$0xff]  ;;  %v1360_v43 = vunpack.c.l.bf16 %v3354_v35  ;;  %v3371_v44 = vld [vmem:[%s3146_s21 + $0x120] sm:$0xff]  ;;  %v3381_v48 = vld [vmem:[%s3146_s21 + $0x1d4] sm:$0xff]  ;;  %v1357_v51 = vunpack.c.l.bf16 %v3366_v41  ;;  %v1258_v59 = vunpack.c.l.bf16 %v3378_v47 }
 0x294   : > { %1514 = vmatpush.msra.mxu1 %v1324_v20  ;;  %1495 = vmatpush.msra.mxu0 %v1273_v24  ;;  %v1312_v46 = vunpack.c.l.bf16 %v3359_v38  ;;  %v3387_v52 = vld [vmem:[%s3146_s21 + $0x114] sm:$0xff]  ;;  %v3390_v53 = vld [vmem:[%s3146_s21 + $0x2e8] sm:$0xff]  ;;  %v1309_v54 = vunpack.c.l.bf16 %v3371_v44  ;;  %v3401_v58 = vld [vmem:[%s3146_s21 + $0x2dc] sm:$0xff]  ;;  %v1354_v60 = vunpack.c.l.bf16 %v3381_v48 }
 0x295   : > { %1535 = vmatpush.msra.mxu2 %v1369_v25  ;;  %v3394_v55 = vld [vmem:[%s3146_s21 + $0x48] sm:$0xff]  ;;  %1552 = vmatpush.msra.mxu3 %v1426_v49  ;;  %v1423_v57 = vunpack.c.l.bf16 %v3390_v53  ;;  %v1420_v62 = vunpack.c.l.bf16 %v3401_v58  ;;  %v3410_v63 = vld [vmem:[%s3146_s21 + $0x2d0] sm:$0xff]  ;;  %v1306_v0 = vunpack.c.l.bf16 %v3387_v52  ;;  %v3414_v4 = vld [vmem:[%s3146_s21 + $0x3c] sm:$0xff] }
 0x296   : > { %1515 = vmatpush.msra.mxu1 %v1321_v27  ;;  %1496 = vmatpush.msra.mxu0 %v1270_v30  ;;  %v3397_v56 = vld [vmem:[%s3146_s21 + $0x1c8] sm:$0xff]  ;;  %v3417_v5 = vld [vmem:[%s3146_s21 + $0x1bc] sm:$0xff]  ;;  %v1417_v6 = vunpack.c.l.bf16 %v3410_v63  ;;  %v1255_v10 = vunpack.c.l.bf16 %v3394_v55  ;;  %v3430_v20 = vld [vmem:[%s3146_s21 + $0x30] sm:$0xff]  ;;  %v1252_v30 = vunpack.c.l.bf16 %v3414_v4 }
 0x297   : > { %1536 = vmatpush.msra.mxu2 %v1366_v31  ;;  %3916 = vst [vmem:[#allocation8_spill] sm:$0xff] %v3397_v56  ;;  %v3406_v61 = vld [vmem:[%s3146_s21 + $0x108] sm:$0xff]  ;;  %1553 = vmatpush.msra.mxu3 %v1423_v57  ;;  %v1351_v11 = vunpack.c.l.bf16 %v3397_v56  ;;  %v3423_v15 = vld [vmem:[%s3146_s21 + $0xfc] sm:$0xff]  ;;  %v3433_v24 = vld [vmem:[%s3146_s21 + $0x1b0] sm:$0xff]  ;;  %v1348_v31 = vunpack.c.l.bf16 %v3417_v5 }
 0x298   : > { %1516 = vmatpush.msra.mxu1 %v1318_v33  ;;  %1497 = vmatpush.msra.mxu0 %v1267_v36  ;;  %3917 = vst [vmem:[#allocation9_spill] sm:$0xff] %v3417_v5  ;;  %v3426_v16 = vld [vmem:[%s3146_s21 + $0x2c4] sm:$0xff]  ;;  %v1303_v17 = vunpack.c.l.bf16 %v3406_v61  ;;  %v3437_v27 = vld [vmem:[%s3146_s21 + $0x2b8] sm:$0xff]  ;;  %v3443_v33 = vld [vmem:[%s3146_s21 + $0xf0] sm:$0xff]  ;;  %v1345_v49 = vunpack.c.l.bf16 %v3433_v24 }
 0x299   : > { %1537 = vmatpush.msra.mxu2 %v1363_v37  ;;  %3918 = vst [vmem:[#allocation10_spill] sm:$0xff] %v3433_v24  ;;  %1554 = vmatpush.msra.mxu3 %v1420_v62  ;;  %v1414_v25 = vunpack.c.l.bf16 %v3426_v16  ;;  %v3446_v36 = vld [vmem:[%s3146_s21 + $0x2ac] sm:$0xff]  ;;  %v1300_v37 = vunpack.c.l.bf16 %v3423_v15  ;;  %v3466_v57 = vld [vmem:[%s3146_s21 + $0x18] sm:$0xff]  ;;  %v3516_v56 = vld [vmem:[%s3146_s21 + $0xc0] sm:$0xff] }
 0x29a   : > { %1517 = vmatpush.msra.mxu1 %v1315_v39  ;;  %1498 = vmatpush.msra.mxu0 %v1264_v42  ;;  %3919 = vst [vmem:[#allocation11_spill] sm:$0xff] %v3437_v27  ;;  %v3450_v39 = vld [vmem:[%s3146_s21 + $0x24] sm:$0xff]  ;;  %v3491_v24 = vld [vmem:[%s3146_s21 + $0xcc] sm:$0xff] }
 0x29b   : > { %1538 = vmatpush.msra.mxu2 %v1360_v43  ;;  %3920 = vst [vmem:[#allocation12_spill] sm:$0xff] %v3446_v36  ;;  %v3453_v42 = vld [vmem:[%s3146_s21 + $0x1a4] sm:$0xff]  ;;  %1555 = vmatpush.msra.mxu3 %v1417_v6  ;;  %v1411_v43 = vunpack.c.l.bf16 %v3437_v27  ;;  %v1246_v62 = vunpack.c.l.bf16 %v3450_v39  ;;  %v3475_v6 = vld [vmem:[%s3146_s21 + $0xd8] sm:$0xff] }
 0x29c   : > { %1518 = vmatpush.msra.mxu1 %v1312_v46  ;;  %1499 = vmatpush.msra.mxu0 %v1261_v50  ;;  %3921 = vst [vmem:[#allocation13_spill] sm:$0xff] %v3453_v42  ;;  %v1249_v46 = vunpack.c.l.bf16 %v3430_v20  ;;  %v3459_v50 = vld [vmem:[%s3146_s21 + $0xe4] sm:$0xff]  ;;  %v3512_v27 = vld [vmem:[%s3146_s21 + $0x3b4] sm:$0xff] }
 0x29d   : > { %1539 = vmatpush.msra.mxu2 %v1357_v51  ;;  %v3462_v51 = vld [vmem:[%s3146_s21 + $0x2a0] sm:$0xff]  ;;  %1556 = vmatpush.msra.mxu3 %v1414_v25  ;;  %v3485_v25 = vld [vmem:[%s3146_s21 + $0x18c] sm:$0xff] }
 0x29e   : > { %1519 = vmatpush.msra.mxu1 %v1309_v54  ;;  %1500 = vmatpush.msra.mxu0 %v1258_v59  ;;  %3922 = vst [vmem:[#allocation14_spill] sm:$0xff] %v3462_v51  ;;  %v1297_v54 = vunpack.c.l.bf16 %v3443_v33  ;;  %v3469_v59 = vld [vmem:[%s3146_s21 + $0x198] sm:$0xff]  ;;  %v1336_v5 = vunpack.c.l.bf16 %v3485_v25 }
 0x29f   : > { %1540 = vmatpush.msra.mxu2 %v1354_v60  ;;  %3923 = vst [vmem:[#allocation15_spill] sm:$0xff] %v3469_v59  ;;  %v1408_v60 = vunpack.c.l.bf16 %v3446_v36  ;;  %1557 = vmatpush.msra.mxu3 %v1411_v43  ;;  %v1075_v36 = vld [vmem:[%s3498_s15] sm:$0xff]  ;;  %v1291_v43 = vunpack.c.l.bf16 %v3475_v6 }
 0x2a0   : > { %1520 = vmatpush.msra.mxu1 %v1306_v0  ;;  %1501 = vmatpush.msra.mxu0 %v1255_v10  ;;  %v1342_v0 = vunpack.c.l.bf16 %v3453_v42  ;;  %v3478_v10 = vld [vmem:[%s3146_s21 + $0x294] sm:$0xff]  ;;  %3925 = vst [vmem:[#allocation17_spill] sm:$0xff] %v3485_v25  ;;  %v1339_v42 = vunpack.c.l.bf16 %v3469_v59  ;;  %v3525_v25 = vld [vmem:[%s3146_s21 + $0x3a8] sm:$0xff] }
 0x2a1   : > { %1541 = vmatpush.msra.mxu2 %v1351_v11  ;;  %3924 = vst [vmem:[#allocation16_spill] sm:$0xff] %v3478_v10  ;;  %v1294_v11 = vunpack.c.l.bf16 %v3459_v50  ;;  %1558 = vmatpush.msra.mxu3 %v1408_v60  ;;  %v1402_v59 = vunpack.c.l.bf16 %v3478_v10  ;;  %v1331_v10 = vunpack.c.h.bf16 %v3294_v7  ;;  %v3540_v7 = vld [vmem:[%s3146_s21 + $0x264] sm:$0xff] }
 0x2a2   : > { %1521 = vmatpush.msra.mxu1 %v1303_v17  ;;  %1502 = vmatpush.msra.mxu0 %v1252_v30  ;;  %v3482_v17 = vld [vmem:[%s3146_s21 + $0xc] sm:$0xff]  ;;  %v1405_v30 = vunpack.c.l.bf16 %v3462_v51  ;;  %1479 = vst [vmem:[#allocation1] ss:$4 sm:$0xff] %v1075_v36  ;;  %v3520_v36 = vld [vmem:[%s3146_s21 + $0x27c] sm:$0xff] }
 0x2a3   : > { %1542 = vmatpush.msra.mxu2 %v1348_v31  ;;  %v1243_v31 = vunpack.c.l.bf16 %v3466_v57  ;;  %v1240_v51 = vunpack.c.l.bf16 %v3482_v17  ;;  %3928 = vst [vmem:[#allocation20_spill] sm:$0xff] %v3520_v36 }
 0x2a4   : > { %1522 = vmatpush.msra.mxu1 %v1300_v37  ;;  %1503 = vmatpush.msra.mxu0 %v1249_v46  ;;  %v3494_v37 = vld [vmem:[%s3146_s21 + $0x288] sm:$0xff]  ;;  %v3503_v46 = vld [vmem:[%s3146_s21] sm:$0xff]  ;;  %3929 = vst [vmem:[#allocation21_spill] sm:$0xff] %v3540_v7 }
 0x2a5   : > { %1543 = vmatpush.msra.mxu2 %v1345_v49  ;;  %3926 = vst [vmem:[#allocation18_spill] sm:$0xff] %v3494_v37  ;;  %v3506_v49 = vld [vmem:[%s3146_s21 + $0x180] sm:$0xff]  ;;  %1559 = vmatpush.msra.mxu3 %v1405_v30  ;;  %v1399_v60 = vunpack.c.l.bf16 %v3494_v37  ;;  %v3530_v30 = vld [vmem:[%s3146_s21 + $0x270] sm:$0xff]  ;;  %v1283_v37 = vunpack.c.h.bf16 %v3282_v1  ;;  %v3550_v1 = vld [vmem:[%s3146_s21 + $0x258] sm:$0xff] }
 0x2a6   : > { %1523 = vmatpush.msra.mxu1 %v1297_v54  ;;  %3927 = vst [vmem:[#allocation19_spill] sm:$0xff] %v3506_v49  ;;  %1504 = vmatpush.msra.mxu0 %v1246_v62  ;;  %v1288_v54 = vunpack.c.l.bf16 %v3491_v24  ;;  %v1237_v62 = vunpack.c.l.bf16 %v3503_v46 }
 0x2a7   : > { %1544 = vmatpush.msra.mxu2 %v1342_v0  ;;  %v1333_v0 = vunpack.c.l.bf16 %v3506_v49  ;;  %1560 = vmatpush.msra.mxu3 %v1402_v59  ;;  %v1396_v49 = vunpack.c.l.bf16 %v3520_v36  ;;  %v1393_v59 = vunpack.c.l.bf16 %v3530_v30  ;;  %v1280_v36 = vunpack.c.h.bf16 %v3288_v3 }
 0x2a8   : > { %1524 = vmatpush.msra.mxu1 %v1294_v11  ;;  %1505 = vmatpush.msra.mxu0 %v1243_v31  ;;  %v1474_v11 = vunpack.c.l.bf16 %v3512_v27  ;;  %v3534_v31 = vld [vmem:[%s3146_s21 + $0x39c] sm:$0xff]  ;;  %v1277_v3 = vunpack.c.h.bf16 %v3300_v9  ;;  %v1319_v9 = vunpack.c.h.bf16 %v3335_v26 }
 0x2a9   : > { %1545 = vmatpush.msra.mxu2 %v1339_v42  ;;  %v1285_v42 = vunpack.c.l.bf16 %v3516_v56  ;;  %1561 = vmatpush.msra.mxu3 %v1399_v60  ;;  %v1325_v60 = vunpack.c.h.bf16 %v3317_v18  ;;  %v1322_v18 = vunpack.c.h.bf16 %v3327_v22 }
 0x2aa   : > { %1525 = vmatpush.msra.mxu1 %v1291_v43  ;;  %1506 = vmatpush.msra.mxu0 %v1240_v51  ;;  %v1471_v43 = vunpack.c.l.bf16 %v3525_v25  ;;  %v3544_v51 = vld [vmem:[%s3146_s21 + $0x390] sm:$0xff] }
 0x2ab   : > { %1546 = vmatpush.msra.mxu2 %v1336_v5  ;;  %v1328_v5 = vunpack.c.h.bf16 %v3305_v12  ;;  %1562 = vmatpush.msra.mxu3 %v1396_v49  ;;  %v1390_v12 = vunpack.c.l.bf16 %v3540_v7  ;;  %v1387_v49 = vunpack.c.l.bf16 %v3550_v1  ;;  %v3571_v7 = vld [vmem:[%s3146_s21 + $0x240] sm:$0xff] }
 0x2ac   : > { %1526 = vmatpush.msra.mxu1 %v1288_v54  ;;  %1507 = vmatpush.msra.mxu0 %v1237_v62  ;;  %v1468_v54 = vunpack.c.l.bf16 %v3534_v31  ;;  %v3554_v62 = vld [vmem:[%s3146_s21 + $0x384] sm:$0xff]  ;;  %v1381_v26 = vunpack.c.l.bf16 %v3571_v7 }
 0x2ad   : > { %1547 = vmatpush.msra.mxu2 %v1333_v0  ;;  %v1076_v0 = vld [vmem:[%s3498_s15 + $0x8] sm:$0x3]  ;;  %1563 = vmatpush.msra.mxu3 %v1393_v59 }
 0x2ae   : > { %1572 = vmatpush.msrb.mxu0 %v1474_v11  ;;  %1527 = vmatpush.msra.mxu1 %v1285_v42  ;;  %v3561_v11 = vld [vmem:[%s3146_s21 + $0x24c] sm:$0xff]  ;;  %1481 = vst [vmem:[#allocation1 + $0x20] ss:$4 sm:$0xff] %v1076_v0  ;;  %v3565_v42 = vld [vmem:[%s3146_s21 + $0x378] sm:$0xff]  ;;  %v1313_v0 = vunpack.c.h.bf16 %v3359_v38  ;;  %v1262_v38 = vunpack.c.h.bf16 %v3363_v40  ;;  %v1370_v40 = vunpack.c.h.bf16 %v3320_v19  ;;  %v1253_v19 = vunpack.c.h.bf16 %v3414_v4 }
 0x2af   : > { %1612 = vmatpush.msrb.mxu2 %v1331_v10  ;;  %v1465_v10 = vunpack.c.l.bf16 %v3544_v51  ;;  %1564 = vmatpush.msra.mxu3 %v1390_v12  ;;  %v1384_v22 = vunpack.c.l.bf16 %v3561_v11  ;;  %v1459_v59 = vunpack.c.l.bf16 %v3565_v42  ;;  %v1268_v12 = vunpack.c.h.bf16 %v3339_v28 }
 0x2b0   : > { %1573 = vmatpush.msrb.mxu0 %v1471_v43  ;;  %1592 = vmatpush.msrb.mxu1 %v1283_v37  ;;  %v1462_v37 = vunpack.c.l.bf16 %v3554_v62  ;;  %v1274_v43 = vunpack.c.h.bf16 %v3311_v14  ;;  %v1316_v14 = vunpack.c.h.bf16 %v3347_v32  ;;  %v1376_v28 = vunpack.c.h.bf16 %v3297_v8 }
 0x2b1   : > { %1613 = vmatpush.msrb.mxu2 %v1328_v5  ;;  %v3575_v5 = vld [vmem:[%s3146_s21 + $0x36c] sm:$0xff]  ;;  %1565 = vmatpush.msra.mxu3 %v1387_v49  ;;  %v1295_v4 = vunpack.c.h.bf16 %v3459_v50 }
 0x2b2   : > { %1574 = vmatpush.msrb.mxu0 %v1468_v54  ;;  %1593 = vmatpush.msrb.mxu1 %v1280_v36  ;;  %v1271_v36 = vunpack.c.h.bf16 %v3324_v21  ;;  %v3582_v54 = vld [vmem:[%s3146_s21 + $0x360] sm:$0xff]  ;;  %v1379_v21 = vunpack.c.h.bf16 %v3285_v2  ;;  %v3596_v49 = vld [vmem:[%s3146_s21 + $0x348] sm:$0xff] }
 0x2b3   : > { %1614 = vmatpush.msrb.mxu2 %v1325_v60  ;;  %v1456_v60 = vunpack.c.l.bf16 %v3575_v5  ;;  %1566 = vmatpush.msra.mxu3 %v1384_v22  ;;  %v1453_v32 = vunpack.c.l.bf16 %v3582_v54  ;;  %v1447_v8 = vunpack.c.l.bf16 %v3596_v49  ;;  %v3610_v22 = vld [vmem:[%s3146_s21 + $0x330] sm:$0xff] }
 0x2b4   : > { %1575 = vmatpush.msrb.mxu0 %v1465_v10  ;;  %1594 = vmatpush.msrb.mxu1 %v1277_v3  ;;  %v3589_v10 = vld [vmem:[%s3146_s21 + $0x354] sm:$0xff]  ;;  %v1265_v3 = vunpack.c.h.bf16 %v3351_v34  ;;  %v1373_v34 = vunpack.c.h.bf16 %v3308_v13 }
 0x2b5   : > { %1615 = vmatpush.msrb.mxu2 %v1322_v18  ;;  %v1310_v18 = vunpack.c.h.bf16 %v3371_v44  ;;  %1567 = vmatpush.msra.mxu3 %v1381_v26  ;;  %v1450_v2 = vunpack.c.l.bf16 %v3589_v10  ;;  %v1259_v44 = vunpack.c.h.bf16 %v3378_v47  ;;  %v1441_v47 = vunpack.c.l.bf16 %v3610_v22  ;;  %v3625_v26 = vld [vmem:[%s3146_s21 + $0x318] sm:$0xff] }
 0x2b6   : > { %1576 = vmatpush.msrb.mxu0 %v1462_v37  ;;  %1595 = vmatpush.msrb.mxu1 %v1274_v43  ;;  %v1307_v37 = vunpack.c.h.bf16 %v3387_v52  ;;  %v3603_v43 = vld [vmem:[%s3146_s21 + $0x33c] sm:$0xff]  ;;  %v1256_v52 = vunpack.c.h.bf16 %v3394_v55 }
 0x2b7   : > { %1616 = vmatpush.msrb.mxu2 %v1319_v9  ;;  %1632 = vmatpush.msrb.mxu3 %v1379_v21  ;;  %v1304_v9 = vunpack.c.h.bf16 %v3406_v61  ;;  %v1444_v13 = vunpack.c.l.bf16 %v3603_v43  ;;  %v3621_v61 = vld.sshfl [vmem:[#allocation1] sm:$0xff pattern:$0x73625140]  ;;  %v1247_v21 = vunpack.c.h.bf16 %v3450_v39  ;;  %v1108_v39 = vld [vmem:[%s3146_s21 + $0xbc] sm:$0xf] }
 0x2b8   : > { %1577 = vmatpush.msrb.mxu0 %v1459_v59  ;;  %1596 = vmatpush.msrb.mxu1 %v1271_v36  ;;  %v1301_v59 = vunpack.c.h.bf16 %v3423_v15  ;;  %v3617_v36 = vld [vmem:[%s3146_s21 + $0x324] sm:$0xff]  ;;  %v1250_v15 = vunpack.c.h.bf16 %v3430_v20  ;;  %v1292_v20 = vunpack.c.h.bf16 %v3475_v6  ;;  %v1364_v6 = vunpack.c.h.bf16 %v3342_v29  ;;  %v1106_v29 = vld [vmem:[%s3146_s21 + $0xb0] sm:$0xf] }
 0x2b9   : > { %1617 = vmatpush.msrb.mxu2 %v1316_v14  ;;  %1633 = vmatpush.msrb.mxu3 %v1376_v28  ;;  %v1298_v14 = vunpack.c.h.bf16 %v3443_v33  ;;  %v1438_v55 = vunpack.c.l.bf16 %v3617_v36  ;;  %v1367_v33 = vunpack.c.h.bf16 %v3330_v23  ;;  %v1244_v23 = vunpack.c.h.bf16 %v3466_v57 }
 0x2ba   : > { %1578 = vmatpush.msrb.mxu0 %v1456_v60  ;;  %1597 = vmatpush.msrb.mxu1 %v1268_v12  ;;  %v3629_v60 = vld.sshfl [vmem:[#allocation1 + $0x18] sm:$0xff pattern:$0x73625140]  ;;  %v3633_v12 = vld [vmem:[%s3146_s21 + $0x30c] sm:$0xff]  ;;  %v1286_v57 = vunpack.c.h.bf16 %v3516_v56  ;;  %v1104_v56 = vld [vmem:[%s3146_s21 + $0xa4] sm:$0xf] }
 0x2bb   : > { %1618 = vmatpush.msrb.mxu2 %v1313_v0  ;;  %1634 = vmatpush.msrb.mxu3 %v1373_v34  ;;  %v1435_v0 = vunpack.c.l.bf16 %v3625_v26  ;;  %v1432_v50 = vunpack.c.l.bf16 %v3633_v12  ;;  %v1238_v34 = vunpack.c.h.bf16 %v3503_v46  ;;  %v1421_v46 = vunpack.c.h.bf16 %v3401_v58 }
 0x2bc   : > { %1579 = vmatpush.msrb.mxu0 %v1453_v32  ;;  %1598 = vmatpush.msrb.mxu1 %v1265_v3  ;;  %v3641_v32 = vld [vmem:[%s3146_s21 + $0x300] sm:$0xff]  ;;  %v3646_v3 = vld.sshfl [vmem:[#allocation1 + $0x8] sm:$0xff pattern:$0x73625140] }
 0x2bd   : > { %1619 = vmatpush.msrb.mxu2 %v1310_v18  ;;  %1635 = vmatpush.msrb.mxu3 %v1370_v40  ;;  %v1289_v18 = vunpack.c.h.bf16 %v3491_v24  ;;  %v1429_v28 = vunpack.c.l.bf16 %v3641_v32  ;;  %v1427_v24 = vunpack.c.h.bf16 %v3374_v45  ;;  %v1281_v45 = vunpack.c.l.bf16 %v1106_v29 }
 0x2be   : > { %1580 = vmatpush.msrb.mxu0 %v1450_v2  ;;  %1599 = vmatpush.msrb.mxu1 %v1262_v38  ;;  %v3652_v2 = vld.sshfl [vmem:[#allocation1 + $0x10] sm:$0xff pattern:$0x73625140]  ;;  %v1241_v38 = vunpack.c.h.bf16 %v3482_v17  ;;  %v1424_v17 = vunpack.c.h.bf16 %v3390_v53  ;;  %v1472_v40 = vunpack.c.h.bf16 %v3525_v25  ;;  %v1278_v53 = vunpack.c.l.bf16 %v1104_v56 }
 0x2bf   : > { %1620 = vmatpush.msrb.mxu2 %v1307_v37  ;;  %1508 = vmatmul.f32.vlgmr.msra.gmra.mxu0 %v3621_v61  ;;  %v1284_v37 = vunpack.c.l.bf16 %v1108_v39  ;;  %v1355_v25 = vunpack.c.h.bf16 %v3381_v48  ;;  %v1096_v48 = vld [vmem:[%s3146_s21 + $0x74] sm:$0xf] }
 0x2c0   : > { %1581 = vmatpush.msrb.mxu0 %v1447_v8  ;;  %1600 = vmatpush.msrb.mxu1 %v1259_v44  ;;  %v1361_v8 = vunpack.c.h.bf16 %v3354_v35  ;;  %v1475_v44 = vunpack.c.h.bf16 %v3512_v27  ;;  %v1102_v35 = vld [vmem:[%s3146_s21 + $0x98] sm:$0xf]  ;;  %v1418_v27 = vunpack.c.h.bf16 %v3410_v63  ;;  %v1098_v63 = vld [vmem:[%s3146_s21 + $0x80] sm:$0xf]  ;;  %v3935_v39 = vld [vmem:[#allocation14_spill] sm:$0xff] }
 0x2c1   : > { %1621 = vmatpush.msrb.mxu2 %v1304_v9  ;;  %1568 = vmatmul.f32.vlgmr.msra.gmra.mxu3 %v3629_v60  ;;  %v1358_v9 = vunpack.c.h.bf16 %v3366_v41  ;;  %v1100_v41 = vld [vmem:[%s3146_s21 + $0x8c] sm:$0xf]  ;;  %v1275_v58 = vunpack.c.l.bf16 %v1102_v35  ;;  %v3939_v56 = vld [vmem:[#allocation18_spill] sm:$0xff] }
 0x2c2   : > { %1582 = vmatpush.msrb.mxu0 %v1444_v13  ;;  %1601 = vmatpush.msrb.mxu1 %v1256_v52  ;;  %v1469_v13 = vunpack.c.h.bf16 %v3534_v31  ;;  %v3671_v52 = vld.sshfl [vmem:[#allocation1 + $0x20] sm:$0xff pattern:$0x73625140]  ;;  %v1272_v31 = vunpack.c.l.bf16 %v1100_v41  ;;  %v1086_v41 = vld [vmem:[%s3146_s21 + $0x38] sm:$0xf] }
 0x2c3   : > { %1622 = vmatpush.msrb.mxu2 %v1301_v59  ;;  %1636 = vmatpush.msrb.mxu3 %v1367_v33  ;;  %v1415_v59 = vunpack.c.h.bf16 %v3426_v16  ;;  %v1269_v16 = vunpack.c.l.bf16 %v1098_v63  ;;  %v1445_v63 = vunpack.c.h.bf16 %v3603_v43 }
 0x2c4   : > { %1583 = vmatpush.msrb.mxu0 %v1441_v47  ;;  %1602 = vmatpush.msrb.mxu1 %v1253_v19  ;;  %v1466_v47 = vunpack.c.h.bf16 %v3544_v51  ;;  %v3930_v19 = vld [vmem:[#allocation8_spill] sm:$0xff]  ;;  %v3932_v51 = vld [vmem:[#allocation9_spill] sm:$0xff] }
 0x2c5   : > { %1623 = vmatpush.msrb.mxu2 %v1298_v14  ;;  %1528 = vmatmul.f32.vlgmr.msra.gmra.mxu1 %v3646_v3  ;;  %v1352_v14 = vunpack.c.h.bf16 %v3930_v19  ;;  %v1349_v33 = vunpack.c.h.bf16 %v3932_v51  ;;  %v3943_v19 = vld [vmem:[#allocation21_spill] sm:$0xff] }
 0x2c6   : > { %1584 = vmatpush.msrb.mxu0 %v1438_v55  ;;  %1603 = vmatpush.msrb.mxu1 %v1250_v15  ;;  %v3931_v55 = vld [vmem:[#allocation11_spill] sm:$0xff] }
 0x2c7   : > { %1624 = vmatpush.msrb.mxu2 %v1295_v4  ;;  %1637 = vmatpush.msrb.mxu3 %v1364_v6  ;;  %v1412_v15 = vunpack.c.h.bf16 %v3931_v55  ;;  %v1463_v4 = vunpack.c.h.bf16 %v3554_v62  ;;  %v1266_v62 = vunpack.c.l.bf16 %v1096_v48  ;;  %v1406_v6 = vunpack.c.h.bf16 %v3935_v39  ;;  %v1138_v55 = vld [vmem:[%s3146_s21 + $0x170] sm:$0xf]  ;;  %v1136_v48 = vld [vmem:[%s3146_s21 + $0x164] sm:$0xf] }
 0x2c8   : > { %1585 = vmatpush.msrb.mxu0 %v1435_v0  ;;  %1604 = vmatpush.msrb.mxu1 %v1247_v21  ;;  %v3933_v0 = vld [vmem:[#allocation12_spill] sm:$0xff]  ;;  %v1329_v51 = vunpack.c.l.bf16 %v1138_v55 }
 0x2c9   : > { %1625 = vmatpush.msrb.mxu2 %v1292_v20  ;;  %1638 = vmatpush.msrb.mxu3 %v1361_v8  ;;  %v1409_v21 = vunpack.c.h.bf16 %v3933_v0  ;;  %v1460_v20 = vunpack.c.h.bf16 %v3565_v42  ;;  %v1090_v8 = vld [vmem:[%s3146_s21 + $0x50] sm:$0xf] }
 0x2ca   : > { %1586 = vmatpush.msrb.mxu0 %v1432_v50  ;;  %1605 = vmatpush.msrb.mxu1 %v1244_v23  ;;  %v1094_v50 = vld [vmem:[%s3146_s21 + $0x68] sm:$0xf]  ;;  %v3934_v23 = vld [vmem:[#allocation10_spill] sm:$0xff] }
 0x2cb   : > { %1626 = vmatpush.msrb.mxu2 %v1289_v18  ;;  %1639 = vmatpush.msrb.mxu3 %v1358_v9  ;;  %v1346_v18 = vunpack.c.h.bf16 %v3934_v23  ;;  %v1263_v42 = vunpack.c.l.bf16 %v1094_v50  ;;  %v1451_v9 = vunpack.c.h.bf16 %v3589_v10  ;;  %v1326_v50 = vunpack.c.l.bf16 %v1136_v48  ;;  %v1132_v23 = vld [vmem:[%s3146_s21 + $0x14c] sm:$0xf]  ;;  %v1120_v48 = vld [vmem:[%s3146_s21 + $0x104] sm:$0xf] }
 0x2cc   : > { %1548 = vmatmul.f32.vlgmr.msra.gmra.mxu2 %v3652_v2  ;;  %1587 = vmatpush.msrb.mxu0 %v1429_v28  ;;  %v1457_v28 = vunpack.c.h.bf16 %v3575_v5 }
 0x2cd   : > { %1606 = vmatpush.msrb.mxu1 %v1241_v38  ;;  %1627 = vmatpush.msrb.mxu2 %v1286_v57  ;;  %v1092_v38 = vld [vmem:[%s3146_s21 + $0x5c] sm:$0xf]  ;;  %v3936_v57 = vld [vmem:[#allocation13_spill] sm:$0xff] }
 0x2ce   : > { %1652 = vmatpush.msra.mxu0 %v1427_v24  ;;  %1640 = vmatpush.msrb.mxu3 %v1355_v25  ;;  %v1343_v24 = vunpack.c.h.bf16 %v3936_v57  ;;  %v1260_v5 = vunpack.c.l.bf16 %v1092_v38  ;;  %v1130_v38 = vld [vmem:[%s3146_s21 + $0x140] sm:$0xf]  ;;  %v1170_v57 = vld [vmem:[%s3146_s21 + $0x230] sm:$0xf] }
 0x2cf   : > { %1692 = vmatpush.msra.mxu2 %v1284_v37  ;;  %1607 = vmatpush.msrb.mxu1 %v1238_v34  ;;  %v3937_v37 = vld [vmem:[#allocation16_spill] sm:$0xff]  ;;  %v1454_v34 = vunpack.c.h.bf16 %v3582_v54  ;;  %v1257_v54 = vunpack.c.l.bf16 %v1090_v8  ;;  %v1128_v8 = vld [vmem:[%s3146_s21 + $0x134] sm:$0xf] }
 0x2d0   : > { %1653 = vmatpush.msra.mxu0 %v1424_v17  ;;  %1641 = vmatpush.msrb.mxu3 %v1352_v14  ;;  %v1403_v29 = vunpack.c.h.bf16 %v3937_v37  ;;  %v3938_v17 = vld [vmem:[#allocation15_spill] sm:$0xff]  ;;  %v1391_v14 = vunpack.c.h.bf16 %v3943_v19  ;;  %v1162_v19 = vld [vmem:[%s3146_s21 + $0x200] sm:$0xf] }
 0x2d1   : > { %1672 = vmatpush.msra.mxu1 %v1475_v44  ;;  %1693 = vmatpush.msra.mxu2 %v1281_v45  ;;  %v1340_v44 = vunpack.c.h.bf16 %v3938_v17  ;;  %v1400_v45 = vunpack.c.h.bf16 %v3939_v56  ;;  %v1204_v37 = vld [vmem:[%s3146_s21 + $0x2fc] sm:$0xf]  ;;  %v1377_v17 = vunpack.c.l.bf16 %v1170_v57  ;;  %v1232_v56 = vld [vmem:[%s3146_s21 + $0x3a4] sm:$0xf] }
 0x2d2   : > { %1654 = vmatpush.msra.mxu0 %v1421_v46  ;;  %1642 = vmatpush.msrb.mxu3 %v1349_v33  ;;  %v1088_v46 = vld [vmem:[%s3146_s21 + $0x44] sm:$0xf]  ;;  %v1080_v33 = vld [vmem:[%s3146_s21 + $0x14] sm:$0xf]  ;;  %v1220_v57 = vld [vmem:[%s3146_s21 + $0x35c] sm:$0xf] }
 0x2d3   : > { %1673 = vmatpush.msra.mxu1 %v1472_v40  ;;  %1694 = vmatpush.msra.mxu2 %v1278_v53  ;;  %v3940_v40 = vld [vmem:[#allocation17_spill] sm:$0xff]  ;;  %v3941_v53 = vld [vmem:[#allocation20_spill] sm:$0xff]  ;;  %v1254_v10 = vunpack.c.l.bf16 %v1088_v46  ;;  %v1166_v46 = vld [vmem:[%s3146_s21 + $0x218] sm:$0xf] }
 0x2d4   : > { %1588 = vmatmul.f32.vlgmr.msrb.gmra.mxu0 %v3671_v52  ;;  %1643 = vmatpush.msrb.mxu3 %v1346_v18  ;;  %v1337_v35 = vunpack.c.h.bf16 %v3940_v40  ;;  %v1382_v18 = vunpack.c.h.bf16 %v3571_v7 }
 0x2d5   : > { %1655 = vmatpush.msra.mxu0 %v1418_v27  ;;  %1674 = vmatpush.msra.mxu1 %v1469_v13  ;;  %v1397_v27 = vunpack.c.h.bf16 %v3941_v53  ;;  %v1448_v13 = vunpack.c.h.bf16 %v3596_v49  ;;  %v1251_v49 = vunpack.c.l.bf16 %v1086_v41  ;;  %v1230_v53 = vld [vmem:[%s3146_s21 + $0x398] sm:$0xf]  ;;  %v1124_v41 = vld [vmem:[%s3146_s21 + $0x11c] sm:$0xf] }
 0x2d6   : > { %1695 = vmatpush.msra.mxu2 %v1275_v58  ;;  %1644 = vmatpush.msrb.mxu3 %v1343_v24  ;;  %v3942_v58 = vld [vmem:[#allocation19_spill] sm:$0xff] }
 0x2d7   : > { %1656 = vmatpush.msra.mxu0 %v1415_v59  ;;  %1675 = vmatpush.msra.mxu1 %v1466_v47  ;;  %v1334_v25 = vunpack.c.h.bf16 %v3942_v58  ;;  %v1394_v59 = vunpack.c.h.bf16 %v3530_v30  ;;  %v1140_v47 = vld [vmem:[%s3146_s21 + $0x17c] sm:$0xf] }
 0x2d8   : > { %1696 = vmatpush.msra.mxu2 %v1272_v31  ;;  %1645 = vmatpush.msrb.mxu3 %v1340_v44  ;;  %v1084_v31 = vld [vmem:[%s3146_s21 + $0x2c] sm:$0xf]  ;;  %v1332_v30 = vunpack.c.l.bf16 %v1140_v47  ;;  %v1202_v44 = vld [vmem:[%s3146_s21 + $0x2f0] sm:$0xf] }
 0x2d9   : > { %1657 = vmatpush.msra.mxu0 %v1412_v15  ;;  %1676 = vmatpush.msra.mxu1 %v1463_v4  ;;  %v1442_v15 = vunpack.c.h.bf16 %v3610_v22  ;;  %v1082_v4 = vld [vmem:[%s3146_s21 + $0x20] sm:$0xf]  ;;  %v1248_v43 = vunpack.c.l.bf16 %v1084_v31  ;;  %v1439_v22 = vunpack.c.h.bf16 %v3617_v36  ;;  %v1242_v36 = vunpack.c.l.bf16 %v1080_v33  ;;  %v1228_v47 = vld [vmem:[%s3146_s21 + $0x38c] sm:$0xf]  ;;  %v1122_v31 = vld [vmem:[%s3146_s21 + $0x110] sm:$0xf] }
 0x2da   : > { %1697 = vmatpush.msra.mxu2 %v1269_v16  ;;  %1646 = vmatpush.msrb.mxu3 %v1337_v35  ;;  %v1388_v16 = vunpack.c.h.bf16 %v3550_v1  ;;  %v1245_v0 = vunpack.c.l.bf16 %v1082_v4  ;;  %v1078_v1 = vld [vmem:[%s3146_s21 + $0x8] sm:$0xf]  ;;  %v1200_v35 = vld [vmem:[%s3146_s21 + $0x2e4] sm:$0xf]  ;;  %v1365_v33 = vunpack.c.l.bf16 %v1162_v19 }
 0x2db   : > { %1658 = vmatpush.msra.mxu0 %v1409_v21  ;;  %1677 = vmatpush.msra.mxu1 %v1460_v20  ;;  %v1134_v21 = vld [vmem:[%s3146_s21 + $0x158] sm:$0xf]  ;;  %v1385_v20 = vunpack.c.h.bf16 %v3561_v11  ;;  %v1172_v11 = vld [vmem:[%s3146_s21 + $0x23c] sm:$0xf] }
 0x2dc   : > { %1698 = vmatpush.msra.mxu2 %v1266_v62  ;;  %1647 = vmatpush.msrb.mxu3 %v1334_v25  ;;  %v1436_v62 = vunpack.c.h.bf16 %v3625_v26  ;;  %v1323_v39 = vunpack.c.l.bf16 %v1134_v21  ;;  %v1239_v26 = vunpack.c.l.bf16 %v1078_v1  ;;  %v1380_v7 = vunpack.c.l.bf16 %v1172_v11  ;;  %v1158_v1 = vld [vmem:[%s3146_s21 + $0x1e8] sm:$0xf] }
 0x2dd   : > { %1659 = vmatpush.msra.mxu0 %v1406_v6  ;;  %1678 = vmatpush.msra.mxu1 %v1457_v28  ;;  %v1236_v6 = vld [vmem:[%s3146_s21 + $0x3bc] sm:$0xf]  ;;  %v1433_v28 = vunpack.c.h.bf16 %v3633_v12  ;;  %v1430_v12 = vunpack.c.h.bf16 %v3641_v32  ;;  %v1371_v25 = vunpack.c.l.bf16 %v1166_v46  ;;  %v1186_v46 = vld [vmem:[%s3146_s21 + $0x290] sm:$0xf] }
 0x2de   : > { %1699 = vmatpush.msra.mxu2 %v1263_v42  ;;  %1648 = vmatmul.f32.vlgmr.msrb.gmra.mxu3 %v3652_v2  ;;  %v1320_v42 = vunpack.c.l.bf16 %v1132_v23  ;;  %v1476_v24 = vunpack.c.l.bf16 %v1236_v6  ;;  %v1192_v23 = vld [vmem:[%s3146_s21 + $0x2b4] sm:$0xf]  ;;  %v1116_v6 = vld [vmem:[%s3146_s21 + $0xec] sm:$0xf] }
 0x2df   : > { %1660 = vmatpush.msra.mxu0 %v1403_v29  ;;  %1679 = vmatpush.msra.mxu1 %v1454_v34  ;;  %v1234_v29 = vld [vmem:[%s3146_s21 + $0x3b0] sm:$0xf]  ;;  %v1317_v34 = vunpack.c.l.bf16 %v1130_v38  ;;  %v1359_v38 = vunpack.c.l.bf16 %v1158_v1  ;;  %v1176_v1 = vld [vmem:[%s3146_s21 + $0x254] sm:$0xf] }
 0x2e0   : > { %1700 = vmatpush.msra.mxu2 %v1260_v5  ;;  %1712 = vmatpush.msra.mxu3 %v1332_v30  ;;  %v1168_v5 = vld [vmem:[%s3146_s21 + $0x224] sm:$0xf]  ;;  %v1473_v32 = vunpack.c.l.bf16 %v1234_v29  ;;  %v1226_v30 = vld [vmem:[%s3146_s21 + $0x380] sm:$0xf]  ;;  %v1154_v29 = vld [vmem:[%s3146_s21 + $0x1d0] sm:$0xf] }
 0x2e1   : > { %1661 = vmatpush.msra.mxu0 %v1400_v45  ;;  %1680 = vmatpush.msra.mxu1 %v1451_v9  ;;  %v1428_v45 = vunpack.c.l.bf16 %v1204_v37  ;;  %v1126_v9 = vld [vmem:[%s3146_s21 + $0x128] sm:$0xf]  ;;  %v1374_v40 = vunpack.c.l.bf16 %v1168_v5  ;;  %v1114_v37 = vld [vmem:[%s3146_s21 + $0xe0] sm:$0xf]  ;;  %v1218_v5 = vld [vmem:[%s3146_s21 + $0x350] sm:$0xf] }
 0x2e2   : > { %1701 = vmatpush.msra.mxu2 %v1257_v54  ;;  %1608 = vmatmul.f32.vlgmr.msrb.gmra.mxu1 %v3621_v61  ;;  %v1314_v54 = vunpack.c.l.bf16 %v1128_v8  ;;  %v1311_v58 = vunpack.c.l.bf16 %v1126_v9  ;;  %v1188_v8 = vld [vmem:[%s3146_s21 + $0x29c] sm:$0xf]  ;;  %v1353_v9 = vunpack.c.l.bf16 %v1154_v29 }
 0x2e3   : > { %1662 = vmatpush.msra.mxu0 %v1397_v27  ;;  %1681 = vmatpush.msra.mxu1 %v1448_v13  ;;  %v1425_v27 = vunpack.c.l.bf16 %v1202_v44  ;;  %v1470_v13 = vunpack.c.l.bf16 %v1232_v56  ;;  %v1452_v44 = vunpack.c.l.bf16 %v1220_v57  ;;  %v1112_v56 = vld [vmem:[%s3146_s21 + $0xd4] sm:$0xf] }
 0x2e4   : > { %1702 = vmatpush.msra.mxu2 %v1254_v10  ;;  %1713 = vmatpush.msra.mxu3 %v1329_v51  ;;  %v1164_v10 = vld [vmem:[%s3146_s21 + $0x20c] sm:$0xf]  ;;  %v1305_v51 = vunpack.c.l.bf16 %v1122_v31  ;;  %v1182_v31 = vld [vmem:[%s3146_s21 + $0x278] sm:$0xf] }
 0x2e5   : > { %1628 = vmatmul.f32.vlgmr.msrb.gmra.mxu2 %v3646_v3  ;;  %1663 = vmatpush.msra.mxu0 %v1394_v59  ;;  %v1198_v59 = vld [vmem:[%s3146_s21 + $0x2d8] sm:$0xf]  ;;  %v1368_v55 = vunpack.c.l.bf16 %v1164_v10  ;;  %v1184_v10 = vld [vmem:[%s3146_s21 + $0x284] sm:$0xf] }
 0x2e6   : > { %1682 = vmatpush.msra.mxu1 %v1445_v63  ;;  %1703 = vmatpush.msra.mxu2 %v1251_v49  ;;  %v1422_v63 = vunpack.c.l.bf16 %v1200_v35  ;;  %v1467_v49 = vunpack.c.l.bf16 %v1230_v53  ;;  %v1419_v4 = vunpack.c.l.bf16 %v1198_v59  ;;  %v1449_v35 = vunpack.c.l.bf16 %v1218_v5  ;;  %v1110_v53 = vld [vmem:[%s3146_s21 + $0xc8] sm:$0xf] }
 0x2e7   : > { %1664 = vmatpush.msra.mxu0 %v1391_v14  ;;  %1714 = vmatpush.msra.mxu3 %v1326_v50  ;;  %v1308_v14 = vunpack.c.l.bf16 %v1124_v41  ;;  %v1118_v50 = vld [vmem:[%s3146_s21 + $0xf8] sm:$0xf]  ;;  %v1398_v19 = vunpack.c.l.bf16 %v1184_v10 }
 0x2e8   : > { %1683 = vmatpush.msra.mxu1 %v1442_v15  ;;  %1704 = vmatpush.msra.mxu2 %v1248_v43  ;;  %v1196_v15 = vld [vmem:[%s3146_s21 + $0x2cc] sm:$0xf]  ;;  %v1464_v43 = vunpack.c.l.bf16 %v1228_v47  ;;  %v1287_v47 = vunpack.c.l.bf16 %v1110_v53 }
 0x2e9   : > { %1665 = vmatpush.msra.mxu0 %v1388_v16  ;;  %1715 = vmatpush.msra.mxu3 %v1323_v39  ;;  %v1160_v16 = vld [vmem:[%s3146_s21 + $0x1f4] sm:$0xf]  ;;  %v1416_v21 = vunpack.c.l.bf16 %v1196_v15  ;;  %v1146_v15 = vld [vmem:[%s3146_s21 + $0x1a0] sm:$0xf] }
 0x2ea   : > { %1684 = vmatpush.msra.mxu1 %v1439_v22  ;;  %1705 = vmatpush.msra.mxu2 %v1245_v0  ;;  %v1194_v22 = vld [vmem:[%s3146_s21 + $0x2c0] sm:$0xf]  ;;  %v1224_v0 = vld [vmem:[%s3146_s21 + $0x374] sm:$0xf] }
 0x2eb   : > { %1666 = vmatpush.msra.mxu0 %v1385_v20  ;;  %1716 = vmatpush.msra.mxu3 %v1320_v42  ;;  %v1461_v20 = vunpack.c.l.bf16 %v1226_v30  ;;  %v1413_v39 = vunpack.c.l.bf16 %v1194_v22  ;;  %v1458_v11 = vunpack.c.l.bf16 %v1224_v0  ;;  %v1190_v42 = vld [vmem:[%s3146_s21 + $0x2a8] sm:$0xf]  ;;  %v1180_v30 = vld [vmem:[%s3146_s21 + $0x26c] sm:$0xf]  ;;  %v1341_v22 = vunpack.c.l.bf16 %v1146_v15 }
 0x2ec   : > { %1685 = vmatpush.msra.mxu1 %v1436_v62  ;;  %1706 = vmatpush.msra.mxu2 %v1242_v36  ;;  %v1302_v62 = vunpack.c.l.bf16 %v1120_v48  ;;  %v1362_v36 = vunpack.c.l.bf16 %v1160_v16  ;;  %v1210_v48 = vld [vmem:[%s3146_s21 + $0x320] sm:$0xf]  ;;  %v1392_v0 = vunpack.c.l.bf16 %v1180_v30 }
 0x2ed   : > { %1667 = vmatpush.msra.mxu0 %v1382_v18  ;;  %1717 = vmatpush.msra.mxu3 %v1317_v34  ;;  %v1222_v18 = vld [vmem:[%s3146_s21 + $0x368] sm:$0xf] }
 0x2ee   : > { %1686 = vmatpush.msra.mxu1 %v1433_v28  ;;  %1707 = vmatpush.msra.mxu2 %v1239_v26  ;;  %v1156_v28 = vld [vmem:[%s3146_s21 + $0x1dc] sm:$0xf]  ;;  %v1299_v26 = vunpack.c.l.bf16 %v1118_v50  ;;  %v1142_v50 = vld [vmem:[%s3146_s21 + $0x188] sm:$0xf] }
 0x2ef   : > { %1668 = vmatmul.f32.vlgmr.msra.gmra.mxu0 %v3629_v60  ;;  %1718 = vmatpush.msra.mxu3 %v1314_v54  ;;  %v1356_v34 = vunpack.c.l.bf16 %v1156_v28  ;;  %v1216_v54 = vld [vmem:[%s3146_s21 + $0x344] sm:$0xf] }
 0x2f0   : > { %1732 = vmatpush.msrb.mxu0 %v1380_v7  ;;  %1772 = vmatpush.msrb.mxu2 %v1476_v24  ;;  %v1410_v7 = vunpack.c.l.bf16 %v1192_v23  ;;  %v1455_v24 = vunpack.c.l.bf16 %v1222_v18  ;;  %v1446_v59 = vunpack.c.l.bf16 %v1216_v54  ;;  %v1206_v23 = vld [vmem:[%s3146_s21 + $0x308] sm:$0xf] }
 0x2f1   : > { %1687 = vmatpush.msra.mxu1 %v1430_v12  ;;  %1719 = vmatpush.msra.mxu3 %v1311_v58  ;;  %v1296_v12 = vunpack.c.l.bf16 %v1116_v6  ;;  %v1214_v58 = vld [vmem:[%s3146_s21 + $0x338] sm:$0xf]  ;;  %v1386_v6 = vunpack.c.l.bf16 %v1176_v1  ;;  %v1431_v28 = vunpack.c.l.bf16 %v1206_v23 }
 0x2f2   : > { %1688 = vmatmul.f32.vlgmr.msra.gmra.mxu1 %v3671_v52  ;;  %1733 = vmatpush.msrb.mxu0 %v1377_v17  ;;  %v1407_v17 = vunpack.c.l.bf16 %v1190_v42 }
 0x2f3   : > { %1752 = vmatpush.msrb.mxu1 %v1428_v45  ;;  %1773 = vmatpush.msrb.mxu2 %v1473_v32  ;;  %v1152_v45 = vld [vmem:[%s3146_s21 + $0x1c4] sm:$0xf]  ;;  %v1293_v32 = vunpack.c.l.bf16 %v1114_v37 }
 0x2f4   : > { %1734 = vmatpush.msrb.mxu0 %v1374_v40  ;;  %1720 = vmatpush.msra.mxu3 %v1308_v14  ;;  %v1404_v40 = vunpack.c.l.bf16 %v1188_v8  ;;  %v1350_v41 = vunpack.c.l.bf16 %v1152_v45  ;;  %v1443_v14 = vunpack.c.l.bf16 %v1214_v58 }
 0x2f5   : > { %1753 = vmatpush.msrb.mxu1 %v1425_v27  ;;  %1774 = vmatpush.msrb.mxu2 %v1470_v13  ;;  %v1150_v27 = vld [vmem:[%s3146_s21 + $0x1b8] sm:$0xf]  ;;  %v1290_v13 = vunpack.c.l.bf16 %v1112_v56 }
 0x2f6   : > { %1735 = vmatpush.msrb.mxu0 %v1371_v25  ;;  %1721 = vmatpush.msra.mxu3 %v1305_v51  ;;  %v1401_v25 = vunpack.c.l.bf16 %v1186_v46  ;;  %v1144_v51 = vld [vmem:[%s3146_s21 + $0x194] sm:$0xf] }
 0x2f7   : > { %1754 = vmatpush.msrb.mxu1 %v1422_v63  ;;  %1775 = vmatpush.msrb.mxu2 %v1467_v49  ;;  %v1347_v63 = vunpack.c.l.bf16 %v1150_v27  ;;  %v1148_v49 = vld [vmem:[%s3146_s21 + $0x1ac] sm:$0xf] }
 0x2f8   : > { %1736 = vmatpush.msrb.mxu0 %v1368_v55  ;;  %1722 = vmatpush.msra.mxu3 %v1302_v62  ;;  %v1212_v55 = vld [vmem:[%s3146_s21 + $0x32c] sm:$0xf]  ;;  %v1338_v62 = vunpack.c.l.bf16 %v1144_v51 }
 0x2f9   : > { %1755 = vmatpush.msrb.mxu1 %v1419_v4  ;;  %1776 = vmatpush.msrb.mxu2 %v1464_v43  ;;  %v1344_v4 = vunpack.c.l.bf16 %v1148_v49  ;;  %v1395_v43 = vunpack.c.l.bf16 %v1182_v31  ;;  %v1440_v16 = vunpack.c.l.bf16 %v1212_v55 }
 0x2fa   : > { %1737 = vmatpush.msrb.mxu0 %v1365_v33  ;;  %1723 = vmatpush.msra.mxu3 %v1299_v26  ;;  %v1178_v33 = vld [vmem:[%s3146_s21 + $0x260] sm:$0xf] }
 0x2fb   : > { %1756 = vmatpush.msrb.mxu1 %v1416_v21  ;;  %1777 = vmatpush.msrb.mxu2 %v1461_v20  ;;  %v1208_v21 = vld [vmem:[%s3146_s21 + $0x314] sm:$0xf]  ;;  %v1437_v20 = vunpack.c.l.bf16 %v1210_v48 }
 0x2fc   : > { %1738 = vmatpush.msrb.mxu0 %v1362_v36  ;;  %1724 = vmatpush.msra.mxu3 %v1296_v12  ;;  %v1389_v36 = vunpack.c.l.bf16 %v1178_v33  ;;  %v1434_v18 = vunpack.c.l.bf16 %v1208_v21 }
 0x2fd   : > { %1757 = vmatpush.msrb.mxu1 %v1413_v39  ;;  %1778 = vmatpush.msrb.mxu2 %v1458_v11  ;;  %v1174_v39 = vld [vmem:[%s3146_s21 + $0x248] sm:$0xf]  ;;  %v1335_v11 = vunpack.c.l.bf16 %v1142_v50 }
 0x2fe   : > { %1739 = vmatpush.msrb.mxu0 %v1359_v38  ;;  %1725 = vmatpush.msra.mxu3 %v1293_v32 }
 0x2ff   : > { %1758 = vmatpush.msrb.mxu1 %v1410_v7  ;;  %1779 = vmatpush.msrb.mxu2 %v1455_v24 }
 0x300   : > { %1740 = vmatpush.msrb.mxu0 %v1356_v34  ;;  %1726 = vmatpush.msra.mxu3 %v1290_v13  ;;  %v1071_v13 = vld [vmem:[#allocation3] sm:$0x3f] }
 0x301   : > { %1759 = vmatpush.msrb.mxu1 %v1407_v17  ;;  %1780 = vmatpush.msrb.mxu2 %v1452_v44 }
 0x302   : > { %1741 = vmatpush.msrb.mxu0 %v1353_v9  ;;  %1727 = vmatpush.msra.mxu3 %v1287_v47 }
 0x303   : > { %1760 = vmatpush.msrb.mxu1 %v1404_v40  ;;  %1781 = vmatpush.msrb.mxu2 %v1449_v35 }
 0x304   : > { %1742 = vmatpush.msrb.mxu0 %v1350_v41  ;;  %1708 = vmatmul.f32.vlgmr.msra.gmra.mxu2 %v3621_v61  ;;  %v1383_v61 = vunpack.c.l.bf16 %v1174_v39 }
 0x305   : > { %1761 = vmatpush.msrb.mxu1 %v1401_v25  ;;  %1782 = vmatpush.msrb.mxu2 %v1446_v59 }
 0x306   : > { %1743 = vmatpush.msrb.mxu0 %v1347_v63  ;;  %1728 = vmatmul.f32.vlgmr.msra.gmra.mxu3 %v3646_v3 }
 0x307   : > { %1762 = vmatpush.msrb.mxu1 %v1398_v19  ;;  %1783 = vmatpush.msrb.mxu2 %v1443_v14 }
 0x308   : > { %1744 = vmatpush.msrb.mxu0 %v1344_v4 }
 0x309   : > { %1763 = vmatpush.msrb.mxu1 %v1395_v43  ;;  %1784 = vmatpush.msrb.mxu2 %v1440_v16 }
 0x30a   : > { %1745 = vmatpush.msrb.mxu0 %v1341_v22 }
 0x30b   : > { %1764 = vmatpush.msrb.mxu1 %v1392_v0  ;;  %1785 = vmatpush.msrb.mxu2 %v1437_v20 }
 0x30c   : > { %1746 = vmatpush.msrb.mxu0 %v1338_v62 }
 0x30d   : > { %1765 = vmatpush.msrb.mxu1 %v1389_v36  ;;  %1786 = vmatpush.msrb.mxu2 %v1434_v18 }
 0x30e   : > { %1747 = vmatpush.msrb.mxu0 %v1335_v11 }
 0x30f   : > { %1766 = vmatpush.msrb.mxu1 %v1386_v6  ;;  %1787 = vmatpush.msrb.mxu2 %v1431_v28 }
 0x310   : > { %1748 = vmatmul.f32.vlgmr.msrb.gmra.mxu0 %v3652_v2  ;;  %1788 = vmatmul.f32.vlgmr.msrb.gmra.mxu2 %v3671_v52 }
 0x311   : > { %1767 = vmatpush.msrb.mxu1 %v1383_v61 }
 0x312   : > { %1768 = vmatmul.f32.vlgmr.msrb.gmra.mxu1 %v3629_v60 }
 0x33c   : > { %v1509_v3 = vpop.f32.mrf.mxu0 }
 0x342   : > { %v1529_v26 = vpop.f32.mrf.mxu1 }
 0x343   : > { %v1530_v5 = vadd.f32 %v1529_v26, %v1509_v3 }
 0x344   : > { %v1569_v42 = vpop.f32.mrf.mxu3 }
 0x34f   : > { %v1549_v38 = vpop.f32.mrf.mxu2 }
 0x350   : > { %v1550_v45 = vadd.f32 %v1549_v38, %v1530_v5 }
 0x351   : > { %v1589_v57 = vpop.f32.mrf.mxu0 }
 0x352   : > { %v1570_v46 = vadd.f32 %v1569_v42, %v1550_v45 }
 0x354   : > { %v1590_v27 = vadd.f32 %v1589_v57, %v1570_v46 }
 0x35f   : > { %v1609_v7 = vpop.f32.mrf.mxu1 }
 0x361   : > { %v1649_v37 = vpop.f32.mrf.mxu3 }
 0x368   : > { %v1629_v24 = vpop.f32.mrf.mxu2 }
 0x369   : > { %v1630_v29 = vadd.f32 %v1629_v24, %v1609_v7 }
 0x36b   : > { %v1650_v34 = vadd.f32 %v1649_v37, %v1630_v29 }
 0x36c   : > { %v1669_v12 = vpop.f32.mrf.mxu0 }
 0x36d   : > { %v1670_v44 = vadd.f32 %v1669_v12, %v1650_v34 }
 0x36f   : > { %v1689_v8 = vpop.f32.mrf.mxu1 }
 0x370   : > { %v1690_v32 = vadd.f32 %v1689_v8, %v1670_v44 }
 0x372   : > { %v1795_v40 = vrot.slane %v1690_v32, 6 }
 0x374   : > { %v1798_v10 = vsel %vm1797_vm6, %v1590_v27, %v1795_v40 }
 0x387   : > { %v1709_v17 = vpop.f32.mrf.mxu2 }
 0x389   : > { %v1729_v2 = vpop.f32.mrf.mxu3 }
 0x38a   : > { %v1730_v52 = vadd.f32 %v1729_v2, %v1709_v17 }
 0x38d   : > { %v1749_v56 = vpop.f32.mrf.mxu0 }
 0x38e   : > { %v1750_v60 = vadd.f32 %v1749_v56, %v1730_v52 }
 0x38f   : > { %v1769_v9 = vpop.f32.mrf.mxu1 }
 0x390   : > { %v1770_v54 = vadd.f32 %v1769_v9, %v1750_v60 }
 0x393   : > { %v1789_v35 = vpop.f32.mrf.mxu2 }
 0x394   : > { %v1790_v53 = vadd.f32 %v1789_v35, %v1770_v54 }
 0x396   : > { %v1796_v41 = vrot.slane %v1790_v53, 4 }
 0x397   : > { %1807 = sbr.rel (%p2407_p0) target bundleno = 1167 (0x48f), region = 86 }
 0x398   : > { %v1800_v58 = vsel %vm1799_vm7, %v1798_v10, %v1796_v41 }
 0x399   : > { %v1802_v25 = vadd.f32 %v1800_v58, %v1071_v13 }
 0x39b   : > { %1803 = vst [vmem:[#allocation3] sm:$0x3f] %v1802_v25 }
 0x39c   : > { %v2529_v59 = vld [vmem:[%s3139_s16 + $0xb8] sm:$0xff]   ;;  %v2528_v55 = vld [vmem:[%s3139_s16 + $0xb0] sm:$0xff]   ;;  %v2527_v33 = vld [vmem:[%s3139_s16 + $0xa8] sm:$0xff]   ;;  %v2689_v7 = vmov 2.0   ;;  %vm1929_vm2 = vcmask 1040384  }
 0x39d   : > { %v2513_v47 = vld [vmem:[%s3139_s16 + $0x38] sm:$0xff]   ;;  %v2506_v49 = vunpack.c.h.bf16 %v2529_v59  ;;  %v2505_v31 = vunpack.c.l.bf16 %v2529_v59  ;;  %v2512_v15 = vld [vmem:[%s3139_s16 + $0x30] sm:$0xff]   ;;  %v2502_v48 = vunpack.c.h.bf16 %v2528_v55  ;;  %v2511_v22 = vld [vmem:[%s3139_s16 + $0x28] sm:$0xff]   ;;  %v2501_v0 = vunpack.c.l.bf16 %v2528_v55 }
 0x39e   : > { %v2521_v63 = vld [vmem:[%s3139_s16 + $0x78] sm:$0xff]   ;;  %v2442_v19 = vunpack.c.h.bf16 %v2513_v47  ;;  %v2520_v30 = vld [vmem:[%s3139_s16 + $0x70] sm:$0xff]   ;;  %v2441_v4 = vunpack.c.l.bf16 %v2513_v47  ;;  %v2438_v16 = vunpack.c.h.bf16 %v2512_v15  ;;  %v2437_v21 = vunpack.c.l.bf16 %v2512_v15  ;;  %v2519_v20 = vld [vmem:[%s3139_s16 + $0x68] sm:$0xff]  }
 0x39f   : > { %v2474_v14 = vunpack.c.h.bf16 %v2521_v63  ;;  %v2473_v43 = vunpack.c.l.bf16 %v2521_v63  ;;  %2100 = vmatpush.msra.mxu2 %v2506_v49  ;;  %v2470_v51 = vunpack.c.h.bf16 %v2520_v30  ;;  %v2469_v50 = vunpack.c.l.bf16 %v2520_v30  ;;  %v2526_v18 = vld [vmem:[%s3139_s16 + $0xa0] sm:$0xff]   ;;  %v2525_v42 = vld [vmem:[%s3139_s16 + $0x98] sm:$0xff]   ;;  %v2524_v34 = vld [vmem:[%s3139_s16 + $0x90] sm:$0xff]  }
 0x3a0   : > { %2060 = vmatpush.msra.mxu0 %v2442_v19  ;;  %v2498_v1 = vunpack.c.h.bf16 %v2527_v33  ;;  %v2434_v62 = vunpack.c.h.bf16 %v2511_v22  ;;  %v2466_v23 = vunpack.c.h.bf16 %v2519_v20  ;;  %v2510_v39 = vld [vmem:[%s3139_s16 + $0x20] sm:$0xff]   ;;  %v2497_v11 = vunpack.c.l.bf16 %v2527_v33  ;;  %v2509_v57 = vld [vmem:[%s3139_s16 + $0x18] sm:$0xff]   ;;  %v2508_v56 = vld [vmem:[%s3139_s16 + $0x10] sm:$0xff]  }
 0x3a1   : > { %2080 = vmatpush.msra.mxu1 %v2474_v14  ;;  %2101 = vmatpush.msra.mxu2 %v2505_v31  ;;  %v2433_v6 = vunpack.c.l.bf16 %v2511_v22  ;;  %v2518_v28 = vld [vmem:[%s3139_s16 + $0x60] sm:$0xff]   ;;  %v2465_v61 = vunpack.c.l.bf16 %v2519_v20  ;;  %v2494_v3 = vunpack.c.h.bf16 %v2526_v18  ;;  %v2430_v26 = vunpack.c.h.bf16 %v2510_v39  ;;  %v2517_v29 = vld [vmem:[%s3139_s16 + $0x58] sm:$0xff]   ;;  %v2516_v46 = vld [vmem:[%s3139_s16 + $0x50] sm:$0xff]  }
 0x3a2   : > { %2061 = vmatpush.msra.mxu0 %v2441_v4  ;;  %v3805_v36 = vld [vmem:[#allocation3] sm:$0x3f]  ;;  %v2462_v38 = vunpack.c.h.bf16 %v2518_v28  ;;  %2623 = vrcp.f32 %v2689_v7  ;;  %v2493_v24 = vunpack.c.l.bf16 %v2526_v18  ;;  %v2429_v37 = vunpack.c.l.bf16 %v2510_v39  ;;  %v2523_v58 = vld [vmem:[%s3139_s16 + $0x88] sm:$0xff]  }
 0x3a3   : > { %2081 = vmatpush.msra.mxu1 %v2473_v43  ;;  %2102 = vmatpush.msra.mxu2 %v2502_v48  ;;  %1810 = vst [vmem:[#allocation1] ss:$4 sm:$0xff] %v3805_v36  ;;  %v2461_v12 = vunpack.c.l.bf16 %v2518_v28  ;;  %v2490_v8 = vunpack.c.h.bf16 %v2525_v42  ;;  %v2426_v5 = vunpack.c.h.bf16 %v2509_v57  ;;  %v2489_v44 = vunpack.c.l.bf16 %v2525_v42  ;;  %v2507_v31 = vld [vmem:[%s3139_s16 + $0x8] sm:$0xff]  }
 0x3a4   : > { %2062 = vmatpush.msra.mxu0 %v2438_v16  ;;  %v2458_v52 = vunpack.c.h.bf16 %v2517_v29  ;;  %v2425_v9 = vunpack.c.l.bf16 %v2509_v57  ;;  %v2486_v27 = vunpack.c.h.bf16 %v2524_v34  ;;  %v2457_v13 = vunpack.c.l.bf16 %v2517_v29  ;;  %v2515_v55 = vld [vmem:[%s3139_s16 + $0x48] sm:$0xff]  }
 0x3a5   : > { %2082 = vmatpush.msra.mxu1 %v2470_v51  ;;  %2103 = vmatpush.msra.mxu2 %v2501_v0  ;;  %v2422_v10 = vunpack.c.h.bf16 %v2508_v56  ;;  %v2485_v63 = vunpack.c.l.bf16 %v2524_v34  ;;  %v2454_v49 = vunpack.c.h.bf16 %v2516_v46  ;;  %v2421_v14 = vunpack.c.l.bf16 %v2508_v56 }
 0x3a6   : > { %2063 = vmatpush.msra.mxu0 %v2437_v21  ;;  %v2482_v43 = vunpack.c.h.bf16 %v2523_v58  ;;  %v2453_v48 = vunpack.c.l.bf16 %v2516_v46  ;;  %v2418_v51 = vunpack.c.h.bf16 %v2507_v31  ;;  %v2481_v21 = vunpack.c.l.bf16 %v2523_v58 }
 0x3a7   : > { %2083 = vmatpush.msra.mxu1 %v2469_v50  ;;  %2104 = vmatpush.msra.mxu2 %v2498_v1  ;;  %v2450_v20 = vunpack.c.h.bf16 %v2515_v55  ;;  %v2522_v50 = vld [vmem:[%s3139_s16 + $0x80] sm:$0xff]  }
 0x3a8   : > { %2064 = vmatpush.msra.mxu0 %v2434_v62  ;;  %v2624_v53 = vpop.eup %2623  ;;  %v2417_v62 = vunpack.c.l.bf16 %v2507_v31  ;;  %v2478_v28 = vunpack.c.h.bf16 %v2522_v50  ;;  %v2477_v42 = vunpack.c.l.bf16 %v2522_v50  ;;  %v2514_v50 = vld [vmem:[%s3139_s16 + $0x40] sm:$0xff]  }
 0x3a9   : > { %2084 = vmatpush.msra.mxu1 %v2466_v23  ;;  %2105 = vmatpush.msra.mxu2 %v2497_v11  ;;  %v1839_v47 = vmul.f32 2.0, %v2624_v53  ;;  %vm1843_vm8 = vweird.f32 %v2624_v53  ;;  %v2449_v11 = vunpack.c.l.bf16 %v2515_v55 }
 0x3aa   : > { %2065 = vmatpush.msra.mxu0 %v2433_v6  ;;  %v1811_v17 = vld.sshfl [vmem:[#allocation1] sm:$0xff pattern:$0x73625140]  ;;  %v1812_v2 = vld.sshfl [vmem:[#allocation1 + $0x8] sm:$0xff pattern:$0x73625140] }
 0x3ab   : > { %2085 = vmatpush.msra.mxu1 %v2465_v61  ;;  %2106 = vmatpush.msra.mxu2 %v2494_v3  ;;  %v1813_v45 = vld.sshfl [vmem:[#allocation1 + $0x10] sm:$0xff pattern:$0x73625140]  ;;  %v1817_v60 = vsel %vm1797_vm6, %v1811_v17, 0.0  ;;  %v1824_v32 = vsel %vm1797_vm6, %v1812_v2, 0.0  ;;  %v1840_v4 = vsub.f32 1.0, %v1839_v47 }
 0x3ac   : > { %2066 = vmatpush.msra.mxu0 %v2430_v26  ;;  %v1818_v54 = vrot.slane %v1817_v60, 4  ;;  %v1825_v40 = vrot.slane %v1824_v32, 4  ;;  %v1831_v35 = vsel %vm1797_vm6, %v1813_v45, 0.0 }
 0x3ad   : > { %2086 = vmatpush.msra.mxu1 %v2462_v38  ;;  %2107 = vmatpush.msra.mxu2 %v2493_v24  ;;  %v1832_v41 = vrot.slane %v1831_v35, 4  ;;  %v1841_v0 = vmul.f32 %v2624_v53, %v1840_v4 }
 0x3ae   : > { %2067 = vmatpush.msra.mxu0 %v2429_v37  ;;  %v1819_v25 = vadd.f32 %v1818_v54, %v1817_v60  ;;  %v1826_v59 = vadd.f32 %v1825_v40, %v1824_v32 }
 0x3af   : > { %2087 = vmatpush.msra.mxu1 %v2461_v12  ;;  %2108 = vmatpush.msra.mxu2 %v2490_v8  ;;  %v1833_v19 = vadd.f32 %v1832_v41, %v1831_v35  ;;  %v1842_v39 = vadd.f32 %v2624_v53, %v1841_v0 }
 0x3b0   : > { %2068 = vmatpush.msra.mxu0 %v2426_v5  ;;  %v1820_v15 = vrot.slane %v1819_v25, 2  ;;  %v1827_v30 = vrot.slane %v1826_v59, 2 }
 0x3b1   : > { %2088 = vmatpush.msra.mxu1 %v2458_v52  ;;  %2109 = vmatpush.msra.mxu2 %v2489_v44  ;;  %v1834_v16 = vrot.slane %v1833_v19, 2  ;;  %v1844_v26 = vsel %vm1843_vm8, %v2624_v53, %v1842_v39 }
 0x3b2   : > { %2069 = vmatpush.msra.mxu0 %v2425_v9  ;;  %v1821_v33 = vadd.f32 %v1820_v15, %v1819_v25  ;;  %v1828_v22 = vadd.f32 %v1827_v30, %v1826_v59 }
 0x3b3   : > { %2089 = vmatpush.msra.mxu1 %v2457_v13  ;;  %2110 = vmatpush.msra.mxu2 %v2486_v27  ;;  %v1835_v1 = vadd.f32 %v1834_v16, %v1833_v19 }
 0x3b4   : > { %2070 = vmatpush.msra.mxu0 %v2422_v10  ;;  %v1822_v23 = vrot.slane %v1821_v33, 1  ;;  %v1829_v18 = vrot.slane %v1828_v22, 1 }
 0x3b5   : > { %2090 = vmatpush.msra.mxu1 %v2454_v49  ;;  %2111 = vmatpush.msra.mxu2 %v2485_v63  ;;  %v1836_v6 = vrot.slane %v1835_v1, 1 }
 0x3b6   : > { %2071 = vmatpush.msra.mxu0 %v2421_v14  ;;  %v1823_v61 = vadd.f32 %v1822_v23, %v1821_v33  ;;  %v1830_v3 = vadd.f32 %v1829_v18, %v1828_v22  ;;  %v2446_v23 = vunpack.c.h.bf16 %v2514_v50 }
 0x3b7   : > { %2091 = vmatpush.msra.mxu1 %v2453_v48  ;;  %2112 = vmatpush.msra.mxu2 %v2482_v43  ;;  %v1837_v38 = vadd.f32 %v1836_v6, %v1835_v1  ;;  %v2445_v6 = vunpack.c.l.bf16 %v2514_v50 }
 0x3b8   : > { %2072 = vmatpush.msra.mxu0 %v2418_v51  ;;  %v1845_v57 = vmul.f32 %v1844_v26, %v1823_v61  ;;  %v1846_v7 = vmul.f32 %v1844_v26, %v1830_v3 }
 0x3b9   : > { %2092 = vmatpush.msra.mxu1 %v2450_v20  ;;  %2113 = vmatpush.msra.mxu2 %v2481_v21  ;;  %v1847_v24 = vmul.f32 %v1844_v26, %v1837_v38  ;;  %v2412_v20 = vld [vmem:[%s3139_s16] sm:$0xff]  }
 0x3ba   : > { %2073 = vmatpush.msra.mxu0 %v2417_v62  ;;  %v1851_v37 = vrot.slane %v1846_v7, 6  ;;  %v2414_v62 = vunpack.c.h.bf16 %v2412_v20 }
 0x3bb   : > { %2093 = vmatpush.msra.mxu1 %v2449_v11  ;;  %2114 = vmatpush.msra.mxu2 %v2478_v28  ;;  %v1852_v29 = vrot.slane %v1847_v24, 4  ;;  %v2413_v11 = vunpack.c.l.bf16 %v2412_v20 }
 0x3bc   : > { %v1853_v12 = vsel %vm1797_vm6, %v1845_v57, %v1851_v37  ;;  %2074 = vmatpush.msra.mxu0 %v2414_v62 }
 0x3bd   : > { %2115 = vmatpush.msra.mxu2 %v2477_v42  ;;  %v1854_v34 = vsel %vm1799_vm7, %v1853_v12, %v1852_v29  ;;  %2094 = vmatpush.msra.mxu1 %v2446_v23  ;;  %v1944_v42 = vld [vmem:[%s719_s26] sm:$0x7] }
 0x3be   : > { %v3827_v8 = vsub.f32 %v3805_v36, %v1854_v34  ;;  %2075 = vmatpush.msra.mxu0 %v2413_v11  ;;  %v1947_v12 = vperm.slane %v1944_v42, 1  ;;  %v1890_v34 = vld [vmem:[%s714_s23] sm:$0x7] }
 0x3bf   : > { %2095 = vmatpush.msra.mxu1 %v2445_v6 }
 0x3c0   : > { %v1857_v5 = vmul.f32 %v3827_v8, %v3827_v8 }
 0x3c2   : > { %1859 = vst [vmem:[#allocation1] ss:$4 sm:$0xff] %v1857_v5 }
 0x3c9   : > { %v1860_v17 = vld.sshfl [vmem:[#allocation1] sm:$0xff pattern:$0x73625140]  ;;  %v1861_v2 = vld.sshfl [vmem:[#allocation1 + $0x8] sm:$0xff pattern:$0x73625140] }
 0x3ca   : > { %v1862_v44 = vld.sshfl [vmem:[#allocation1 + $0x10] sm:$0xff pattern:$0x73625140]  ;;  %v1866_v52 = vsel %vm1797_vm6, %v1860_v17, 0.0  ;;  %v1873_v56 = vsel %vm1797_vm6, %v1861_v2, 0.0 }
 0x3cb   : > { %v1867_v45 = vrot.slane %v1866_v52, 4  ;;  %v1874_v60 = vrot.slane %v1873_v56, 4  ;;  %v1880_v32 = vsel %vm1797_vm6, %v1862_v44, 0.0  ;;  %v1948_v44 = vperm.slane %v1944_v42, 2 }
 0x3cc   : > { %v1881_v9 = vrot.slane %v1880_v32, 4 }
 0x3cd   : > { %v1868_v46 = vadd.f32 %v1867_v45, %v1866_v52  ;;  %v1875_v54 = vadd.f32 %v1874_v60, %v1873_v56  ;;  %v1946_v56 = vperm.slane %v1944_v42, 0  ;;  %v1949_v45 = vrot.slane %v1947_v12, 6 }
 0x3ce   : > { %v1882_v36 = vadd.f32 %v1881_v9, %v1880_v32 }
 0x3cf   : > { %v1869_v40 = vrot.slane %v1868_v46, 2  ;;  %v1876_v35 = vrot.slane %v1875_v54, 2 }
 0x3d0   : > { %v1883_v53 = vrot.slane %v1882_v36, 2 }
 0x3d1   : > { %v1870_v27 = vadd.f32 %v1869_v40, %v1868_v46  ;;  %v1877_v13 = vadd.f32 %v1876_v35, %v1875_v54  ;;  %v1950_v46 = vrot.slane %v1948_v44, 4  ;;  %v1951_v40 = vsel %vm1797_vm6, %v1946_v56, %v1949_v45 }
 0x3d2   : > { %v1884_v41 = vadd.f32 %v1883_v53, %v1882_v36 }
 0x3d3   : > { %v1871_v10 = vrot.slane %v1870_v27, 1  ;;  %v1878_v58 = vrot.slane %v1877_v13, 1 }
 0x3d4   : > { %v1885_v25 = vrot.slane %v1884_v41, 1 }
 0x3d5   : > { %v1872_v59 = vadd.f32 %v1871_v10, %v1870_v27  ;;  %v1879_v47 = vadd.f32 %v1878_v58, %v1877_v13  ;;  %v1952_v27 = vsel %vm1799_vm7, %v1951_v40, %v1950_v46 }
 0x3d6   : > { %v1886_v63 = vadd.f32 %v1885_v25, %v1884_v41 }
 0x3d7   : > { %v1887_v49 = vmul.f32 %v1872_v59, %v1844_v26  ;;  %v1888_v31 = vmul.f32 %v1879_v47, %v1844_v26 }
 0x3d8   : > { %v1889_v19 = vmul.f32 %v1886_v63, %v1844_v26 }
 0x3d9   : > { %v1891_v14 = vadd.f32 0.001, %v1887_v49  ;;  %v1892_v55 = vadd.f32 0.001, %v1888_v31 }
 0x3da   : > { %v1893_v15 = vadd.f32 0.001, %v1889_v19 }
 0x3db   : > { %2625 = vrsqrt.f32 %v1891_v14  ;;  %vm1900_vm9 = vweird.f32 %v1891_v14  ;;  %vm1910_vm10 = vweird.f32 %v1892_v55 }
 0x3dc   : > { %2627 = vrsqrt.f32 %v1892_v55  ;;  %vm1920_vm11 = vweird.f32 %v1893_v15 }
 0x3dd   : > { %2629 = vrsqrt.f32 %v1893_v15 }
 0x3e1   : > { %v2626_v30 = vpop.eup %2625 }
 0x3e2   : > { %v2628_v4 = vpop.eup %2627  ;;  %v1895_v43 = vmul.f32 %v2626_v30, %v1891_v14  ;;  %vm1901_vm12 = vweird.f32 %v2626_v30 }
 0x3e3   : > { %v2630_v48 = vpop.eup %2629  ;;  %v1905_v16 = vmul.f32 %v2628_v4, %v1892_v55  ;;  %vm1911_vm13 = vweird.f32 %v2628_v4  ;;  %vm3837_vm15 = vmor %vm1900_vm9, %vm1901_vm12 }
 0x3e4   : > { %v1896_v51 = vmul.f32 %v2626_v30, %v1895_v43  ;;  %v1915_v33 = vmul.f32 %v2630_v48, %v1893_v15  ;;  %vm1921_vm14 = vweird.f32 %v2630_v48  ;;  %vm1912_vm0 = vmor %vm1910_vm10, %vm1911_vm13 }
 0x3e5   : > { %v1906_v22 = vmul.f32 %v2628_v4, %v1905_v16  ;;  %vm1922_vm1 = vmor %vm1920_vm11, %vm1921_vm14 }
 0x3e6   : > { %v1897_v0 = vmul.f32 0.5, %v1896_v51  ;;  %v1916_v21 = vmul.f32 %v2630_v48, %v1915_v33 }
 0x3e7   : > { %v1907_v1 = vmul.f32 0.5, %v1906_v22 }
 0x3e8   : > { %v1898_v18 = vsub.f32 1.5, %v1897_v0  ;;  %v1917_v39 = vmul.f32 0.5, %v1916_v21 }
 0x3e9   : > { %v1908_v61 = vsub.f32 1.5, %v1907_v1 }
 0x3ea   : > { %v1899_v3 = vmul.f32 %v2626_v30, %v1898_v18  ;;  %v1918_v26 = vsub.f32 1.5, %v1917_v39 }
 0x3eb   : > { %v1909_v38 = vmul.f32 %v2628_v4, %v1908_v61 }
 0x3ec   : > { %v1919_v57 = vmul.f32 %v2630_v48, %v1918_v26  ;;  %v1903_v7 = vsel %vm3837_vm15, %v2626_v30, %v1899_v3 }
 0x3ed   : > { %v1913_v24 = vsel %vm1912_vm0, %v2628_v4, %v1909_v38 }
 0x3ee   : > { %v1923_v37 = vsel %vm1922_vm1, %v2630_v48, %v1919_v57  ;;  %v1927_v29 = vrot.slane %v1913_v24, 7 }
 0x3ef   : > { %v1928_v5 = vrot.slane %v1923_v37, 6 }
 0x3f0   : > { %v1930_v17 = vsel %vm1929_vm2, %v1903_v7, %v1927_v29 }
 0x3f1   : > { %v1931_v2 = vsel %vm1797_vm6, %v1930_v17, %v1928_v5 }
 0x3f2   : > { %v1933_v52 = vmul.f32 %v1931_v2, %v1890_v34 }
 0x3f4   : > { %v1935_v60 = vperm.slane %v1933_v52, 0  ;;  %v1936_v32 = vperm.slane %v1933_v52, 1  ;;  %v1937_v9 = vperm.slane %v1933_v52, 2 }
 0x3f6   : > { %v1938_v54 = vrot.slane %v1936_v32, 6  ;;  %v1939_v36 = vrot.slane %v1937_v9, 4 }
 0x3f8   : > { %v1940_v35 = vsel %vm1797_vm6, %v1935_v60, %v1938_v54 }
 0x3f9   : > { %v1941_v53 = vsel %vm1799_vm7, %v1940_v35, %v1939_v36 }
 0x3fa   : > { %v1943_v13 = vmul.f32 %v1941_v53, %v3827_v8 }
 0x3fc   : > { %v1954_v41 = vadd.f32 %v1952_v27, %v1943_v13 }
 0x3fe   : > { %v1955_v10 = vmax.f32 %v1954_v41, 0.0 }
 0x400   : > { %2053 = vst [vmem:[#allocation1] ss:$4 sm:$0xff] %v1955_v10 }
 0x407   : > { %v2056_v58 = vld.sshfl [vmem:[#allocation1 + $0x10] sm:$0xff pattern:$0x73625140]  ;;  %v2054_v25 = vld.sshfl [vmem:[#allocation1] sm:$0xff pattern:$0x73625140] }
 0x408   : > { %2116 = vmatmul.f32.vlgmr.msra.gmra.mxu2 %v2056_v58  ;;  %2076 = vmatmul.f32.vlgmr.msra.gmra.mxu0 %v2054_v25  ;;  %v2055_v59 = vld.sshfl [vmem:[#allocation1 + $0x8] sm:$0xff pattern:$0x73625140] }
 0x409   : > { %2096 = vmatmul.f32.vlgmr.msra.gmra.mxu1 %v2055_v59 }
 0x485   : > { %v2077_v47 = vpop.f32.mrf.mxu0 }
 0x486   : > { %v2097_v63 = vpop.f32.mrf.mxu1 }
 0x487   : > { %v2098_v49 = vadd.f32 %v2097_v63, %v2077_v47 }
 0x48b   : > { %v2117_v31 = vpop.f32.mrf.mxu2 }
 0x48c   : > { %v2118_v19 = vadd.f32 %v2117_v31, %v2098_v49 }
 0x48e   : > { %2120 = vst [vmem:[%s3144_s10] sm:$0x3] %v2118_v19 }
 0x48f PF: > { %s18_s11 = sadd.s32 1, %s2685_s11   ;;  %s3946_s30 = sld [smem:[#allocation5_spill]] }
 0x490   : > { %p15_p1 = scmp.ge.s32.totalorder %s18_s11, 12   ;;  %s3947_s17 = sld [smem:[#allocation6_spill]] }
 0x491   : > { %s3948_s10 = sld [smem:[#allocation7_spill]]  ;;  %s3949_s27 = smov %s2665_s28 }
 0x492   : > { %s3950_s28 = smov %s2786_s18  ;;  %s3951_s29 = smov %s2677_s9 }
 0x493   :  { %17 = sbr.rel (!%p15_p1) target bundleno = 6 (0x6), region = 160 }
 0x496   : > { %s3952_s9 = smov %s3947_s17 }

</bundles_post_ra>
